<compile_context>
chip_gen: v5e
topology: v5e:2x2
jax: 0.10.0
libtpu: 0.0.40
codegen_flags: <defaults>
</compile_context>

<pallas_src>
import math
import functools

import jax
import jax.numpy as jnp
from jax.experimental import pallas as pl
from jax.experimental.pallas import tpu as pltpu

EPS = 1e-5  # torch LayerNorm default
F32 = jnp.float32
BF16 = jnp.bfloat16


def _round_up(v, m):
    return (v + m - 1) // m * m


def _layernorm(x, g, b):
    mu = jnp.mean(x, axis=-1, keepdims=True)
    var = jnp.mean((x - mu) ** 2, axis=-1, keepdims=True)
    return (x - mu) * jax.lax.rsqrt(var + EPS) * g + b


# ----------------------------------------------------------------------------
# Single fused kernel.  One grid step processes `bb` batch elements.
#   x_ref   : [bb*T, C_in]      points (batch stacked on sublanes)
#   vec_ref : [28, 128]  f32    all 1-row params (biases / LN params / token)
#   mlp_ref : [200, 128] bf16   point-MLP weights (row-packed, lane-padded)
#   blk_ref : [L, 7D, 128] bf16 per-block weights (qkv | o | fc1 | fc2)
#   o_ref   : [bb, 1, D] f32    final point_out token per batch element
# ----------------------------------------------------------------------------
def _fused_kernel(bb, t, c_in, c1, c2, d, n_heads,
                  x_ref, vec_ref, mlp_ref, blk_ref, o_ref):
    hd = d // n_heads
    s = t + 1
    n_layers = blk_ref.shape[0]
    scale = 1.0 / math.sqrt(hd)
    r1 = _round_up(c_in, 8)

    vec = vec_ref[...]                                     # [28, 128] f32, resident

    def vrow(i, w):                                        # one packed param row
        return vec[i:i + 1, 0:w]                           # [1, w]

    # ---- point MLP: (Linear -> LN -> ReLU) x 3, all bb*T points on sublanes ----
    pts = x_ref[...].astype(BF16)                          # [bb*T, C_in]
    h = jnp.dot(pts, mlp_ref[0:c_in, :],
                preferred_element_type=F32)[:, 0:c1] + vrow(0, c1)
    h = jnp.maximum(_layernorm(h, vrow(1, c1), vrow(2, c1)), 0.0)
    h = jnp.dot(h.astype(BF16), mlp_ref[r1:r1 + c1, :],
                preferred_element_type=F32)[:, 0:c2] + vrow(3, c2)
    h = jnp.maximum(_layernorm(h, vrow(4, c2), vrow(5, c2)), 0.0)
    h = jnp.dot(h.astype(BF16), mlp_ref[r1 + c1:r1 + c1 + c2, :],
                preferred_element_type=F32)[:, 0:d] + vrow(6, d)
    h = jnp.maximum(_layernorm(h, vrow(7, d), vrow(8, d)), 0.0)   # [bb*T, D]

    tok = vrow(9, d)                                       # [1, D] point_out_token

    # ---- per-batch sequences: [point features ; point_out_token] (in registers)
    xs = [jnp.concatenate([h[b * t:(b + 1) * t, :], tok], axis=0)  # [S, D]
          for b in range(bb)]

    def attention(x_ln, w_qkv, w_o, last_only):
        # fused lane-dense QKV projection: ONE [S,D]x[D,128] matmul
        qkv = jnp.dot(x_ln.astype(BF16), w_qkv, preferred_element_type=F32)  # [S, 128]
        q = qkv[:, 0:d]
        kT = qkv[:, d:2 * d].T.astype(BF16)                # single K transpose / layer
        v = qkv[:, 2 * d:3 * d].astype(BF16)
        if last_only:                                      # only the returned row's query
            q = q[s - 1:s, :]
        q = q.astype(BF16)
        outs = []
        for hh in range(n_heads):                          # tiny per-head score/PV matmuls
            lo = hh * hd
            sc = jnp.dot(q[:, lo:lo + hd], kT[lo:lo + hd, :],
                         preferred_element_type=F32) * scale       # [Sq, S]
            sc = sc - jnp.max(sc, axis=-1, keepdims=True)
            p = jnp.exp(sc)
            p = p * pl.reciprocal(jnp.sum(p, axis=-1, keepdims=True), approx=True)
            outs.append(jnp.dot(p.astype(BF16), v[:, lo:lo + hd],
                                preferred_element_type=F32))       # [Sq, hd]
        o = jnp.concatenate(outs, axis=-1)                 # heads concatenated on lanes
        # folded output projection: ONE lane-dense [Sq,D]x[D,D] matmul
        return jnp.dot(o.astype(BF16), w_o, preferred_element_type=F32)[:, 0:d]

    def mlp_block(x_ln, w_fc1, w_fc2):
        m = jnp.dot(x_ln.astype(BF16), w_fc1, preferred_element_type=F32)[:, 0:4 * d]
        m = jax.nn.gelu(m, approximate=True)  # TODO(synk): torch nn.GELU default is exact erf
        return jnp.dot(m.astype(BF16), w_fc2, preferred_element_type=F32)[:, 0:d]

    # ---- transformer blocks (weights loaded once per layer, shared over bb) ----
    for l in range(n_layers):
        wl = blk_ref[l]                                    # [7D, 128] bf16
        w_qkv = wl[0:d]
        w_o = wl[d:2 * d]
        w_fc1 = wl[2 * d:3 * d]
        w_fc2 = wl[3 * d:7 * d]
        r = 12 + 4 * l
        last = (l == n_layers - 1)
        for b in range(bb):
            xb = xs[b]
            x_ln = _layernorm(xb, vrow(r, d), vrow(r + 1, d))
            a = attention(x_ln, w_qkv, w_o, last_only=last)
            xb = (xb[s - 1:s, :] if last else xb) + a      # last block: final row only
            x_ln2 = _layernorm(xb, vrow(r + 2, d), vrow(r + 3, d))
            xs[b] = xb + mlp_block(x_ln2, w_fc1, w_fc2)

    # ---- final LayerNorm only on the returned point_out token -----------------
    ys = [_layernorm(xs[b], vrow(10, d), vrow(11, d))[None] for b in range(bb)]  # [1,1,D]
    o_ref[...] = jnp.concatenate(ys, axis=0)               # [bb, 1, D]


# ----------------------------------------------------------------------------
# Wrapper: host-side parameter packing + the pallas_call.
# ----------------------------------------------------------------------------
def _pad2d(a, rows, cols):
    return jnp.pad(a, ((0, rows - a.shape[0]), (0, cols - a.shape[1])))


def _single_tensorcore_chip():
    """True for v5e/v6e-class chips (1 TensorCore): fold the batch there."""
    try:
        kind = jax.devices()[0].device_kind.lower()
    except Exception:
        return False
    return any(tag in kind for tag in ("v5 lite", "v5e", "v5litepod", "v6 lite", "v6e"))


def point_attn_encoder_forward(x, params, n_heads=8):
    b, t, c_in = x.shape
    mlp = params["mlp"]
    c1 = mlp["w1"].shape[1]
    c2 = mlp["w2"].shape[1]
    d = mlp["w3"].shape[1]
    n_layers = len(params["blocks"])
    assert d % n_heads == 0 and d % 8 == 0

    lane = 128
    vw = _round_up(max(c1, c2, d), lane)          # vector-slab width
    mw = _round_up(max(c1, c2, d), lane)          # point-MLP weight slab width
    bw = _round_up(max(3 * d, 4 * d), lane)       # block weight slab width
    r1 = _round_up(c_in, 8)

    # ---- slab 1: every 1-row parameter, one f32 DMA -------------------------
    rows = [mlp["b1"], mlp["g1"], mlp["be1"],
            mlp["b2"], mlp["g2"], mlp["be2"],
            mlp["b3"], mlp["g3"], mlp["be3"],
            params["point_out_token"], params["ln_f_g"], params["ln_f_b"]]
    for blk in params["blocks"]:
        rows += [blk["ln1_g"], blk["ln1_b"], blk["ln2_g"], blk["ln2_b"]]
    vec_slab = jnp.concatenate([_pad2d(r.reshape(1, -1), 1, vw) for r in rows], axis=0)

    # ---- slab 2: point-MLP weights, one bf16 DMA -----------------------------
    mlp_slab = jnp.concatenate([_pad2d(mlp["w1"], r1, mw),
                                _pad2d(mlp["w2"], c1, mw),
                                _pad2d(mlp["w3"], c2, mw)], axis=0).astype(BF16)

    # ---- slab 3: per-block weights (qkv | o | fc1 | fc2), one bf16 DMA -------
    def pack_block(blk):
        return jnp.concatenate([_pad2d(blk["w_qkv"], d, bw),
                                _pad2d(blk["w_o"], d, bw),
                                _pad2d(blk["w_fc1"], d, bw),
                                _pad2d(blk["w_fc2"], 4 * d, bw)], axis=0)
    blk_slab = jnp.stack([pack_block(blk) for blk in params["blocks"]],
                         axis=0).astype(BF16)

    # ---- grid strategy: fold batch on single-TC chips, parallel grid on v7x --
    bb = b if _single_tensorcore_chip() else 1
    grid = (b // bb,)

    x2 = x.reshape(b * t, c_in)   # batch stacked on sublanes (free XLA reshape)

    kernel = functools.partial(_fused_kernel, bb, t, c_in, c1, c2, d, n_heads)
    return pl.pallas_call(
        kernel,
        out_shape=jax.ShapeDtypeStruct((b, 1, d), jnp.float32),
        grid=grid,
        in_specs=[
            pl.BlockSpec((bb * t, c_in), lambda i: (i, 0)),
            pl.BlockSpec(vec_slab.shape, lambda i: (0, 0)),
            pl.BlockSpec(mlp_slab.shape, lambda i: (0, 0)),
            pl.BlockSpec(blk_slab.shape, lambda i: (0, 0, 0)),
        ],
        out_specs=pl.BlockSpec((bb, 1, d), lambda i: (i, 0, 0)),
        compiler_params=pltpu.CompilerParams(dimension_semantics=("parallel",)),
    )(x2, vec_slab, mlp_slab, blk_slab)


# ----------------------------------------------------------------------------
# Deterministic parameter init (synthetic, matches the module's shapes).
# ----------------------------------------------------------------------------
def init_params(key, in_channels=3, out_channels=32, n_layers=4):
    keys = iter(jax.random.split(key, 64))

    def w(shape, scale=0.02):
        return (scale * jax.random.normal(next(keys), shape)).astype(jnp.float32)

    bc = [64, 128, out_channels]
    mlp = dict(
        w1=w((in_channels, bc[0])), b1=w((1, bc[0])),
        g1=jnp.ones((1, bc[0]), jnp.float32), be1=jnp.zeros((1, bc[0]), jnp.float32),
        w2=w((bc[0], bc[1])), b2=w((1, bc[1])),
        g2=jnp.ones((1, bc[1]), jnp.float32), be2=jnp.zeros((1, bc[1]), jnp.float32),
        w3=w((bc[1], bc[2])), b3=w((1, bc[2])),
        g3=jnp.ones((1, bc[2]), jnp.float32), be3=jnp.zeros((1, bc[2]), jnp.float32),
    )
    d = out_channels
    blocks = []
    for _ in range(n_layers):
        blocks.append(dict(
            ln1_g=jnp.ones((1, d), jnp.float32), ln1_b=jnp.zeros((1, d), jnp.float32),
            w_qkv=w((d, 3 * d)), w_o=w((d, d)),
            ln2_g=jnp.ones((1, d), jnp.float32), ln2_b=jnp.zeros((1, d), jnp.float32),
            w_fc1=w((d, 4 * d)), w_fc2=w((4 * d, d)),
        ))
    return dict(
        mlp=mlp,
        blocks=blocks,
        point_out_token=w((1, d)),
        ln_f_g=jnp.ones((1, d), jnp.float32),
        ln_f_b=jnp.zeros((1, d), jnp.float32),
    )


if __name__ == "__main__":
    key = jax.random.PRNGKey(0)
    kp, kx = jax.random.split(key)

    use_pc_color = False
    in_channels = 6 if use_pc_color else 3
    out_channels = 32          # embed_dim; divisible by n_heads=8
    n_layers = 4
    B, T = 2, 8                # batch, number of points (T multiple of 8)

    params = init_params(kp, in_channels, out_channels, n_layers)
    x = jax.random.normal(kx, (B, T, in_channels), dtype=jnp.float32)

    out = point_attn_encoder_forward(x, params, n_heads=8)
    out = jax.block_until_ready(out)
    assert out.shape == (B, 1, out_channels), out.shape
    assert bool(jnp.all(jnp.isfinite(out)))
    print("KERNEL_OK")
</pallas_src>

<mosaic_0001>
module attributes {stable_mosaic.version = 11 : i64} {
  func.func @_fused_kernel(%arg0: i32, %arg1: memref<8x3xf32, #tpu.memory_space<vmem>>, %arg2: memref<28x128xf32, #tpu.memory_space<vmem>>, %arg3: memref<200x128xbf16, #tpu.memory_space<vmem>>, %arg4: memref<4x224x128xbf16, #tpu.memory_space<vmem>>, %arg5: memref<1x1x32xf32, #tpu.memory_space<vmem>>) attributes {dimension_semantics = [#tpu.dimension_semantics<parallel>], iteration_bounds = array<i64: 2>, scalar_prefetch = 0 : i64, scratch_operands = 0 : i64, tpu.core_type = #tpu.core_type<tc>, window_params = [{transform_indices = @transform_0, window_bounds = array<i64: 8, 3>}, {pipeline_mode = #tpu.pipeline_mode<synchronous>, transform_indices = @transform_1, window_bounds = array<i64: 28, 128>}, {pipeline_mode = #tpu.pipeline_mode<synchronous>, transform_indices = @transform_2, window_bounds = array<i64: 200, 128>}, {pipeline_mode = #tpu.pipeline_mode<synchronous>, transform_indices = @transform_3, window_bounds = array<i64: 4, 224, 128>}, {transform_indices = @transform_4, window_bounds = array<i64: 1, 1, 32>}]} {
    %c0 = arith.constant 0 : index
    %c0_0 = arith.constant 0 : index
    %0 = vector.load %arg2[%c0, %c0_0] : memref<28x128xf32, #tpu.memory_space<vmem>>, vector<28x128xf32>
    %c0_1 = arith.constant 0 : index
    %c0_2 = arith.constant 0 : index
    %1 = vector.load %arg1[%c0_1, %c0_2] : memref<8x3xf32, #tpu.memory_space<vmem>>, vector<8x3xf32>
    %2 = arith.truncf %1 : vector<8x3xf32> to vector<8x3xbf16>
    %c0_3 = arith.constant 0 : index
    %c0_4 = arith.constant 0 : index
    %3 = vector.load %arg3[%c0_3, %c0_4] : memref<200x128xbf16, #tpu.memory_space<vmem>>, vector<3x128xbf16>
    %cst = arith.constant dense<0.000000e+00> : vector<8x128xf32>
    %4 = tpu.matmul %2, %3, %cst {dimension_numbers = #tpu.dot_dimension_numbers<[1], [0], [0], [1], [0, 0, 1, 1], [], []>} : vector<8x3xbf16>, vector<3x128xbf16>, vector<8x128xf32> -> vector<8x128xf32>
    %5 = vector.extract_strided_slice %4 {offsets = [0, 0], sizes = [8, 64], strides = [1, 1]} : vector<8x128xf32> to vector<8x64xf32>
    %6 = vector.extract_strided_slice %0 {offsets = [0, 0], sizes = [1, 64], strides = [1, 1]} : vector<28x128xf32> to vector<1x64xf32>
    %7 = vector.broadcast %6 : vector<1x64xf32> to vector<8x64xf32>
    %8 = arith.addf %5, %7 : vector<8x64xf32>
    %9 = vector.extract_strided_slice %0 {offsets = [1, 0], sizes = [1, 64], strides = [1, 1]} : vector<28x128xf32> to vector<1x64xf32>
    %10 = vector.extract_strided_slice %0 {offsets = [2, 0], sizes = [1, 64], strides = [1, 1]} : vector<28x128xf32> to vector<1x64xf32>
    %cst_5 = arith.constant dense<0.000000e+00> : vector<8xf32>
    %11 = vector.multi_reduction <add>, %8, %cst_5 [1] : vector<8x64xf32> to vector<8xf32>
    %12 = vector.shape_cast %11 : vector<8xf32> to vector<8x1xf32>
    %cst_6 = arith.constant 6.400000e+01 : f32
    %13 = vector.broadcast %cst_6 : f32 to vector<8x1xf32>
    %14 = arith.divf %12, %13 : vector<8x1xf32>
    %15 = vector.broadcast %14 : vector<8x1xf32> to vector<8x64xf32>
    %16 = arith.subf %8, %15 : vector<8x64xf32>
    %17 = arith.mulf %16, %16 : vector<8x64xf32>
    %cst_7 = arith.constant dense<0.000000e+00> : vector<8xf32>
    %18 = vector.multi_reduction <add>, %17, %cst_7 [1] : vector<8x64xf32> to vector<8xf32>
    %19 = vector.shape_cast %18 : vector<8xf32> to vector<8x1xf32>
    %cst_8 = arith.constant 6.400000e+01 : f32
    %20 = vector.broadcast %cst_8 : f32 to vector<8x1xf32>
    %21 = arith.divf %19, %20 : vector<8x1xf32>
    %22 = vector.broadcast %14 : vector<8x1xf32> to vector<8x64xf32>
    %23 = arith.subf %8, %22 : vector<8x64xf32>
    %cst_9 = arith.constant 9.99999974E-6 : f32
    %24 = vector.broadcast %cst_9 : f32 to vector<8x1xf32>
    %25 = arith.addf %21, %24 : vector<8x1xf32>
    %26 = math.rsqrt %25 : vector<8x1xf32>
    %27 = vector.broadcast %26 : vector<8x1xf32> to vector<8x64xf32>
    %28 = arith.mulf %23, %27 : vector<8x64xf32>
    %29 = vector.broadcast %9 : vector<1x64xf32> to vector<8x64xf32>
    %30 = arith.mulf %28, %29 : vector<8x64xf32>
    %31 = vector.broadcast %10 : vector<1x64xf32> to vector<8x64xf32>
    %32 = arith.addf %30, %31 : vector<8x64xf32>
    %cst_10 = arith.constant 0.000000e+00 : f32
    %33 = vector.broadcast %cst_10 : f32 to vector<8x64xf32>
    %34 = arith.maximumf %32, %33 : vector<8x64xf32>
    %35 = arith.truncf %34 : vector<8x64xf32> to vector<8x64xbf16>
    %c8 = arith.constant 8 : index
    %c0_11 = arith.constant 0 : index
    %36 = vector.load %arg3[%c8, %c0_11] : memref<200x128xbf16, #tpu.memory_space<vmem>>, vector<64x128xbf16>
    %cst_12 = arith.constant dense<0.000000e+00> : vector<8x128xf32>
    %37 = tpu.matmul %35, %36, %cst_12 {dimension_numbers = #tpu.dot_dimension_numbers<[1], [0], [0], [1], [0, 0, 1, 1], [], []>} : vector<8x64xbf16>, vector<64x128xbf16>, vector<8x128xf32> -> vector<8x128xf32>
    %38 = vector.extract_strided_slice %0 {offsets = [3, 0], sizes = [1, 128], strides = [1, 1]} : vector<28x128xf32> to vector<1x128xf32>
    %39 = vector.broadcast %38 : vector<1x128xf32> to vector<8x128xf32>
    %40 = arith.addf %37, %39 : vector<8x128xf32>
    %41 = vector.extract_strided_slice %0 {offsets = [4, 0], sizes = [1, 128], strides = [1, 1]} : vector<28x128xf32> to vector<1x128xf32>
    %42 = vector.extract_strided_slice %0 {offsets = [5, 0], sizes = [1, 128], strides = [1, 1]} : vector<28x128xf32> to vector<1x128xf32>
    %cst_13 = arith.constant dense<0.000000e+00> : vector<8xf32>
    %43 = vector.multi_reduction <add>, %40, %cst_13 [1] : vector<8x128xf32> to vector<8xf32>
    %44 = vector.shape_cast %43 : vector<8xf32> to vector<8x1xf32>
    %cst_14 = arith.constant 1.280000e+02 : f32
    %45 = vector.broadcast %cst_14 : f32 to vector<8x1xf32>
    %46 = arith.divf %44, %45 : vector<8x1xf32>
    %47 = vector.broadcast %46 : vector<8x1xf32> to vector<8x128xf32>
    %48 = arith.subf %40, %47 : vector<8x128xf32>
    %49 = arith.mulf %48, %48 : vector<8x128xf32>
    %cst_15 = arith.constant dense<0.000000e+00> : vector<8xf32>
    %50 = vector.multi_reduction <add>, %49, %cst_15 [1] : vector<8x128xf32> to vector<8xf32>
    %51 = vector.shape_cast %50 : vector<8xf32> to vector<8x1xf32>
    %cst_16 = arith.constant 1.280000e+02 : f32
    %52 = vector.broadcast %cst_16 : f32 to vector<8x1xf32>
    %53 = arith.divf %51, %52 : vector<8x1xf32>
    %54 = vector.broadcast %46 : vector<8x1xf32> to vector<8x128xf32>
    %55 = arith.subf %40, %54 : vector<8x128xf32>
    %cst_17 = arith.constant 9.99999974E-6 : f32
    %56 = vector.broadcast %cst_17 : f32 to vector<8x1xf32>
    %57 = arith.addf %53, %56 : vector<8x1xf32>
    %58 = math.rsqrt %57 : vector<8x1xf32>
    %59 = vector.broadcast %58 : vector<8x1xf32> to vector<8x128xf32>
    %60 = arith.mulf %55, %59 : vector<8x128xf32>
    %61 = vector.broadcast %41 : vector<1x128xf32> to vector<8x128xf32>
    %62 = arith.mulf %60, %61 : vector<8x128xf32>
    %63 = vector.broadcast %42 : vector<1x128xf32> to vector<8x128xf32>
    %64 = arith.addf %62, %63 : vector<8x128xf32>
    %cst_18 = arith.constant 0.000000e+00 : f32
    %65 = vector.broadcast %cst_18 : f32 to vector<8x128xf32>
    %66 = arith.maximumf %64, %65 : vector<8x128xf32>
    %67 = arith.truncf %66 : vector<8x128xf32> to vector<8x128xbf16>
    %c72 = arith.constant 72 : index
    %c0_19 = arith.constant 0 : index
    %68 = vector.load %arg3[%c72, %c0_19] : memref<200x128xbf16, #tpu.memory_space<vmem>>, vector<128x128xbf16>
    %cst_20 = arith.constant dense<0.000000e+00> : vector<8x128xf32>
    %69 = tpu.matmul %67, %68, %cst_20 {dimension_numbers = #tpu.dot_dimension_numbers<[1], [0], [0], [1], [0, 0, 1, 1], [], []>} : vector<8x128xbf16>, vector<128x128xbf16>, vector<8x128xf32> -> vector<8x128xf32>
    %70 = vector.extract_strided_slice %69 {offsets = [0, 0], sizes = [8, 32], strides = [1, 1]} : vector<8x128xf32> to vector<8x32xf32>
    %71 = vector.extract_strided_slice %0 {offsets = [6, 0], sizes = [1, 32], strides = [1, 1]} : vector<28x128xf32> to vector<1x32xf32>
    %72 = vector.broadcast %71 : vector<1x32xf32> to vector<8x32xf32>
    %73 = arith.addf %70, %72 : vector<8x32xf32>
    %74 = vector.extract_strided_slice %0 {offsets = [7, 0], sizes = [1, 32], strides = [1, 1]} : vector<28x128xf32> to vector<1x32xf32>
    %75 = vector.extract_strided_slice %0 {offsets = [8, 0], sizes = [1, 32], strides = [1, 1]} : vector<28x128xf32> to vector<1x32xf32>
    %cst_21 = arith.constant dense<0.000000e+00> : vector<8xf32>
    %76 = vector.multi_reduction <add>, %73, %cst_21 [1] : vector<8x32xf32> to vector<8xf32>
    %77 = vector.shape_cast %76 : vector<8xf32> to vector<8x1xf32>
    %cst_22 = arith.constant 3.200000e+01 : f32
    %78 = vector.broadcast %cst_22 : f32 to vector<8x1xf32>
    %79 = arith.divf %77, %78 : vector<8x1xf32>
    %80 = vector.broadcast %79 : vector<8x1xf32> to vector<8x32xf32>
    %81 = arith.subf %73, %80 : vector<8x32xf32>
    %82 = arith.mulf %81, %81 : vector<8x32xf32>
    %cst_23 = arith.constant dense<0.000000e+00> : vector<8xf32>
    %83 = vector.multi_reduction <add>, %82, %cst_23 [1] : vector<8x32xf32> to vector<8xf32>
    %84 = vector.shape_cast %83 : vector<8xf32> to vector<8x1xf32>
    %cst_24 = arith.constant 3.200000e+01 : f32
    %85 = vector.broadcast %cst_24 : f32 to vector<8x1xf32>
    %86 = arith.divf %84, %85 : vector<8x1xf32>
    %87 = vector.broadcast %79 : vector<8x1xf32> to vector<8x32xf32>
    %88 = arith.subf %73, %87 : vector<8x32xf32>
    %cst_25 = arith.constant 9.99999974E-6 : f32
    %89 = vector.broadcast %cst_25 : f32 to vector<8x1xf32>
    %90 = arith.addf %86, %89 : vector<8x1xf32>
    %91 = math.rsqrt %90 : vector<8x1xf32>
    %92 = vector.broadcast %91 : vector<8x1xf32> to vector<8x32xf32>
    %93 = arith.mulf %88, %92 : vector<8x32xf32>
    %94 = vector.broadcast %74 : vector<1x32xf32> to vector<8x32xf32>
    %95 = arith.mulf %93, %94 : vector<8x32xf32>
    %96 = vector.broadcast %75 : vector<1x32xf32> to vector<8x32xf32>
    %97 = arith.addf %95, %96 : vector<8x32xf32>
    %cst_26 = arith.constant 0.000000e+00 : f32
    %98 = vector.broadcast %cst_26 : f32 to vector<8x32xf32>
    %99 = arith.maximumf %97, %98 : vector<8x32xf32>
    %100 = vector.extract_strided_slice %0 {offsets = [9, 0], sizes = [1, 32], strides = [1, 1]} : vector<28x128xf32> to vector<1x32xf32>
    %101 = tpu.concatenate %99, %100 in 0 : vector<8x32xf32>, vector<1x32xf32> -> vector<9x32xf32>
    %c0_27 = arith.constant 0 : index
    %c0_28 = arith.constant 0 : index
    %c0_29 = arith.constant 0 : index
    %102 = vector.load %arg4[%c0_27, %c0_28, %c0_29] : memref<4x224x128xbf16, #tpu.memory_space<vmem>>, vector<1x224x128xbf16>
    %103 = vector.shape_cast %102 : vector<1x224x128xbf16> to vector<224x128xbf16>
    %104 = vector.extract_strided_slice %103 {offsets = [0, 0], sizes = [32, 128], strides = [1, 1]} : vector<224x128xbf16> to vector<32x128xbf16>
    %105 = vector.extract_strided_slice %103 {offsets = [32, 0], sizes = [32, 128], strides = [1, 1]} : vector<224x128xbf16> to vector<32x128xbf16>
    %106 = vector.extract_strided_slice %103 {offsets = [64, 0], sizes = [32, 128], strides = [1, 1]} : vector<224x128xbf16> to vector<32x128xbf16>
    %107 = vector.extract_strided_slice %103 {offsets = [96, 0], sizes = [128, 128], strides = [1, 1]} : vector<224x128xbf16> to vector<128x128xbf16>
    %108 = vector.extract_strided_slice %0 {offsets = [12, 0], sizes = [1, 32], strides = [1, 1]} : vector<28x128xf32> to vector<1x32xf32>
    %109 = vector.extract_strided_slice %0 {offsets = [13, 0], sizes = [1, 32], strides = [1, 1]} : vector<28x128xf32> to vector<1x32xf32>
    %cst_30 = arith.constant dense<0.000000e+00> : vector<9xf32>
    %110 = vector.multi_reduction <add>, %101, %cst_30 [1] : vector<9x32xf32> to vector<9xf32>
    %111 = vector.shape_cast %110 : vector<9xf32> to vector<9x1xf32>
    %cst_31 = arith.constant 3.200000e+01 : f32
    %112 = vector.broadcast %cst_31 : f32 to vector<9x1xf32>
    %113 = arith.divf %111, %112 : vector<9x1xf32>
    %114 = vector.broadcast %113 : vector<9x1xf32> to vector<9x32xf32>
    %115 = arith.subf %101, %114 : vector<9x32xf32>
    %116 = arith.mulf %115, %115 : vector<9x32xf32>
    %cst_32 = arith.constant dense<0.000000e+00> : vector<9xf32>
    %117 = vector.multi_reduction <add>, %116, %cst_32 [1] : vector<9x32xf32> to vector<9xf32>
    %118 = vector.shape_cast %117 : vector<9xf32> to vector<9x1xf32>
    %cst_33 = arith.constant 3.200000e+01 : f32
    %119 = vector.broadcast %cst_33 : f32 to vector<9x1xf32>
    %120 = arith.divf %118, %119 : vector<9x1xf32>
    %121 = vector.broadcast %113 : vector<9x1xf32> to vector<9x32xf32>
    %122 = arith.subf %101, %121 : vector<9x32xf32>
    %cst_34 = arith.constant 9.99999974E-6 : f32
    %123 = vector.broadcast %cst_34 : f32 to vector<9x1xf32>
    %124 = arith.addf %120, %123 : vector<9x1xf32>
    %125 = math.rsqrt %124 : vector<9x1xf32>
    %126 = vector.broadcast %125 : vector<9x1xf32> to vector<9x32xf32>
    %127 = arith.mulf %122, %126 : vector<9x32xf32>
    %128 = vector.broadcast %108 : vector<1x32xf32> to vector<9x32xf32>
    %129 = arith.mulf %127, %128 : vector<9x32xf32>
    %130 = vector.broadcast %109 : vector<1x32xf32> to vector<9x32xf32>
    %131 = arith.addf %129, %130 : vector<9x32xf32>
    %132 = arith.truncf %131 : vector<9x32xf32> to vector<9x32xbf16>
    %cst_35 = arith.constant dense<0.000000e+00> : vector<9x128xf32>
    %133 = tpu.matmul %132, %104, %cst_35 {dimension_numbers = #tpu.dot_dimension_numbers<[1], [0], [0], [1], [0, 0, 1, 1], [], []>} : vector<9x32xbf16>, vector<32x128xbf16>, vector<9x128xf32> -> vector<9x128xf32>
    %134 = vector.extract_strided_slice %133 {offsets = [0, 0], sizes = [9, 32], strides = [1, 1]} : vector<9x128xf32> to vector<9x32xf32>
    %135 = vector.extract_strided_slice %133 {offsets = [0, 32], sizes = [9, 32], strides = [1, 1]} : vector<9x128xf32> to vector<9x32xf32>
    %136 = tpu.transpose %135, [1, 0] : vector<9x32xf32> -> vector<32x9xf32>
    %137 = arith.truncf %136 : vector<32x9xf32> to vector<32x9xbf16>
    %138 = vector.extract_strided_slice %133 {offsets = [0, 64], sizes = [9, 32], strides = [1, 1]} : vector<9x128xf32> to vector<9x32xf32>
    %139 = arith.truncf %138 : vector<9x32xf32> to vector<9x32xbf16>
    %140 = arith.truncf %134 : vector<9x32xf32> to vector<9x32xbf16>
    %141 = vector.extract_strided_slice %140 {offsets = [0, 0], sizes = [9, 4], strides = [1, 1]} : vector<9x32xbf16> to vector<9x4xbf16>
    %142 = vector.extract_strided_slice %137 {offsets = [0, 0], sizes = [4, 9], strides = [1, 1]} : vector<32x9xbf16> to vector<4x9xbf16>
    %cst_36 = arith.constant dense<0.000000e+00> : vector<9x9xf32>
    %143 = tpu.matmul %141, %142, %cst_36 {dimension_numbers = #tpu.dot_dimension_numbers<[1], [0], [0], [1], [0, 0, 1, 1], [], []>} : vector<9x4xbf16>, vector<4x9xbf16>, vector<9x9xf32> -> vector<9x9xf32>
    %cst_37 = arith.constant 5.000000e-01 : f32
    %144 = vector.broadcast %cst_37 : f32 to vector<9x9xf32>
    %145 = arith.mulf %143, %144 : vector<9x9xf32>
    %cst_38 = arith.constant dense<0xFF800000> : vector<9xf32>
    %146 = vector.multi_reduction <maximumf>, %145, %cst_38 [1] : vector<9x9xf32> to vector<9xf32>
    %147 = vector.shape_cast %146 : vector<9xf32> to vector<9x1xf32>
    %148 = vector.broadcast %147 : vector<9x1xf32> to vector<9x9xf32>
    %149 = arith.subf %145, %148 : vector<9x9xf32>
    %150 = math.exp %149 : vector<9x9xf32>
    %cst_39 = arith.constant dense<0.000000e+00> : vector<9xf32>
    %151 = vector.multi_reduction <add>, %150, %cst_39 [1] : vector<9x9xf32> to vector<9xf32>
    %152 = vector.shape_cast %151 : vector<9xf32> to vector<9x1xf32>
    %153 = tpu.reciprocal %152 {approx = true} : vector<9x1xf32> -> vector<9x1xf32>
    %154 = vector.broadcast %153 : vector<9x1xf32> to vector<9x9xf32>
    %155 = arith.mulf %150, %154 : vector<9x9xf32>
    %156 = arith.truncf %155 : vector<9x9xf32> to vector<9x9xbf16>
    %157 = vector.extract_strided_slice %139 {offsets = [0, 0], sizes = [9, 4], strides = [1, 1]} : vector<9x32xbf16> to vector<9x4xbf16>
    %cst_40 = arith.constant dense<0.000000e+00> : vector<9x4xf32>
    %158 = tpu.matmul %156, %157, %cst_40 {dimension_numbers = #tpu.dot_dimension_numbers<[1], [0], [0], [1], [0, 0, 1, 1], [], []>} : vector<9x9xbf16>, vector<9x4xbf16>, vector<9x4xf32> -> vector<9x4xf32>
    %159 = vector.extract_strided_slice %140 {offsets = [0, 4], sizes = [9, 4], strides = [1, 1]} : vector<9x32xbf16> to vector<9x4xbf16>
    %160 = vector.extract_strided_slice %137 {offsets = [4, 0], sizes = [4, 9], strides = [1, 1]} : vector<32x9xbf16> to vector<4x9xbf16>
    %cst_41 = arith.constant dense<0.000000e+00> : vector<9x9xf32>
    %161 = tpu.matmul %159, %160, %cst_41 {dimension_numbers = #tpu.dot_dimension_numbers<[1], [0], [0], [1], [0, 0, 1, 1], [], []>} : vector<9x4xbf16>, vector<4x9xbf16>, vector<9x9xf32> -> vector<9x9xf32>
    %cst_42 = arith.constant 5.000000e-01 : f32
    %162 = vector.broadcast %cst_42 : f32 to vector<9x9xf32>
    %163 = arith.mulf %161, %162 : vector<9x9xf32>
    %cst_43 = arith.constant dense<0xFF800000> : vector<9xf32>
    %164 = vector.multi_reduction <maximumf>, %163, %cst_43 [1] : vector<9x9xf32> to vector<9xf32>
    %165 = vector.shape_cast %164 : vector<9xf32> to vector<9x1xf32>
    %166 = vector.broadcast %165 : vector<9x1xf32> to vector<9x9xf32>
    %167 = arith.subf %163, %166 : vector<9x9xf32>
    %168 = math.exp %167 : vector<9x9xf32>
    %cst_44 = arith.constant dense<0.000000e+00> : vector<9xf32>
    %169 = vector.multi_reduction <add>, %168, %cst_44 [1] : vector<9x9xf32> to vector<9xf32>
    %170 = vector.shape_cast %169 : vector<9xf32> to vector<9x1xf32>
    %171 = tpu.reciprocal %170 {approx = true} : vector<9x1xf32> -> vector<9x1xf32>
    %172 = vector.broadcast %171 : vector<9x1xf32> to vector<9x9xf32>
    %173 = arith.mulf %168, %172 : vector<9x9xf32>
    %174 = arith.truncf %173 : vector<9x9xf32> to vector<9x9xbf16>
    %175 = vector.extract_strided_slice %139 {offsets = [0, 4], sizes = [9, 4], strides = [1, 1]} : vector<9x32xbf16> to vector<9x4xbf16>
    %cst_45 = arith.constant dense<0.000000e+00> : vector<9x4xf32>
    %176 = tpu.matmul %174, %175, %cst_45 {dimension_numbers = #tpu.dot_dimension_numbers<[1], [0], [0], [1], [0, 0, 1, 1], [], []>} : vector<9x9xbf16>, vector<9x4xbf16>, vector<9x4xf32> -> vector<9x4xf32>
    %177 = vector.extract_strided_slice %140 {offsets = [0, 8], sizes = [9, 4], strides = [1, 1]} : vector<9x32xbf16> to vector<9x4xbf16>
    %178 = vector.extract_strided_slice %137 {offsets = [8, 0], sizes = [4, 9], strides = [1, 1]} : vector<32x9xbf16> to vector<4x9xbf16>
    %cst_46 = arith.constant dense<0.000000e+00> : vector<9x9xf32>
    %179 = tpu.matmul %177, %178, %cst_46 {dimension_numbers = #tpu.dot_dimension_numbers<[1], [0], [0], [1], [0, 0, 1, 1], [], []>} : vector<9x4xbf16>, vector<4x9xbf16>, vector<9x9xf32> -> vector<9x9xf32>
    %cst_47 = arith.constant 5.000000e-01 : f32
    %180 = vector.broadcast %cst_47 : f32 to vector<9x9xf32>
    %181 = arith.mulf %179, %180 : vector<9x9xf32>
    %cst_48 = arith.constant dense<0xFF800000> : vector<9xf32>
    %182 = vector.multi_reduction <maximumf>, %181, %cst_48 [1] : vector<9x9xf32> to vector<9xf32>
    %183 = vector.shape_cast %182 : vector<9xf32> to vector<9x1xf32>
    %184 = vector.broadcast %183 : vector<9x1xf32> to vector<9x9xf32>
    %185 = arith.subf %181, %184 : vector<9x9xf32>
    %186 = math.exp %185 : vector<9x9xf32>
    %cst_49 = arith.constant dense<0.000000e+00> : vector<9xf32>
    %187 = vector.multi_reduction <add>, %186, %cst_49 [1] : vector<9x9xf32> to vector<9xf32>
    %188 = vector.shape_cast %187 : vector<9xf32> to vector<9x1xf32>
    %189 = tpu.reciprocal %188 {approx = true} : vector<9x1xf32> -> vector<9x1xf32>
    %190 = vector.broadcast %189 : vector<9x1xf32> to vector<9x9xf32>
    %191 = arith.mulf %186, %190 : vector<9x9xf32>
    %192 = arith.truncf %191 : vector<9x9xf32> to vector<9x9xbf16>
    %193 = vector.extract_strided_slice %139 {offsets = [0, 8], sizes = [9, 4], strides = [1, 1]} : vector<9x32xbf16> to vector<9x4xbf16>
    %cst_50 = arith.constant dense<0.000000e+00> : vector<9x4xf32>
    %194 = tpu.matmul %192, %193, %cst_50 {dimension_numbers = #tpu.dot_dimension_numbers<[1], [0], [0], [1], [0, 0, 1, 1], [], []>} : vector<9x9xbf16>, vector<9x4xbf16>, vector<9x4xf32> -> vector<9x4xf32>
    %195 = vector.extract_strided_slice %140 {offsets = [0, 12], sizes = [9, 4], strides = [1, 1]} : vector<9x32xbf16> to vector<9x4xbf16>
    %196 = vector.extract_strided_slice %137 {offsets = [12, 0], sizes = [4, 9], strides = [1, 1]} : vector<32x9xbf16> to vector<4x9xbf16>
    %cst_51 = arith.constant dense<0.000000e+00> : vector<9x9xf32>
    %197 = tpu.matmul %195, %196, %cst_51 {dimension_numbers = #tpu.dot_dimension_numbers<[1], [0], [0], [1], [0, 0, 1, 1], [], []>} : vector<9x4xbf16>, vector<4x9xbf16>, vector<9x9xf32> -> vector<9x9xf32>
    %cst_52 = arith.constant 5.000000e-01 : f32
    %198 = vector.broadcast %cst_52 : f32 to vector<9x9xf32>
    %199 = arith.mulf %197, %198 : vector<9x9xf32>
    %cst_53 = arith.constant dense<0xFF800000> : vector<9xf32>
    %200 = vector.multi_reduction <maximumf>, %199, %cst_53 [1] : vector<9x9xf32> to vector<9xf32>
    %201 = vector.shape_cast %200 : vector<9xf32> to vector<9x1xf32>
    %202 = vector.broadcast %201 : vector<9x1xf32> to vector<9x9xf32>
    %203 = arith.subf %199, %202 : vector<9x9xf32>
    %204 = math.exp %203 : vector<9x9xf32>
    %cst_54 = arith.constant dense<0.000000e+00> : vector<9xf32>
    %205 = vector.multi_reduction <add>, %204, %cst_54 [1] : vector<9x9xf32> to vector<9xf32>
    %206 = vector.shape_cast %205 : vector<9xf32> to vector<9x1xf32>
    %207 = tpu.reciprocal %206 {approx = true} : vector<9x1xf32> -> vector<9x1xf32>
    %208 = vector.broadcast %207 : vector<9x1xf32> to vector<9x9xf32>
    %209 = arith.mulf %204, %208 : vector<9x9xf32>
    %210 = arith.truncf %209 : vector<9x9xf32> to vector<9x9xbf16>
    %211 = vector.extract_strided_slice %139 {offsets = [0, 12], sizes = [9, 4], strides = [1, 1]} : vector<9x32xbf16> to vector<9x4xbf16>
    %cst_55 = arith.constant dense<0.000000e+00> : vector<9x4xf32>
    %212 = tpu.matmul %210, %211, %cst_55 {dimension_numbers = #tpu.dot_dimension_numbers<[1], [0], [0], [1], [0, 0, 1, 1], [], []>} : vector<9x9xbf16>, vector<9x4xbf16>, vector<9x4xf32> -> vector<9x4xf32>
    %213 = vector.extract_strided_slice %140 {offsets = [0, 16], sizes = [9, 4], strides = [1, 1]} : vector<9x32xbf16> to vector<9x4xbf16>
    %214 = vector.extract_strided_slice %137 {offsets = [16, 0], sizes = [4, 9], strides = [1, 1]} : vector<32x9xbf16> to vector<4x9xbf16>
    %cst_56 = arith.constant dense<0.000000e+00> : vector<9x9xf32>
    %215 = tpu.matmul %213, %214, %cst_56 {dimension_numbers = #tpu.dot_dimension_numbers<[1], [0], [0], [1], [0, 0, 1, 1], [], []>} : vector<9x4xbf16>, vector<4x9xbf16>, vector<9x9xf32> -> vector<9x9xf32>
    %cst_57 = arith.constant 5.000000e-01 : f32
    %216 = vector.broadcast %cst_57 : f32 to vector<9x9xf32>
    %217 = arith.mulf %215, %216 : vector<9x9xf32>
    %cst_58 = arith.constant dense<0xFF800000> : vector<9xf32>
    %218 = vector.multi_reduction <maximumf>, %217, %cst_58 [1] : vector<9x9xf32> to vector<9xf32>
    %219 = vector.shape_cast %218 : vector<9xf32> to vector<9x1xf32>
    %220 = vector.broadcast %219 : vector<9x1xf32> to vector<9x9xf32>
    %221 = arith.subf %217, %220 : vector<9x9xf32>
    %222 = math.exp %221 : vector<9x9xf32>
    %cst_59 = arith.constant dense<0.000000e+00> : vector<9xf32>
    %223 = vector.multi_reduction <add>, %222, %cst_59 [1] : vector<9x9xf32> to vector<9xf32>
    %224 = vector.shape_cast %223 : vector<9xf32> to vector<9x1xf32>
    %225 = tpu.reciprocal %224 {approx = true} : vector<9x1xf32> -> vector<9x1xf32>
    %226 = vector.broadcast %225 : vector<9x1xf32> to vector<9x9xf32>
    %227 = arith.mulf %222, %226 : vector<9x9xf32>
    %228 = arith.truncf %227 : vector<9x9xf32> to vector<9x9xbf16>
    %229 = vector.extract_strided_slice %139 {offsets = [0, 16], sizes = [9, 4], strides = [1, 1]} : vector<9x32xbf16> to vector<9x4xbf16>
    %cst_60 = arith.constant dense<0.000000e+00> : vector<9x4xf32>
    %230 = tpu.matmul %228, %229, %cst_60 {dimension_numbers = #tpu.dot_dimension_numbers<[1], [0], [0], [1], [0, 0, 1, 1], [], []>} : vector<9x9xbf16>, vector<9x4xbf16>, vector<9x4xf32> -> vector<9x4xf32>
    %231 = vector.extract_strided_slice %140 {offsets = [0, 20], sizes = [9, 4], strides = [1, 1]} : vector<9x32xbf16> to vector<9x4xbf16>
    %232 = vector.extract_strided_slice %137 {offsets = [20, 0], sizes = [4, 9], strides = [1, 1]} : vector<32x9xbf16> to vector<4x9xbf16>
    %cst_61 = arith.constant dense<0.000000e+00> : vector<9x9xf32>
    %233 = tpu.matmul %231, %232, %cst_61 {dimension_numbers = #tpu.dot_dimension_numbers<[1], [0], [0], [1], [0, 0, 1, 1], [], []>} : vector<9x4xbf16>, vector<4x9xbf16>, vector<9x9xf32> -> vector<9x9xf32>
    %cst_62 = arith.constant 5.000000e-01 : f32
    %234 = vector.broadcast %cst_62 : f32 to vector<9x9xf32>
    %235 = arith.mulf %233, %234 : vector<9x9xf32>
    %cst_63 = arith.constant dense<0xFF800000> : vector<9xf32>
    %236 = vector.multi_reduction <maximumf>, %235, %cst_63 [1] : vector<9x9xf32> to vector<9xf32>
    %237 = vector.shape_cast %236 : vector<9xf32> to vector<9x1xf32>
    %238 = vector.broadcast %237 : vector<9x1xf32> to vector<9x9xf32>
    %239 = arith.subf %235, %238 : vector<9x9xf32>
    %240 = math.exp %239 : vector<9x9xf32>
    %cst_64 = arith.constant dense<0.000000e+00> : vector<9xf32>
    %241 = vector.multi_reduction <add>, %240, %cst_64 [1] : vector<9x9xf32> to vector<9xf32>
    %242 = vector.shape_cast %241 : vector<9xf32> to vector<9x1xf32>
    %243 = tpu.reciprocal %242 {approx = true} : vector<9x1xf32> -> vector<9x1xf32>
    %244 = vector.broadcast %243 : vector<9x1xf32> to vector<9x9xf32>
    %245 = arith.mulf %240, %244 : vector<9x9xf32>
    %246 = arith.truncf %245 : vector<9x9xf32> to vector<9x9xbf16>
    %247 = vector.extract_strided_slice %139 {offsets = [0, 20], sizes = [9, 4], strides = [1, 1]} : vector<9x32xbf16> to vector<9x4xbf16>
    %cst_65 = arith.constant dense<0.000000e+00> : vector<9x4xf32>
    %248 = tpu.matmul %246, %247, %cst_65 {dimension_numbers = #tpu.dot_dimension_numbers<[1], [0], [0], [1], [0, 0, 1, 1], [], []>} : vector<9x9xbf16>, vector<9x4xbf16>, vector<9x4xf32> -> vector<9x4xf32>
    %249 = vector.extract_strided_slice %140 {offsets = [0, 24], sizes = [9, 4], strides = [1, 1]} : vector<9x32xbf16> to vector<9x4xbf16>
    %250 = vector.extract_strided_slice %137 {offsets = [24, 0], sizes = [4, 9], strides = [1, 1]} : vector<32x9xbf16> to vector<4x9xbf16>
    %cst_66 = arith.constant dense<0.000000e+00> : vector<9x9xf32>
    %251 = tpu.matmul %249, %250, %cst_66 {dimension_numbers = #tpu.dot_dimension_numbers<[1], [0], [0], [1], [0, 0, 1, 1], [], []>} : vector<9x4xbf16>, vector<4x9xbf16>, vector<9x9xf32> -> vector<9x9xf32>
    %cst_67 = arith.constant 5.000000e-01 : f32
    %252 = vector.broadcast %cst_67 : f32 to vector<9x9xf32>
    %253 = arith.mulf %251, %252 : vector<9x9xf32>
    %cst_68 = arith.constant dense<0xFF800000> : vector<9xf32>
    %254 = vector.multi_reduction <maximumf>, %253, %cst_68 [1] : vector<9x9xf32> to vector<9xf32>
    %255 = vector.shape_cast %254 : vector<9xf32> to vector<9x1xf32>
    %256 = vector.broadcast %255 : vector<9x1xf32> to vector<9x9xf32>
    %257 = arith.subf %253, %256 : vector<9x9xf32>
    %258 = math.exp %257 : vector<9x9xf32>
    %cst_69 = arith.constant dense<0.000000e+00> : vector<9xf32>
    %259 = vector.multi_reduction <add>, %258, %cst_69 [1] : vector<9x9xf32> to vector<9xf32>
    %260 = vector.shape_cast %259 : vector<9xf32> to vector<9x1xf32>
    %261 = tpu.reciprocal %260 {approx = true} : vector<9x1xf32> -> vector<9x1xf32>
    %262 = vector.broadcast %261 : vector<9x1xf32> to vector<9x9xf32>
    %263 = arith.mulf %258, %262 : vector<9x9xf32>
    %264 = arith.truncf %263 : vector<9x9xf32> to vector<9x9xbf16>
    %265 = vector.extract_strided_slice %139 {offsets = [0, 24], sizes = [9, 4], strides = [1, 1]} : vector<9x32xbf16> to vector<9x4xbf16>
    %cst_70 = arith.constant dense<0.000000e+00> : vector<9x4xf32>
    %266 = tpu.matmul %264, %265, %cst_70 {dimension_numbers = #tpu.dot_dimension_numbers<[1], [0], [0], [1], [0, 0, 1, 1], [], []>} : vector<9x9xbf16>, vector<9x4xbf16>, vector<9x4xf32> -> vector<9x4xf32>
    %267 = vector.extract_strided_slice %140 {offsets = [0, 28], sizes = [9, 4], strides = [1, 1]} : vector<9x32xbf16> to vector<9x4xbf16>
    %268 = vector.extract_strided_slice %137 {offsets = [28, 0], sizes = [4, 9], strides = [1, 1]} : vector<32x9xbf16> to vector<4x9xbf16>
    %cst_71 = arith.constant dense<0.000000e+00> : vector<9x9xf32>
    %269 = tpu.matmul %267, %268, %cst_71 {dimension_numbers = #tpu.dot_dimension_numbers<[1], [0], [0], [1], [0, 0, 1, 1], [], []>} : vector<9x4xbf16>, vector<4x9xbf16>, vector<9x9xf32> -> vector<9x9xf32>
    %cst_72 = arith.constant 5.000000e-01 : f32
    %270 = vector.broadcast %cst_72 : f32 to vector<9x9xf32>
    %271 = arith.mulf %269, %270 : vector<9x9xf32>
    %cst_73 = arith.constant dense<0xFF800000> : vector<9xf32>
    %272 = vector.multi_reduction <maximumf>, %271, %cst_73 [1] : vector<9x9xf32> to vector<9xf32>
    %273 = vector.shape_cast %272 : vector<9xf32> to vector<9x1xf32>
    %274 = vector.broadcast %273 : vector<9x1xf32> to vector<9x9xf32>
    %275 = arith.subf %271, %274 : vector<9x9xf32>
    %276 = math.exp %275 : vector<9x9xf32>
    %cst_74 = arith.constant dense<0.000000e+00> : vector<9xf32>
    %277 = vector.multi_reduction <add>, %276, %cst_74 [1] : vector<9x9xf32> to vector<9xf32>
    %278 = vector.shape_cast %277 : vector<9xf32> to vector<9x1xf32>
    %279 = tpu.reciprocal %278 {approx = true} : vector<9x1xf32> -> vector<9x1xf32>
    %280 = vector.broadcast %279 : vector<9x1xf32> to vector<9x9xf32>
    %281 = arith.mulf %276, %280 : vector<9x9xf32>
    %282 = arith.truncf %281 : vector<9x9xf32> to vector<9x9xbf16>
    %283 = vector.extract_strided_slice %139 {offsets = [0, 28], sizes = [9, 4], strides = [1, 1]} : vector<9x32xbf16> to vector<9x4xbf16>
    %cst_75 = arith.constant dense<0.000000e+00> : vector<9x4xf32>
    %284 = tpu.matmul %282, %283, %cst_75 {dimension_numbers = #tpu.dot_dimension_numbers<[1], [0], [0], [1], [0, 0, 1, 1], [], []>} : vector<9x9xbf16>, vector<9x4xbf16>, vector<9x4xf32> -> vector<9x4xf32>
    %285 = tpu.concatenate %158, %176, %194, %212, %230, %248, %266, %284 in 1 : vector<9x4xf32>, vector<9x4xf32>, vector<9x4xf32>, vector<9x4xf32>, vector<9x4xf32>, vector<9x4xf32>, vector<9x4xf32>, vector<9x4xf32> -> vector<9x32xf32>
    %286 = arith.truncf %285 : vector<9x32xf32> to vector<9x32xbf16>
    %cst_76 = arith.constant dense<0.000000e+00> : vector<9x128xf32>
    %287 = tpu.matmul %286, %105, %cst_76 {dimension_numbers = #tpu.dot_dimension_numbers<[1], [0], [0], [1], [0, 0, 1, 1], [], []>} : vector<9x32xbf16>, vector<32x128xbf16>, vector<9x128xf32> -> vector<9x128xf32>
    %288 = vector.extract_strided_slice %287 {offsets = [0, 0], sizes = [9, 32], strides = [1, 1]} : vector<9x128xf32> to vector<9x32xf32>
    %289 = arith.addf %101, %288 : vector<9x32xf32>
    %290 = vector.extract_strided_slice %0 {offsets = [14, 0], sizes = [1, 32], strides = [1, 1]} : vector<28x128xf32> to vector<1x32xf32>
    %291 = vector.extract_strided_slice %0 {offsets = [15, 0], sizes = [1, 32], strides = [1, 1]} : vector<28x128xf32> to vector<1x32xf32>
    %cst_77 = arith.constant dense<0.000000e+00> : vector<9xf32>
    %292 = vector.multi_reduction <add>, %289, %cst_77 [1] : vector<9x32xf32> to vector<9xf32>
    %293 = vector.shape_cast %292 : vector<9xf32> to vector<9x1xf32>
    %cst_78 = arith.constant 3.200000e+01 : f32
    %294 = vector.broadcast %cst_78 : f32 to vector<9x1xf32>
    %295 = arith.divf %293, %294 : vector<9x1xf32>
    %296 = vector.broadcast %295 : vector<9x1xf32> to vector<9x32xf32>
    %297 = arith.subf %289, %296 : vector<9x32xf32>
    %298 = arith.mulf %297, %297 : vector<9x32xf32>
    %cst_79 = arith.constant dense<0.000000e+00> : vector<9xf32>
    %299 = vector.multi_reduction <add>, %298, %cst_79 [1] : vector<9x32xf32> to vector<9xf32>
    %300 = vector.shape_cast %299 : vector<9xf32> to vector<9x1xf32>
    %cst_80 = arith.constant 3.200000e+01 : f32
    %301 = vector.broadcast %cst_80 : f32 to vector<9x1xf32>
    %302 = arith.divf %300, %301 : vector<9x1xf32>
    %303 = vector.broadcast %295 : vector<9x1xf32> to vector<9x32xf32>
    %304 = arith.subf %289, %303 : vector<9x32xf32>
    %cst_81 = arith.constant 9.99999974E-6 : f32
    %305 = vector.broadcast %cst_81 : f32 to vector<9x1xf32>
    %306 = arith.addf %302, %305 : vector<9x1xf32>
    %307 = math.rsqrt %306 : vector<9x1xf32>
    %308 = vector.broadcast %307 : vector<9x1xf32> to vector<9x32xf32>
    %309 = arith.mulf %304, %308 : vector<9x32xf32>
    %310 = vector.broadcast %290 : vector<1x32xf32> to vector<9x32xf32>
    %311 = arith.mulf %309, %310 : vector<9x32xf32>
    %312 = vector.broadcast %291 : vector<1x32xf32> to vector<9x32xf32>
    %313 = arith.addf %311, %312 : vector<9x32xf32>
    %314 = arith.truncf %313 : vector<9x32xf32> to vector<9x32xbf16>
    %cst_82 = arith.constant dense<0.000000e+00> : vector<9x128xf32>
    %315 = tpu.matmul %314, %106, %cst_82 {dimension_numbers = #tpu.dot_dimension_numbers<[1], [0], [0], [1], [0, 0, 1, 1], [], []>} : vector<9x32xbf16>, vector<32x128xbf16>, vector<9x128xf32> -> vector<9x128xf32>
    %316 = arith.mulf %315, %315 : vector<9x128xf32>
    %317 = arith.mulf %315, %316 : vector<9x128xf32>
    %cst_83 = arith.constant 4.471500e-02 : f32
    %318 = vector.broadcast %cst_83 : f32 to vector<9x128xf32>
    %319 = arith.mulf %318, %317 : vector<9x128xf32>
    %320 = arith.addf %315, %319 : vector<9x128xf32>
    %cst_84 = arith.constant 0.797884583 : f32
    %321 = vector.broadcast %cst_84 : f32 to vector<9x128xf32>
    %322 = arith.mulf %321, %320 : vector<9x128xf32>
    %323 = math.tanh %322 : vector<9x128xf32>
    %cst_85 = arith.constant 1.000000e+00 : f32
    %324 = vector.broadcast %cst_85 : f32 to vector<9x128xf32>
    %325 = arith.addf %324, %323 : vector<9x128xf32>
    %cst_86 = arith.constant 5.000000e-01 : f32
    %326 = vector.broadcast %cst_86 : f32 to vector<9x128xf32>
    %327 = arith.mulf %326, %325 : vector<9x128xf32>
    %328 = arith.mulf %315, %327 : vector<9x128xf32>
    %329 = arith.truncf %328 : vector<9x128xf32> to vector<9x128xbf16>
    %cst_87 = arith.constant dense<0.000000e+00> : vector<9x128xf32>
    %330 = tpu.matmul %329, %107, %cst_87 {dimension_numbers = #tpu.dot_dimension_numbers<[1], [0], [0], [1], [0, 0, 1, 1], [], []>} : vector<9x128xbf16>, vector<128x128xbf16>, vector<9x128xf32> -> vector<9x128xf32>
    %331 = vector.extract_strided_slice %330 {offsets = [0, 0], sizes = [9, 32], strides = [1, 1]} : vector<9x128xf32> to vector<9x32xf32>
    %332 = arith.addf %289, %331 : vector<9x32xf32>
    %c1 = arith.constant 1 : index
    %c0_88 = arith.constant 0 : index
    %c0_89 = arith.constant 0 : index
    %333 = vector.load %arg4[%c1, %c0_88, %c0_89] : memref<4x224x128xbf16, #tpu.memory_space<vmem>>, vector<1x224x128xbf16>
    %334 = vector.shape_cast %333 : vector<1x224x128xbf16> to vector<224x128xbf16>
    %335 = vector.extract_strided_slice %334 {offsets = [0, 0], sizes = [32, 128], strides = [1, 1]} : vector<224x128xbf16> to vector<32x128xbf16>
    %336 = vector.extract_strided_slice %334 {offsets = [32, 0], sizes = [32, 128], strides = [1, 1]} : vector<224x128xbf16> to vector<32x128xbf16>
    %337 = vector.extract_strided_slice %334 {offsets = [64, 0], sizes = [32, 128], strides = [1, 1]} : vector<224x128xbf16> to vector<32x128xbf16>
    %338 = vector.extract_strided_slice %334 {offsets = [96, 0], sizes = [128, 128], strides = [1, 1]} : vector<224x128xbf16> to vector<128x128xbf16>
    %339 = vector.extract_strided_slice %0 {offsets = [16, 0], sizes = [1, 32], strides = [1, 1]} : vector<28x128xf32> to vector<1x32xf32>
    %340 = vector.extract_strided_slice %0 {offsets = [17, 0], sizes = [1, 32], strides = [1, 1]} : vector<28x128xf32> to vector<1x32xf32>
    %cst_90 = arith.constant dense<0.000000e+00> : vector<9xf32>
    %341 = vector.multi_reduction <add>, %332, %cst_90 [1] : vector<9x32xf32> to vector<9xf32>
    %342 = vector.shape_cast %341 : vector<9xf32> to vector<9x1xf32>
    %cst_91 = arith.constant 3.200000e+01 : f32
    %343 = vector.broadcast %cst_91 : f32 to vector<9x1xf32>
    %344 = arith.divf %342, %343 : vector<9x1xf32>
    %345 = vector.broadcast %344 : vector<9x1xf32> to vector<9x32xf32>
    %346 = arith.subf %332, %345 : vector<9x32xf32>
    %347 = arith.mulf %346, %346 : vector<9x32xf32>
    %cst_92 = arith.constant dense<0.000000e+00> : vector<9xf32>
    %348 = vector.multi_reduction <add>, %347, %cst_92 [1] : vector<9x32xf32> to vector<9xf32>
    %349 = vector.shape_cast %348 : vector<9xf32> to vector<9x1xf32>
    %cst_93 = arith.constant 3.200000e+01 : f32
    %350 = vector.broadcast %cst_93 : f32 to vector<9x1xf32>
    %351 = arith.divf %349, %350 : vector<9x1xf32>
    %352 = vector.broadcast %344 : vector<9x1xf32> to vector<9x32xf32>
    %353 = arith.subf %332, %352 : vector<9x32xf32>
    %cst_94 = arith.constant 9.99999974E-6 : f32
    %354 = vector.broadcast %cst_94 : f32 to vector<9x1xf32>
    %355 = arith.addf %351, %354 : vector<9x1xf32>
    %356 = math.rsqrt %355 : vector<9x1xf32>
    %357 = vector.broadcast %356 : vector<9x1xf32> to vector<9x32xf32>
    %358 = arith.mulf %353, %357 : vector<9x32xf32>
    %359 = vector.broadcast %339 : vector<1x32xf32> to vector<9x32xf32>
    %360 = arith.mulf %358, %359 : vector<9x32xf32>
    %361 = vector.broadcast %340 : vector<1x32xf32> to vector<9x32xf32>
    %362 = arith.addf %360, %361 : vector<9x32xf32>
    %363 = arith.truncf %362 : vector<9x32xf32> to vector<9x32xbf16>
    %cst_95 = arith.constant dense<0.000000e+00> : vector<9x128xf32>
    %364 = tpu.matmul %363, %335, %cst_95 {dimension_numbers = #tpu.dot_dimension_numbers<[1], [0], [0], [1], [0, 0, 1, 1], [], []>} : vector<9x32xbf16>, vector<32x128xbf16>, vector<9x128xf32> -> vector<9x128xf32>
    %365 = vector.extract_strided_slice %364 {offsets = [0, 0], sizes = [9, 32], strides = [1, 1]} : vector<9x128xf32> to vector<9x32xf32>
    %366 = vector.extract_strided_slice %364 {offsets = [0, 32], sizes = [9, 32], strides = [1, 1]} : vector<9x128xf32> to vector<9x32xf32>
    %367 = tpu.transpose %366, [1, 0] : vector<9x32xf32> -> vector<32x9xf32>
    %368 = arith.truncf %367 : vector<32x9xf32> to vector<32x9xbf16>
    %369 = vector.extract_strided_slice %364 {offsets = [0, 64], sizes = [9, 32], strides = [1, 1]} : vector<9x128xf32> to vector<9x32xf32>
    %370 = arith.truncf %369 : vector<9x32xf32> to vector<9x32xbf16>
    %371 = arith.truncf %365 : vector<9x32xf32> to vector<9x32xbf16>
    %372 = vector.extract_strided_slice %371 {offsets = [0, 0], sizes = [9, 4], strides = [1, 1]} : vector<9x32xbf16> to vector<9x4xbf16>
    %373 = vector.extract_strided_slice %368 {offsets = [0, 0], sizes = [4, 9], strides = [1, 1]} : vector<32x9xbf16> to vector<4x9xbf16>
    %cst_96 = arith.constant dense<0.000000e+00> : vector<9x9xf32>
    %374 = tpu.matmul %372, %373, %cst_96 {dimension_numbers = #tpu.dot_dimension_numbers<[1], [0], [0], [1], [0, 0, 1, 1], [], []>} : vector<9x4xbf16>, vector<4x9xbf16>, vector<9x9xf32> -> vector<9x9xf32>
    %cst_97 = arith.constant 5.000000e-01 : f32
    %375 = vector.broadcast %cst_97 : f32 to vector<9x9xf32>
    %376 = arith.mulf %374, %375 : vector<9x9xf32>
    %cst_98 = arith.constant dense<0xFF800000> : vector<9xf32>
    %377 = vector.multi_reduction <maximumf>, %376, %cst_98 [1] : vector<9x9xf32> to vector<9xf32>
    %378 = vector.shape_cast %377 : vector<9xf32> to vector<9x1xf32>
    %379 = vector.broadcast %378 : vector<9x1xf32> to vector<9x9xf32>
    %380 = arith.subf %376, %379 : vector<9x9xf32>
    %381 = math.exp %380 : vector<9x9xf32>
    %cst_99 = arith.constant dense<0.000000e+00> : vector<9xf32>
    %382 = vector.multi_reduction <add>, %381, %cst_99 [1] : vector<9x9xf32> to vector<9xf32>
    %383 = vector.shape_cast %382 : vector<9xf32> to vector<9x1xf32>
    %384 = tpu.reciprocal %383 {approx = true} : vector<9x1xf32> -> vector<9x1xf32>
    %385 = vector.broadcast %384 : vector<9x1xf32> to vector<9x9xf32>
    %386 = arith.mulf %381, %385 : vector<9x9xf32>
    %387 = arith.truncf %386 : vector<9x9xf32> to vector<9x9xbf16>
    %388 = vector.extract_strided_slice %370 {offsets = [0, 0], sizes = [9, 4], strides = [1, 1]} : vector<9x32xbf16> to vector<9x4xbf16>
    %cst_100 = arith.constant dense<0.000000e+00> : vector<9x4xf32>
    %389 = tpu.matmul %387, %388, %cst_100 {dimension_numbers = #tpu.dot_dimension_numbers<[1], [0], [0], [1], [0, 0, 1, 1], [], []>} : vector<9x9xbf16>, vector<9x4xbf16>, vector<9x4xf32> -> vector<9x4xf32>
    %390 = vector.extract_strided_slice %371 {offsets = [0, 4], sizes = [9, 4], strides = [1, 1]} : vector<9x32xbf16> to vector<9x4xbf16>
    %391 = vector.extract_strided_slice %368 {offsets = [4, 0], sizes = [4, 9], strides = [1, 1]} : vector<32x9xbf16> to vector<4x9xbf16>
    %cst_101 = arith.constant dense<0.000000e+00> : vector<9x9xf32>
    %392 = tpu.matmul %390, %391, %cst_101 {dimension_numbers = #tpu.dot_dimension_numbers<[1], [0], [0], [1], [0, 0, 1, 1], [], []>} : vector<9x4xbf16>, vector<4x9xbf16>, vector<9x9xf32> -> vector<9x9xf32>
    %cst_102 = arith.constant 5.000000e-01 : f32
    %393 = vector.broadcast %cst_102 : f32 to vector<9x9xf32>
    %394 = arith.mulf %392, %393 : vector<9x9xf32>
    %cst_103 = arith.constant dense<0xFF800000> : vector<9xf32>
    %395 = vector.multi_reduction <maximumf>, %394, %cst_103 [1] : vector<9x9xf32> to vector<9xf32>
    %396 = vector.shape_cast %395 : vector<9xf32> to vector<9x1xf32>
    %397 = vector.broadcast %396 : vector<9x1xf32> to vector<9x9xf32>
    %398 = arith.subf %394, %397 : vector<9x9xf32>
    %399 = math.exp %398 : vector<9x9xf32>
    %cst_104 = arith.constant dense<0.000000e+00> : vector<9xf32>
    %400 = vector.multi_reduction <add>, %399, %cst_104 [1] : vector<9x9xf32> to vector<9xf32>
    %401 = vector.shape_cast %400 : vector<9xf32> to vector<9x1xf32>
    %402 = tpu.reciprocal %401 {approx = true} : vector<9x1xf32> -> vector<9x1xf32>
    %403 = vector.broadcast %402 : vector<9x1xf32> to vector<9x9xf32>
    %404 = arith.mulf %399, %403 : vector<9x9xf32>
    %405 = arith.truncf %404 : vector<9x9xf32> to vector<9x9xbf16>
    %406 = vector.extract_strided_slice %370 {offsets = [0, 4], sizes = [9, 4], strides = [1, 1]} : vector<9x32xbf16> to vector<9x4xbf16>
    %cst_105 = arith.constant dense<0.000000e+00> : vector<9x4xf32>
    %407 = tpu.matmul %405, %406, %cst_105 {dimension_numbers = #tpu.dot_dimension_numbers<[1], [0], [0], [1], [0, 0, 1, 1], [], []>} : vector<9x9xbf16>, vector<9x4xbf16>, vector<9x4xf32> -> vector<9x4xf32>
    %408 = vector.extract_strided_slice %371 {offsets = [0, 8], sizes = [9, 4], strides = [1, 1]} : vector<9x32xbf16> to vector<9x4xbf16>
    %409 = vector.extract_strided_slice %368 {offsets = [8, 0], sizes = [4, 9], strides = [1, 1]} : vector<32x9xbf16> to vector<4x9xbf16>
    %cst_106 = arith.constant dense<0.000000e+00> : vector<9x9xf32>
    %410 = tpu.matmul %408, %409, %cst_106 {dimension_numbers = #tpu.dot_dimension_numbers<[1], [0], [0], [1], [0, 0, 1, 1], [], []>} : vector<9x4xbf16>, vector<4x9xbf16>, vector<9x9xf32> -> vector<9x9xf32>
    %cst_107 = arith.constant 5.000000e-01 : f32
    %411 = vector.broadcast %cst_107 : f32 to vector<9x9xf32>
    %412 = arith.mulf %410, %411 : vector<9x9xf32>
    %cst_108 = arith.constant dense<0xFF800000> : vector<9xf32>
    %413 = vector.multi_reduction <maximumf>, %412, %cst_108 [1] : vector<9x9xf32> to vector<9xf32>
    %414 = vector.shape_cast %413 : vector<9xf32> to vector<9x1xf32>
    %415 = vector.broadcast %414 : vector<9x1xf32> to vector<9x9xf32>
    %416 = arith.subf %412, %415 : vector<9x9xf32>
    %417 = math.exp %416 : vector<9x9xf32>
    %cst_109 = arith.constant dense<0.000000e+00> : vector<9xf32>
    %418 = vector.multi_reduction <add>, %417, %cst_109 [1] : vector<9x9xf32> to vector<9xf32>
    %419 = vector.shape_cast %418 : vector<9xf32> to vector<9x1xf32>
    %420 = tpu.reciprocal %419 {approx = true} : vector<9x1xf32> -> vector<9x1xf32>
    %421 = vector.broadcast %420 : vector<9x1xf32> to vector<9x9xf32>
    %422 = arith.mulf %417, %421 : vector<9x9xf32>
    %423 = arith.truncf %422 : vector<9x9xf32> to vector<9x9xbf16>
    %424 = vector.extract_strided_slice %370 {offsets = [0, 8], sizes = [9, 4], strides = [1, 1]} : vector<9x32xbf16> to vector<9x4xbf16>
    %cst_110 = arith.constant dense<0.000000e+00> : vector<9x4xf32>
    %425 = tpu.matmul %423, %424, %cst_110 {dimension_numbers = #tpu.dot_dimension_numbers<[1], [0], [0], [1], [0, 0, 1, 1], [], []>} : vector<9x9xbf16>, vector<9x4xbf16>, vector<9x4xf32> -> vector<9x4xf32>
    %426 = vector.extract_strided_slice %371 {offsets = [0, 12], sizes = [9, 4], strides = [1, 1]} : vector<9x32xbf16> to vector<9x4xbf16>
    %427 = vector.extract_strided_slice %368 {offsets = [12, 0], sizes = [4, 9], strides = [1, 1]} : vector<32x9xbf16> to vector<4x9xbf16>
    %cst_111 = arith.constant dense<0.000000e+00> : vector<9x9xf32>
    %428 = tpu.matmul %426, %427, %cst_111 {dimension_numbers = #tpu.dot_dimension_numbers<[1], [0], [0], [1], [0, 0, 1, 1], [], []>} : vector<9x4xbf16>, vector<4x9xbf16>, vector<9x9xf32> -> vector<9x9xf32>
    %cst_112 = arith.constant 5.000000e-01 : f32
    %429 = vector.broadcast %cst_112 : f32 to vector<9x9xf32>
    %430 = arith.mulf %428, %429 : vector<9x9xf32>
    %cst_113 = arith.constant dense<0xFF800000> : vector<9xf32>
    %431 = vector.multi_reduction <maximumf>, %430, %cst_113 [1] : vector<9x9xf32> to vector<9xf32>
    %432 = vector.shape_cast %431 : vector<9xf32> to vector<9x1xf32>
    %433 = vector.broadcast %432 : vector<9x1xf32> to vector<9x9xf32>
    %434 = arith.subf %430, %433 : vector<9x9xf32>
    %435 = math.exp %434 : vector<9x9xf32>
    %cst_114 = arith.constant dense<0.000000e+00> : vector<9xf32>
    %436 = vector.multi_reduction <add>, %435, %cst_114 [1] : vector<9x9xf32> to vector<9xf32>
    %437 = vector.shape_cast %436 : vector<9xf32> to vector<9x1xf32>
    %438 = tpu.reciprocal %437 {approx = true} : vector<9x1xf32> -> vector<9x1xf32>
    %439 = vector.broadcast %438 : vector<9x1xf32> to vector<9x9xf32>
    %440 = arith.mulf %435, %439 : vector<9x9xf32>
    %441 = arith.truncf %440 : vector<9x9xf32> to vector<9x9xbf16>
    %442 = vector.extract_strided_slice %370 {offsets = [0, 12], sizes = [9, 4], strides = [1, 1]} : vector<9x32xbf16> to vector<9x4xbf16>
    %cst_115 = arith.constant dense<0.000000e+00> : vector<9x4xf32>
    %443 = tpu.matmul %441, %442, %cst_115 {dimension_numbers = #tpu.dot_dimension_numbers<[1], [0], [0], [1], [0, 0, 1, 1], [], []>} : vector<9x9xbf16>, vector<9x4xbf16>, vector<9x4xf32> -> vector<9x4xf32>
    %444 = vector.extract_strided_slice %371 {offsets = [0, 16], sizes = [9, 4], strides = [1, 1]} : vector<9x32xbf16> to vector<9x4xbf16>
    %445 = vector.extract_strided_slice %368 {offsets = [16, 0], sizes = [4, 9], strides = [1, 1]} : vector<32x9xbf16> to vector<4x9xbf16>
    %cst_116 = arith.constant dense<0.000000e+00> : vector<9x9xf32>
    %446 = tpu.matmul %444, %445, %cst_116 {dimension_numbers = #tpu.dot_dimension_numbers<[1], [0], [0], [1], [0, 0, 1, 1], [], []>} : vector<9x4xbf16>, vector<4x9xbf16>, vector<9x9xf32> -> vector<9x9xf32>
    %cst_117 = arith.constant 5.000000e-01 : f32
    %447 = vector.broadcast %cst_117 : f32 to vector<9x9xf32>
    %448 = arith.mulf %446, %447 : vector<9x9xf32>
    %cst_118 = arith.constant dense<0xFF800000> : vector<9xf32>
    %449 = vector.multi_reduction <maximumf>, %448, %cst_118 [1] : vector<9x9xf32> to vector<9xf32>
    %450 = vector.shape_cast %449 : vector<9xf32> to vector<9x1xf32>
    %451 = vector.broadcast %450 : vector<9x1xf32> to vector<9x9xf32>
    %452 = arith.subf %448, %451 : vector<9x9xf32>
    %453 = math.exp %452 : vector<9x9xf32>
    %cst_119 = arith.constant dense<0.000000e+00> : vector<9xf32>
    %454 = vector.multi_reduction <add>, %453, %cst_119 [1] : vector<9x9xf32> to vector<9xf32>
    %455 = vector.shape_cast %454 : vector<9xf32> to vector<9x1xf32>
    %456 = tpu.reciprocal %455 {approx = true} : vector<9x1xf32> -> vector<9x1xf32>
    %457 = vector.broadcast %456 : vector<9x1xf32> to vector<9x9xf32>
    %458 = arith.mulf %453, %457 : vector<9x9xf32>
    %459 = arith.truncf %458 : vector<9x9xf32> to vector<9x9xbf16>
    %460 = vector.extract_strided_slice %370 {offsets = [0, 16], sizes = [9, 4], strides = [1, 1]} : vector<9x32xbf16> to vector<9x4xbf16>
    %cst_120 = arith.constant dense<0.000000e+00> : vector<9x4xf32>
    %461 = tpu.matmul %459, %460, %cst_120 {dimension_numbers = #tpu.dot_dimension_numbers<[1], [0], [0], [1], [0, 0, 1, 1], [], []>} : vector<9x9xbf16>, vector<9x4xbf16>, vector<9x4xf32> -> vector<9x4xf32>
    %462 = vector.extract_strided_slice %371 {offsets = [0, 20], sizes = [9, 4], strides = [1, 1]} : vector<9x32xbf16> to vector<9x4xbf16>
    %463 = vector.extract_strided_slice %368 {offsets = [20, 0], sizes = [4, 9], strides = [1, 1]} : vector<32x9xbf16> to vector<4x9xbf16>
    %cst_121 = arith.constant dense<0.000000e+00> : vector<9x9xf32>
    %464 = tpu.matmul %462, %463, %cst_121 {dimension_numbers = #tpu.dot_dimension_numbers<[1], [0], [0], [1], [0, 0, 1, 1], [], []>} : vector<9x4xbf16>, vector<4x9xbf16>, vector<9x9xf32> -> vector<9x9xf32>
    %cst_122 = arith.constant 5.000000e-01 : f32
    %465 = vector.broadcast %cst_122 : f32 to vector<9x9xf32>
    %466 = arith.mulf %464, %465 : vector<9x9xf32>
    %cst_123 = arith.constant dense<0xFF800000> : vector<9xf32>
    %467 = vector.multi_reduction <maximumf>, %466, %cst_123 [1] : vector<9x9xf32> to vector<9xf32>
    %468 = vector.shape_cast %467 : vector<9xf32> to vector<9x1xf32>
    %469 = vector.broadcast %468 : vector<9x1xf32> to vector<9x9xf32>
    %470 = arith.subf %466, %469 : vector<9x9xf32>
    %471 = math.exp %470 : vector<9x9xf32>
    %cst_124 = arith.constant dense<0.000000e+00> : vector<9xf32>
    %472 = vector.multi_reduction <add>, %471, %cst_124 [1] : vector<9x9xf32> to vector<9xf32>
    %473 = vector.shape_cast %472 : vector<9xf32> to vector<9x1xf32>
    %474 = tpu.reciprocal %473 {approx = true} : vector<9x1xf32> -> vector<9x1xf32>
    %475 = vector.broadcast %474 : vector<9x1xf32> to vector<9x9xf32>
    %476 = arith.mulf %471, %475 : vector<9x9xf32>
    %477 = arith.truncf %476 : vector<9x9xf32> to vector<9x9xbf16>
    %478 = vector.extract_strided_slice %370 {offsets = [0, 20], sizes = [9, 4], strides = [1, 1]} : vector<9x32xbf16> to vector<9x4xbf16>
    %cst_125 = arith.constant dense<0.000000e+00> : vector<9x4xf32>
    %479 = tpu.matmul %477, %478, %cst_125 {dimension_numbers = #tpu.dot_dimension_numbers<[1], [0], [0], [1], [0, 0, 1, 1], [], []>} : vector<9x9xbf16>, vector<9x4xbf16>, vector<9x4xf32> -> vector<9x4xf32>
    %480 = vector.extract_strided_slice %371 {offsets = [0, 24], sizes = [9, 4], strides = [1, 1]} : vector<9x32xbf16> to vector<9x4xbf16>
    %481 = vector.extract_strided_slice %368 {offsets = [24, 0], sizes = [4, 9], strides = [1, 1]} : vector<32x9xbf16> to vector<4x9xbf16>
    %cst_126 = arith.constant dense<0.000000e+00> : vector<9x9xf32>
    %482 = tpu.matmul %480, %481, %cst_126 {dimension_numbers = #tpu.dot_dimension_numbers<[1], [0], [0], [1], [0, 0, 1, 1], [], []>} : vector<9x4xbf16>, vector<4x9xbf16>, vector<9x9xf32> -> vector<9x9xf32>
    %cst_127 = arith.constant 5.000000e-01 : f32
    %483 = vector.broadcast %cst_127 : f32 to vector<9x9xf32>
    %484 = arith.mulf %482, %483 : vector<9x9xf32>
    %cst_128 = arith.constant dense<0xFF800000> : vector<9xf32>
    %485 = vector.multi_reduction <maximumf>, %484, %cst_128 [1] : vector<9x9xf32> to vector<9xf32>
    %486 = vector.shape_cast %485 : vector<9xf32> to vector<9x1xf32>
    %487 = vector.broadcast %486 : vector<9x1xf32> to vector<9x9xf32>
    %488 = arith.subf %484, %487 : vector<9x9xf32>
    %489 = math.exp %488 : vector<9x9xf32>
    %cst_129 = arith.constant dense<0.000000e+00> : vector<9xf32>
    %490 = vector.multi_reduction <add>, %489, %cst_129 [1] : vector<9x9xf32> to vector<9xf32>
    %491 = vector.shape_cast %490 : vector<9xf32> to vector<9x1xf32>
    %492 = tpu.reciprocal %491 {approx = true} : vector<9x1xf32> -> vector<9x1xf32>
    %493 = vector.broadcast %492 : vector<9x1xf32> to vector<9x9xf32>
    %494 = arith.mulf %489, %493 : vector<9x9xf32>
    %495 = arith.truncf %494 : vector<9x9xf32> to vector<9x9xbf16>
    %496 = vector.extract_strided_slice %370 {offsets = [0, 24], sizes = [9, 4], strides = [1, 1]} : vector<9x32xbf16> to vector<9x4xbf16>
    %cst_130 = arith.constant dense<0.000000e+00> : vector<9x4xf32>
    %497 = tpu.matmul %495, %496, %cst_130 {dimension_numbers = #tpu.dot_dimension_numbers<[1], [0], [0], [1], [0, 0, 1, 1], [], []>} : vector<9x9xbf16>, vector<9x4xbf16>, vector<9x4xf32> -> vector<9x4xf32>
    %498 = vector.extract_strided_slice %371 {offsets = [0, 28], sizes = [9, 4], strides = [1, 1]} : vector<9x32xbf16> to vector<9x4xbf16>
    %499 = vector.extract_strided_slice %368 {offsets = [28, 0], sizes = [4, 9], strides = [1, 1]} : vector<32x9xbf16> to vector<4x9xbf16>
    %cst_131 = arith.constant dense<0.000000e+00> : vector<9x9xf32>
    %500 = tpu.matmul %498, %499, %cst_131 {dimension_numbers = #tpu.dot_dimension_numbers<[1], [0], [0], [1], [0, 0, 1, 1], [], []>} : vector<9x4xbf16>, vector<4x9xbf16>, vector<9x9xf32> -> vector<9x9xf32>
    %cst_132 = arith.constant 5.000000e-01 : f32
    %501 = vector.broadcast %cst_132 : f32 to vector<9x9xf32>
    %502 = arith.mulf %500, %501 : vector<9x9xf32>
    %cst_133 = arith.constant dense<0xFF800000> : vector<9xf32>
    %503 = vector.multi_reduction <maximumf>, %502, %cst_133 [1] : vector<9x9xf32> to vector<9xf32>
    %504 = vector.shape_cast %503 : vector<9xf32> to vector<9x1xf32>
    %505 = vector.broadcast %504 : vector<9x1xf32> to vector<9x9xf32>
    %506 = arith.subf %502, %505 : vector<9x9xf32>
    %507 = math.exp %506 : vector<9x9xf32>
    %cst_134 = arith.constant dense<0.000000e+00> : vector<9xf32>
    %508 = vector.multi_reduction <add>, %507, %cst_134 [1] : vector<9x9xf32> to vector<9xf32>
    %509 = vector.shape_cast %508 : vector<9xf32> to vector<9x1xf32>
    %510 = tpu.reciprocal %509 {approx = true} : vector<9x1xf32> -> vector<9x1xf32>
    %511 = vector.broadcast %510 : vector<9x1xf32> to vector<9x9xf32>
    %512 = arith.mulf %507, %511 : vector<9x9xf32>
    %513 = arith.truncf %512 : vector<9x9xf32> to vector<9x9xbf16>
    %514 = vector.extract_strided_slice %370 {offsets = [0, 28], sizes = [9, 4], strides = [1, 1]} : vector<9x32xbf16> to vector<9x4xbf16>
    %cst_135 = arith.constant dense<0.000000e+00> : vector<9x4xf32>
    %515 = tpu.matmul %513, %514, %cst_135 {dimension_numbers = #tpu.dot_dimension_numbers<[1], [0], [0], [1], [0, 0, 1, 1], [], []>} : vector<9x9xbf16>, vector<9x4xbf16>, vector<9x4xf32> -> vector<9x4xf32>
    %516 = tpu.concatenate %389, %407, %425, %443, %461, %479, %497, %515 in 1 : vector<9x4xf32>, vector<9x4xf32>, vector<9x4xf32>, vector<9x4xf32>, vector<9x4xf32>, vector<9x4xf32>, vector<9x4xf32>, vector<9x4xf32> -> vector<9x32xf32>
    %517 = arith.truncf %516 : vector<9x32xf32> to vector<9x32xbf16>
    %cst_136 = arith.constant dense<0.000000e+00> : vector<9x128xf32>
    %518 = tpu.matmul %517, %336, %cst_136 {dimension_numbers = #tpu.dot_dimension_numbers<[1], [0], [0], [1], [0, 0, 1, 1], [], []>} : vector<9x32xbf16>, vector<32x128xbf16>, vector<9x128xf32> -> vector<9x128xf32>
    %519 = vector.extract_strided_slice %518 {offsets = [0, 0], sizes = [9, 32], strides = [1, 1]} : vector<9x128xf32> to vector<9x32xf32>
    %520 = arith.addf %332, %519 : vector<9x32xf32>
    %521 = vector.extract_strided_slice %0 {offsets = [18, 0], sizes = [1, 32], strides = [1, 1]} : vector<28x128xf32> to vector<1x32xf32>
    %522 = vector.extract_strided_slice %0 {offsets = [19, 0], sizes = [1, 32], strides = [1, 1]} : vector<28x128xf32> to vector<1x32xf32>
    %cst_137 = arith.constant dense<0.000000e+00> : vector<9xf32>
    %523 = vector.multi_reduction <add>, %520, %cst_137 [1] : vector<9x32xf32> to vector<9xf32>
    %524 = vector.shape_cast %523 : vector<9xf32> to vector<9x1xf32>
    %cst_138 = arith.constant 3.200000e+01 : f32
    %525 = vector.broadcast %cst_138 : f32 to vector<9x1xf32>
    %526 = arith.divf %524, %525 : vector<9x1xf32>
    %527 = vector.broadcast %526 : vector<9x1xf32> to vector<9x32xf32>
    %528 = arith.subf %520, %527 : vector<9x32xf32>
    %529 = arith.mulf %528, %528 : vector<9x32xf32>
    %cst_139 = arith.constant dense<0.000000e+00> : vector<9xf32>
    %530 = vector.multi_reduction <add>, %529, %cst_139 [1] : vector<9x32xf32> to vector<9xf32>
    %531 = vector.shape_cast %530 : vector<9xf32> to vector<9x1xf32>
    %cst_140 = arith.constant 3.200000e+01 : f32
    %532 = vector.broadcast %cst_140 : f32 to vector<9x1xf32>
    %533 = arith.divf %531, %532 : vector<9x1xf32>
    %534 = vector.broadcast %526 : vector<9x1xf32> to vector<9x32xf32>
    %535 = arith.subf %520, %534 : vector<9x32xf32>
    %cst_141 = arith.constant 9.99999974E-6 : f32
    %536 = vector.broadcast %cst_141 : f32 to vector<9x1xf32>
    %537 = arith.addf %533, %536 : vector<9x1xf32>
    %538 = math.rsqrt %537 : vector<9x1xf32>
    %539 = vector.broadcast %538 : vector<9x1xf32> to vector<9x32xf32>
    %540 = arith.mulf %535, %539 : vector<9x32xf32>
    %541 = vector.broadcast %521 : vector<1x32xf32> to vector<9x32xf32>
    %542 = arith.mulf %540, %541 : vector<9x32xf32>
    %543 = vector.broadcast %522 : vector<1x32xf32> to vector<9x32xf32>
    %544 = arith.addf %542, %543 : vector<9x32xf32>
    %545 = arith.truncf %544 : vector<9x32xf32> to vector<9x32xbf16>
    %cst_142 = arith.constant dense<0.000000e+00> : vector<9x128xf32>
    %546 = tpu.matmul %545, %337, %cst_142 {dimension_numbers = #tpu.dot_dimension_numbers<[1], [0], [0], [1], [0, 0, 1, 1], [], []>} : vector<9x32xbf16>, vector<32x128xbf16>, vector<9x128xf32> -> vector<9x128xf32>
    %547 = arith.mulf %546, %546 : vector<9x128xf32>
    %548 = arith.mulf %546, %547 : vector<9x128xf32>
    %cst_143 = arith.constant 4.471500e-02 : f32
    %549 = vector.broadcast %cst_143 : f32 to vector<9x128xf32>
    %550 = arith.mulf %549, %548 : vector<9x128xf32>
    %551 = arith.addf %546, %550 : vector<9x128xf32>
    %cst_144 = arith.constant 0.797884583 : f32
    %552 = vector.broadcast %cst_144 : f32 to vector<9x128xf32>
    %553 = arith.mulf %552, %551 : vector<9x128xf32>
    %554 = math.tanh %553 : vector<9x128xf32>
    %cst_145 = arith.constant 1.000000e+00 : f32
    %555 = vector.broadcast %cst_145 : f32 to vector<9x128xf32>
    %556 = arith.addf %555, %554 : vector<9x128xf32>
    %cst_146 = arith.constant 5.000000e-01 : f32
    %557 = vector.broadcast %cst_146 : f32 to vector<9x128xf32>
    %558 = arith.mulf %557, %556 : vector<9x128xf32>
    %559 = arith.mulf %546, %558 : vector<9x128xf32>
    %560 = arith.truncf %559 : vector<9x128xf32> to vector<9x128xbf16>
    %cst_147 = arith.constant dense<0.000000e+00> : vector<9x128xf32>
    %561 = tpu.matmul %560, %338, %cst_147 {dimension_numbers = #tpu.dot_dimension_numbers<[1], [0], [0], [1], [0, 0, 1, 1], [], []>} : vector<9x128xbf16>, vector<128x128xbf16>, vector<9x128xf32> -> vector<9x128xf32>
    %562 = vector.extract_strided_slice %561 {offsets = [0, 0], sizes = [9, 32], strides = [1, 1]} : vector<9x128xf32> to vector<9x32xf32>
    %563 = arith.addf %520, %562 : vector<9x32xf32>
    %c2 = arith.constant 2 : index
    %c0_148 = arith.constant 0 : index
    %c0_149 = arith.constant 0 : index
    %564 = vector.load %arg4[%c2, %c0_148, %c0_149] : memref<4x224x128xbf16, #tpu.memory_space<vmem>>, vector<1x224x128xbf16>
    %565 = vector.shape_cast %564 : vector<1x224x128xbf16> to vector<224x128xbf16>
    %566 = vector.extract_strided_slice %565 {offsets = [0, 0], sizes = [32, 128], strides = [1, 1]} : vector<224x128xbf16> to vector<32x128xbf16>
    %567 = vector.extract_strided_slice %565 {offsets = [32, 0], sizes = [32, 128], strides = [1, 1]} : vector<224x128xbf16> to vector<32x128xbf16>
    %568 = vector.extract_strided_slice %565 {offsets = [64, 0], sizes = [32, 128], strides = [1, 1]} : vector<224x128xbf16> to vector<32x128xbf16>
    %569 = vector.extract_strided_slice %565 {offsets = [96, 0], sizes = [128, 128], strides = [1, 1]} : vector<224x128xbf16> to vector<128x128xbf16>
    %570 = vector.extract_strided_slice %0 {offsets = [20, 0], sizes = [1, 32], strides = [1, 1]} : vector<28x128xf32> to vector<1x32xf32>
    %571 = vector.extract_strided_slice %0 {offsets = [21, 0], sizes = [1, 32], strides = [1, 1]} : vector<28x128xf32> to vector<1x32xf32>
    %cst_150 = arith.constant dense<0.000000e+00> : vector<9xf32>
    %572 = vector.multi_reduction <add>, %563, %cst_150 [1] : vector<9x32xf32> to vector<9xf32>
    %573 = vector.shape_cast %572 : vector<9xf32> to vector<9x1xf32>
    %cst_151 = arith.constant 3.200000e+01 : f32
    %574 = vector.broadcast %cst_151 : f32 to vector<9x1xf32>
    %575 = arith.divf %573, %574 : vector<9x1xf32>
    %576 = vector.broadcast %575 : vector<9x1xf32> to vector<9x32xf32>
    %577 = arith.subf %563, %576 : vector<9x32xf32>
    %578 = arith.mulf %577, %577 : vector<9x32xf32>
    %cst_152 = arith.constant dense<0.000000e+00> : vector<9xf32>
    %579 = vector.multi_reduction <add>, %578, %cst_152 [1] : vector<9x32xf32> to vector<9xf32>
    %580 = vector.shape_cast %579 : vector<9xf32> to vector<9x1xf32>
    %cst_153 = arith.constant 3.200000e+01 : f32
    %581 = vector.broadcast %cst_153 : f32 to vector<9x1xf32>
    %582 = arith.divf %580, %581 : vector<9x1xf32>
    %583 = vector.broadcast %575 : vector<9x1xf32> to vector<9x32xf32>
    %584 = arith.subf %563, %583 : vector<9x32xf32>
    %cst_154 = arith.constant 9.99999974E-6 : f32
    %585 = vector.broadcast %cst_154 : f32 to vector<9x1xf32>
    %586 = arith.addf %582, %585 : vector<9x1xf32>
    %587 = math.rsqrt %586 : vector<9x1xf32>
    %588 = vector.broadcast %587 : vector<9x1xf32> to vector<9x32xf32>
    %589 = arith.mulf %584, %588 : vector<9x32xf32>
    %590 = vector.broadcast %570 : vector<1x32xf32> to vector<9x32xf32>
    %591 = arith.mulf %589, %590 : vector<9x32xf32>
    %592 = vector.broadcast %571 : vector<1x32xf32> to vector<9x32xf32>
    %593 = arith.addf %591, %592 : vector<9x32xf32>
    %594 = arith.truncf %593 : vector<9x32xf32> to vector<9x32xbf16>
    %cst_155 = arith.constant dense<0.000000e+00> : vector<9x128xf32>
    %595 = tpu.matmul %594, %566, %cst_155 {dimension_numbers = #tpu.dot_dimension_numbers<[1], [0], [0], [1], [0, 0, 1, 1], [], []>} : vector<9x32xbf16>, vector<32x128xbf16>, vector<9x128xf32> -> vector<9x128xf32>
    %596 = vector.extract_strided_slice %595 {offsets = [0, 0], sizes = [9, 32], strides = [1, 1]} : vector<9x128xf32> to vector<9x32xf32>
    %597 = vector.extract_strided_slice %595 {offsets = [0, 32], sizes = [9, 32], strides = [1, 1]} : vector<9x128xf32> to vector<9x32xf32>
    %598 = tpu.transpose %597, [1, 0] : vector<9x32xf32> -> vector<32x9xf32>
    %599 = arith.truncf %598 : vector<32x9xf32> to vector<32x9xbf16>
    %600 = vector.extract_strided_slice %595 {offsets = [0, 64], sizes = [9, 32], strides = [1, 1]} : vector<9x128xf32> to vector<9x32xf32>
    %601 = arith.truncf %600 : vector<9x32xf32> to vector<9x32xbf16>
    %602 = arith.truncf %596 : vector<9x32xf32> to vector<9x32xbf16>
    %603 = vector.extract_strided_slice %602 {offsets = [0, 0], sizes = [9, 4], strides = [1, 1]} : vector<9x32xbf16> to vector<9x4xbf16>
    %604 = vector.extract_strided_slice %599 {offsets = [0, 0], sizes = [4, 9], strides = [1, 1]} : vector<32x9xbf16> to vector<4x9xbf16>
    %cst_156 = arith.constant dense<0.000000e+00> : vector<9x9xf32>
    %605 = tpu.matmul %603, %604, %cst_156 {dimension_numbers = #tpu.dot_dimension_numbers<[1], [0], [0], [1], [0, 0, 1, 1], [], []>} : vector<9x4xbf16>, vector<4x9xbf16>, vector<9x9xf32> -> vector<9x9xf32>
    %cst_157 = arith.constant 5.000000e-01 : f32
    %606 = vector.broadcast %cst_157 : f32 to vector<9x9xf32>
    %607 = arith.mulf %605, %606 : vector<9x9xf32>
    %cst_158 = arith.constant dense<0xFF800000> : vector<9xf32>
    %608 = vector.multi_reduction <maximumf>, %607, %cst_158 [1] : vector<9x9xf32> to vector<9xf32>
    %609 = vector.shape_cast %608 : vector<9xf32> to vector<9x1xf32>
    %610 = vector.broadcast %609 : vector<9x1xf32> to vector<9x9xf32>
    %611 = arith.subf %607, %610 : vector<9x9xf32>
    %612 = math.exp %611 : vector<9x9xf32>
    %cst_159 = arith.constant dense<0.000000e+00> : vector<9xf32>
    %613 = vector.multi_reduction <add>, %612, %cst_159 [1] : vector<9x9xf32> to vector<9xf32>
    %614 = vector.shape_cast %613 : vector<9xf32> to vector<9x1xf32>
    %615 = tpu.reciprocal %614 {approx = true} : vector<9x1xf32> -> vector<9x1xf32>
    %616 = vector.broadcast %615 : vector<9x1xf32> to vector<9x9xf32>
    %617 = arith.mulf %612, %616 : vector<9x9xf32>
    %618 = arith.truncf %617 : vector<9x9xf32> to vector<9x9xbf16>
    %619 = vector.extract_strided_slice %601 {offsets = [0, 0], sizes = [9, 4], strides = [1, 1]} : vector<9x32xbf16> to vector<9x4xbf16>
    %cst_160 = arith.constant dense<0.000000e+00> : vector<9x4xf32>
    %620 = tpu.matmul %618, %619, %cst_160 {dimension_numbers = #tpu.dot_dimension_numbers<[1], [0], [0], [1], [0, 0, 1, 1], [], []>} : vector<9x9xbf16>, vector<9x4xbf16>, vector<9x4xf32> -> vector<9x4xf32>
    %621 = vector.extract_strided_slice %602 {offsets = [0, 4], sizes = [9, 4], strides = [1, 1]} : vector<9x32xbf16> to vector<9x4xbf16>
    %622 = vector.extract_strided_slice %599 {offsets = [4, 0], sizes = [4, 9], strides = [1, 1]} : vector<32x9xbf16> to vector<4x9xbf16>
    %cst_161 = arith.constant dense<0.000000e+00> : vector<9x9xf32>
    %623 = tpu.matmul %621, %622, %cst_161 {dimension_numbers = #tpu.dot_dimension_numbers<[1], [0], [0], [1], [0, 0, 1, 1], [], []>} : vector<9x4xbf16>, vector<4x9xbf16>, vector<9x9xf32> -> vector<9x9xf32>
    %cst_162 = arith.constant 5.000000e-01 : f32
    %624 = vector.broadcast %cst_162 : f32 to vector<9x9xf32>
    %625 = arith.mulf %623, %624 : vector<9x9xf32>
    %cst_163 = arith.constant dense<0xFF800000> : vector<9xf32>
    %626 = vector.multi_reduction <maximumf>, %625, %cst_163 [1] : vector<9x9xf32> to vector<9xf32>
    %627 = vector.shape_cast %626 : vector<9xf32> to vector<9x1xf32>
    %628 = vector.broadcast %627 : vector<9x1xf32> to vector<9x9xf32>
    %629 = arith.subf %625, %628 : vector<9x9xf32>
    %630 = math.exp %629 : vector<9x9xf32>
    %cst_164 = arith.constant dense<0.000000e+00> : vector<9xf32>
    %631 = vector.multi_reduction <add>, %630, %cst_164 [1] : vector<9x9xf32> to vector<9xf32>
    %632 = vector.shape_cast %631 : vector<9xf32> to vector<9x1xf32>
    %633 = tpu.reciprocal %632 {approx = true} : vector<9x1xf32> -> vector<9x1xf32>
    %634 = vector.broadcast %633 : vector<9x1xf32> to vector<9x9xf32>
    %635 = arith.mulf %630, %634 : vector<9x9xf32>
    %636 = arith.truncf %635 : vector<9x9xf32> to vector<9x9xbf16>
    %637 = vector.extract_strided_slice %601 {offsets = [0, 4], sizes = [9, 4], strides = [1, 1]} : vector<9x32xbf16> to vector<9x4xbf16>
    %cst_165 = arith.constant dense<0.000000e+00> : vector<9x4xf32>
    %638 = tpu.matmul %636, %637, %cst_165 {dimension_numbers = #tpu.dot_dimension_numbers<[1], [0], [0], [1], [0, 0, 1, 1], [], []>} : vector<9x9xbf16>, vector<9x4xbf16>, vector<9x4xf32> -> vector<9x4xf32>
    %639 = vector.extract_strided_slice %602 {offsets = [0, 8], sizes = [9, 4], strides = [1, 1]} : vector<9x32xbf16> to vector<9x4xbf16>
    %640 = vector.extract_strided_slice %599 {offsets = [8, 0], sizes = [4, 9], strides = [1, 1]} : vector<32x9xbf16> to vector<4x9xbf16>
    %cst_166 = arith.constant dense<0.000000e+00> : vector<9x9xf32>
    %641 = tpu.matmul %639, %640, %cst_166 {dimension_numbers = #tpu.dot_dimension_numbers<[1], [0], [0], [1], [0, 0, 1, 1], [], []>} : vector<9x4xbf16>, vector<4x9xbf16>, vector<9x9xf32> -> vector<9x9xf32>
    %cst_167 = arith.constant 5.000000e-01 : f32
    %642 = vector.broadcast %cst_167 : f32 to vector<9x9xf32>
    %643 = arith.mulf %641, %642 : vector<9x9xf32>
    %cst_168 = arith.constant dense<0xFF800000> : vector<9xf32>
    %644 = vector.multi_reduction <maximumf>, %643, %cst_168 [1] : vector<9x9xf32> to vector<9xf32>
    %645 = vector.shape_cast %644 : vector<9xf32> to vector<9x1xf32>
    %646 = vector.broadcast %645 : vector<9x1xf32> to vector<9x9xf32>
    %647 = arith.subf %643, %646 : vector<9x9xf32>
    %648 = math.exp %647 : vector<9x9xf32>
    %cst_169 = arith.constant dense<0.000000e+00> : vector<9xf32>
    %649 = vector.multi_reduction <add>, %648, %cst_169 [1] : vector<9x9xf32> to vector<9xf32>
    %650 = vector.shape_cast %649 : vector<9xf32> to vector<9x1xf32>
    %651 = tpu.reciprocal %650 {approx = true} : vector<9x1xf32> -> vector<9x1xf32>
    %652 = vector.broadcast %651 : vector<9x1xf32> to vector<9x9xf32>
    %653 = arith.mulf %648, %652 : vector<9x9xf32>
    %654 = arith.truncf %653 : vector<9x9xf32> to vector<9x9xbf16>
    %655 = vector.extract_strided_slice %601 {offsets = [0, 8], sizes = [9, 4], strides = [1, 1]} : vector<9x32xbf16> to vector<9x4xbf16>
    %cst_170 = arith.constant dense<0.000000e+00> : vector<9x4xf32>
    %656 = tpu.matmul %654, %655, %cst_170 {dimension_numbers = #tpu.dot_dimension_numbers<[1], [0], [0], [1], [0, 0, 1, 1], [], []>} : vector<9x9xbf16>, vector<9x4xbf16>, vector<9x4xf32> -> vector<9x4xf32>
    %657 = vector.extract_strided_slice %602 {offsets = [0, 12], sizes = [9, 4], strides = [1, 1]} : vector<9x32xbf16> to vector<9x4xbf16>
    %658 = vector.extract_strided_slice %599 {offsets = [12, 0], sizes = [4, 9], strides = [1, 1]} : vector<32x9xbf16> to vector<4x9xbf16>
    %cst_171 = arith.constant dense<0.000000e+00> : vector<9x9xf32>
    %659 = tpu.matmul %657, %658, %cst_171 {dimension_numbers = #tpu.dot_dimension_numbers<[1], [0], [0], [1], [0, 0, 1, 1], [], []>} : vector<9x4xbf16>, vector<4x9xbf16>, vector<9x9xf32> -> vector<9x9xf32>
    %cst_172 = arith.constant 5.000000e-01 : f32
    %660 = vector.broadcast %cst_172 : f32 to vector<9x9xf32>
    %661 = arith.mulf %659, %660 : vector<9x9xf32>
    %cst_173 = arith.constant dense<0xFF800000> : vector<9xf32>
    %662 = vector.multi_reduction <maximumf>, %661, %cst_173 [1] : vector<9x9xf32> to vector<9xf32>
    %663 = vector.shape_cast %662 : vector<9xf32> to vector<9x1xf32>
    %664 = vector.broadcast %663 : vector<9x1xf32> to vector<9x9xf32>
    %665 = arith.subf %661, %664 : vector<9x9xf32>
    %666 = math.exp %665 : vector<9x9xf32>
    %cst_174 = arith.constant dense<0.000000e+00> : vector<9xf32>
    %667 = vector.multi_reduction <add>, %666, %cst_174 [1] : vector<9x9xf32> to vector<9xf32>
    %668 = vector.shape_cast %667 : vector<9xf32> to vector<9x1xf32>
    %669 = tpu.reciprocal %668 {approx = true} : vector<9x1xf32> -> vector<9x1xf32>
    %670 = vector.broadcast %669 : vector<9x1xf32> to vector<9x9xf32>
    %671 = arith.mulf %666, %670 : vector<9x9xf32>
    %672 = arith.truncf %671 : vector<9x9xf32> to vector<9x9xbf16>
    %673 = vector.extract_strided_slice %601 {offsets = [0, 12], sizes = [9, 4], strides = [1, 1]} : vector<9x32xbf16> to vector<9x4xbf16>
    %cst_175 = arith.constant dense<0.000000e+00> : vector<9x4xf32>
    %674 = tpu.matmul %672, %673, %cst_175 {dimension_numbers = #tpu.dot_dimension_numbers<[1], [0], [0], [1], [0, 0, 1, 1], [], []>} : vector<9x9xbf16>, vector<9x4xbf16>, vector<9x4xf32> -> vector<9x4xf32>
    %675 = vector.extract_strided_slice %602 {offsets = [0, 16], sizes = [9, 4], strides = [1, 1]} : vector<9x32xbf16> to vector<9x4xbf16>
    %676 = vector.extract_strided_slice %599 {offsets = [16, 0], sizes = [4, 9], strides = [1, 1]} : vector<32x9xbf16> to vector<4x9xbf16>
    %cst_176 = arith.constant dense<0.000000e+00> : vector<9x9xf32>
    %677 = tpu.matmul %675, %676, %cst_176 {dimension_numbers = #tpu.dot_dimension_numbers<[1], [0], [0], [1], [0, 0, 1, 1], [], []>} : vector<9x4xbf16>, vector<4x9xbf16>, vector<9x9xf32> -> vector<9x9xf32>
    %cst_177 = arith.constant 5.000000e-01 : f32
    %678 = vector.broadcast %cst_177 : f32 to vector<9x9xf32>
    %679 = arith.mulf %677, %678 : vector<9x9xf32>
    %cst_178 = arith.constant dense<0xFF800000> : vector<9xf32>
    %680 = vector.multi_reduction <maximumf>, %679, %cst_178 [1] : vector<9x9xf32> to vector<9xf32>
    %681 = vector.shape_cast %680 : vector<9xf32> to vector<9x1xf32>
    %682 = vector.broadcast %681 : vector<9x1xf32> to vector<9x9xf32>
    %683 = arith.subf %679, %682 : vector<9x9xf32>
    %684 = math.exp %683 : vector<9x9xf32>
    %cst_179 = arith.constant dense<0.000000e+00> : vector<9xf32>
    %685 = vector.multi_reduction <add>, %684, %cst_179 [1] : vector<9x9xf32> to vector<9xf32>
    %686 = vector.shape_cast %685 : vector<9xf32> to vector<9x1xf32>
    %687 = tpu.reciprocal %686 {approx = true} : vector<9x1xf32> -> vector<9x1xf32>
    %688 = vector.broadcast %687 : vector<9x1xf32> to vector<9x9xf32>
    %689 = arith.mulf %684, %688 : vector<9x9xf32>
    %690 = arith.truncf %689 : vector<9x9xf32> to vector<9x9xbf16>
    %691 = vector.extract_strided_slice %601 {offsets = [0, 16], sizes = [9, 4], strides = [1, 1]} : vector<9x32xbf16> to vector<9x4xbf16>
    %cst_180 = arith.constant dense<0.000000e+00> : vector<9x4xf32>
    %692 = tpu.matmul %690, %691, %cst_180 {dimension_numbers = #tpu.dot_dimension_numbers<[1], [0], [0], [1], [0, 0, 1, 1], [], []>} : vector<9x9xbf16>, vector<9x4xbf16>, vector<9x4xf32> -> vector<9x4xf32>
    %693 = vector.extract_strided_slice %602 {offsets = [0, 20], sizes = [9, 4], strides = [1, 1]} : vector<9x32xbf16> to vector<9x4xbf16>
    %694 = vector.extract_strided_slice %599 {offsets = [20, 0], sizes = [4, 9], strides = [1, 1]} : vector<32x9xbf16> to vector<4x9xbf16>
    %cst_181 = arith.constant dense<0.000000e+00> : vector<9x9xf32>
    %695 = tpu.matmul %693, %694, %cst_181 {dimension_numbers = #tpu.dot_dimension_numbers<[1], [0], [0], [1], [0, 0, 1, 1], [], []>} : vector<9x4xbf16>, vector<4x9xbf16>, vector<9x9xf32> -> vector<9x9xf32>
    %cst_182 = arith.constant 5.000000e-01 : f32
    %696 = vector.broadcast %cst_182 : f32 to vector<9x9xf32>
    %697 = arith.mulf %695, %696 : vector<9x9xf32>
    %cst_183 = arith.constant dense<0xFF800000> : vector<9xf32>
    %698 = vector.multi_reduction <maximumf>, %697, %cst_183 [1] : vector<9x9xf32> to vector<9xf32>
    %699 = vector.shape_cast %698 : vector<9xf32> to vector<9x1xf32>
    %700 = vector.broadcast %699 : vector<9x1xf32> to vector<9x9xf32>
    %701 = arith.subf %697, %700 : vector<9x9xf32>
    %702 = math.exp %701 : vector<9x9xf32>
    %cst_184 = arith.constant dense<0.000000e+00> : vector<9xf32>
    %703 = vector.multi_reduction <add>, %702, %cst_184 [1] : vector<9x9xf32> to vector<9xf32>
    %704 = vector.shape_cast %703 : vector<9xf32> to vector<9x1xf32>
    %705 = tpu.reciprocal %704 {approx = true} : vector<9x1xf32> -> vector<9x1xf32>
    %706 = vector.broadcast %705 : vector<9x1xf32> to vector<9x9xf32>
    %707 = arith.mulf %702, %706 : vector<9x9xf32>
    %708 = arith.truncf %707 : vector<9x9xf32> to vector<9x9xbf16>
    %709 = vector.extract_strided_slice %601 {offsets = [0, 20], sizes = [9, 4], strides = [1, 1]} : vector<9x32xbf16> to vector<9x4xbf16>
    %cst_185 = arith.constant dense<0.000000e+00> : vector<9x4xf32>
    %710 = tpu.matmul %708, %709, %cst_185 {dimension_numbers = #tpu.dot_dimension_numbers<[1], [0], [0], [1], [0, 0, 1, 1], [], []>} : vector<9x9xbf16>, vector<9x4xbf16>, vector<9x4xf32> -> vector<9x4xf32>
    %711 = vector.extract_strided_slice %602 {offsets = [0, 24], sizes = [9, 4], strides = [1, 1]} : vector<9x32xbf16> to vector<9x4xbf16>
    %712 = vector.extract_strided_slice %599 {offsets = [24, 0], sizes = [4, 9], strides = [1, 1]} : vector<32x9xbf16> to vector<4x9xbf16>
    %cst_186 = arith.constant dense<0.000000e+00> : vector<9x9xf32>
    %713 = tpu.matmul %711, %712, %cst_186 {dimension_numbers = #tpu.dot_dimension_numbers<[1], [0], [0], [1], [0, 0, 1, 1], [], []>} : vector<9x4xbf16>, vector<4x9xbf16>, vector<9x9xf32> -> vector<9x9xf32>
    %cst_187 = arith.constant 5.000000e-01 : f32
    %714 = vector.broadcast %cst_187 : f32 to vector<9x9xf32>
    %715 = arith.mulf %713, %714 : vector<9x9xf32>
    %cst_188 = arith.constant dense<0xFF800000> : vector<9xf32>
    %716 = vector.multi_reduction <maximumf>, %715, %cst_188 [1] : vector<9x9xf32> to vector<9xf32>
    %717 = vector.shape_cast %716 : vector<9xf32> to vector<9x1xf32>
    %718 = vector.broadcast %717 : vector<9x1xf32> to vector<9x9xf32>
    %719 = arith.subf %715, %718 : vector<9x9xf32>
    %720 = math.exp %719 : vector<9x9xf32>
    %cst_189 = arith.constant dense<0.000000e+00> : vector<9xf32>
    %721 = vector.multi_reduction <add>, %720, %cst_189 [1] : vector<9x9xf32> to vector<9xf32>
    %722 = vector.shape_cast %721 : vector<9xf32> to vector<9x1xf32>
    %723 = tpu.reciprocal %722 {approx = true} : vector<9x1xf32> -> vector<9x1xf32>
    %724 = vector.broadcast %723 : vector<9x1xf32> to vector<9x9xf32>
    %725 = arith.mulf %720, %724 : vector<9x9xf32>
    %726 = arith.truncf %725 : vector<9x9xf32> to vector<9x9xbf16>
    %727 = vector.extract_strided_slice %601 {offsets = [0, 24], sizes = [9, 4], strides = [1, 1]} : vector<9x32xbf16> to vector<9x4xbf16>
    %cst_190 = arith.constant dense<0.000000e+00> : vector<9x4xf32>
    %728 = tpu.matmul %726, %727, %cst_190 {dimension_numbers = #tpu.dot_dimension_numbers<[1], [0], [0], [1], [0, 0, 1, 1], [], []>} : vector<9x9xbf16>, vector<9x4xbf16>, vector<9x4xf32> -> vector<9x4xf32>
    %729 = vector.extract_strided_slice %602 {offsets = [0, 28], sizes = [9, 4], strides = [1, 1]} : vector<9x32xbf16> to vector<9x4xbf16>
    %730 = vector.extract_strided_slice %599 {offsets = [28, 0], sizes = [4, 9], strides = [1, 1]} : vector<32x9xbf16> to vector<4x9xbf16>
    %cst_191 = arith.constant dense<0.000000e+00> : vector<9x9xf32>
    %731 = tpu.matmul %729, %730, %cst_191 {dimension_numbers = #tpu.dot_dimension_numbers<[1], [0], [0], [1], [0, 0, 1, 1], [], []>} : vector<9x4xbf16>, vector<4x9xbf16>, vector<9x9xf32> -> vector<9x9xf32>
    %cst_192 = arith.constant 5.000000e-01 : f32
    %732 = vector.broadcast %cst_192 : f32 to vector<9x9xf32>
    %733 = arith.mulf %731, %732 : vector<9x9xf32>
    %cst_193 = arith.constant dense<0xFF800000> : vector<9xf32>
    %734 = vector.multi_reduction <maximumf>, %733, %cst_193 [1] : vector<9x9xf32> to vector<9xf32>
    %735 = vector.shape_cast %734 : vector<9xf32> to vector<9x1xf32>
    %736 = vector.broadcast %735 : vector<9x1xf32> to vector<9x9xf32>
    %737 = arith.subf %733, %736 : vector<9x9xf32>
    %738 = math.exp %737 : vector<9x9xf32>
    %cst_194 = arith.constant dense<0.000000e+00> : vector<9xf32>
    %739 = vector.multi_reduction <add>, %738, %cst_194 [1] : vector<9x9xf32> to vector<9xf32>
    %740 = vector.shape_cast %739 : vector<9xf32> to vector<9x1xf32>
    %741 = tpu.reciprocal %740 {approx = true} : vector<9x1xf32> -> vector<9x1xf32>
    %742 = vector.broadcast %741 : vector<9x1xf32> to vector<9x9xf32>
    %743 = arith.mulf %738, %742 : vector<9x9xf32>
    %744 = arith.truncf %743 : vector<9x9xf32> to vector<9x9xbf16>
    %745 = vector.extract_strided_slice %601 {offsets = [0, 28], sizes = [9, 4], strides = [1, 1]} : vector<9x32xbf16> to vector<9x4xbf16>
    %cst_195 = arith.constant dense<0.000000e+00> : vector<9x4xf32>
    %746 = tpu.matmul %744, %745, %cst_195 {dimension_numbers = #tpu.dot_dimension_numbers<[1], [0], [0], [1], [0, 0, 1, 1], [], []>} : vector<9x9xbf16>, vector<9x4xbf16>, vector<9x4xf32> -> vector<9x4xf32>
    %747 = tpu.concatenate %620, %638, %656, %674, %692, %710, %728, %746 in 1 : vector<9x4xf32>, vector<9x4xf32>, vector<9x4xf32>, vector<9x4xf32>, vector<9x4xf32>, vector<9x4xf32>, vector<9x4xf32>, vector<9x4xf32> -> vector<9x32xf32>
    %748 = arith.truncf %747 : vector<9x32xf32> to vector<9x32xbf16>
    %cst_196 = arith.constant dense<0.000000e+00> : vector<9x128xf32>
    %749 = tpu.matmul %748, %567, %cst_196 {dimension_numbers = #tpu.dot_dimension_numbers<[1], [0], [0], [1], [0, 0, 1, 1], [], []>} : vector<9x32xbf16>, vector<32x128xbf16>, vector<9x128xf32> -> vector<9x128xf32>
    %750 = vector.extract_strided_slice %749 {offsets = [0, 0], sizes = [9, 32], strides = [1, 1]} : vector<9x128xf32> to vector<9x32xf32>
    %751 = arith.addf %563, %750 : vector<9x32xf32>
    %752 = vector.extract_strided_slice %0 {offsets = [22, 0], sizes = [1, 32], strides = [1, 1]} : vector<28x128xf32> to vector<1x32xf32>
    %753 = vector.extract_strided_slice %0 {offsets = [23, 0], sizes = [1, 32], strides = [1, 1]} : vector<28x128xf32> to vector<1x32xf32>
    %cst_197 = arith.constant dense<0.000000e+00> : vector<9xf32>
    %754 = vector.multi_reduction <add>, %751, %cst_197 [1] : vector<9x32xf32> to vector<9xf32>
    %755 = vector.shape_cast %754 : vector<9xf32> to vector<9x1xf32>
    %cst_198 = arith.constant 3.200000e+01 : f32
    %756 = vector.broadcast %cst_198 : f32 to vector<9x1xf32>
    %757 = arith.divf %755, %756 : vector<9x1xf32>
    %758 = vector.broadcast %757 : vector<9x1xf32> to vector<9x32xf32>
    %759 = arith.subf %751, %758 : vector<9x32xf32>
    %760 = arith.mulf %759, %759 : vector<9x32xf32>
    %cst_199 = arith.constant dense<0.000000e+00> : vector<9xf32>
    %761 = vector.multi_reduction <add>, %760, %cst_199 [1] : vector<9x32xf32> to vector<9xf32>
    %762 = vector.shape_cast %761 : vector<9xf32> to vector<9x1xf32>
    %cst_200 = arith.constant 3.200000e+01 : f32
    %763 = vector.broadcast %cst_200 : f32 to vector<9x1xf32>
    %764 = arith.divf %762, %763 : vector<9x1xf32>
    %765 = vector.broadcast %757 : vector<9x1xf32> to vector<9x32xf32>
    %766 = arith.subf %751, %765 : vector<9x32xf32>
    %cst_201 = arith.constant 9.99999974E-6 : f32
    %767 = vector.broadcast %cst_201 : f32 to vector<9x1xf32>
    %768 = arith.addf %764, %767 : vector<9x1xf32>
    %769 = math.rsqrt %768 : vector<9x1xf32>
    %770 = vector.broadcast %769 : vector<9x1xf32> to vector<9x32xf32>
    %771 = arith.mulf %766, %770 : vector<9x32xf32>
    %772 = vector.broadcast %752 : vector<1x32xf32> to vector<9x32xf32>
    %773 = arith.mulf %771, %772 : vector<9x32xf32>
    %774 = vector.broadcast %753 : vector<1x32xf32> to vector<9x32xf32>
    %775 = arith.addf %773, %774 : vector<9x32xf32>
    %776 = arith.truncf %775 : vector<9x32xf32> to vector<9x32xbf16>
    %cst_202 = arith.constant dense<0.000000e+00> : vector<9x128xf32>
    %777 = tpu.matmul %776, %568, %cst_202 {dimension_numbers = #tpu.dot_dimension_numbers<[1], [0], [0], [1], [0, 0, 1, 1], [], []>} : vector<9x32xbf16>, vector<32x128xbf16>, vector<9x128xf32> -> vector<9x128xf32>
    %778 = arith.mulf %777, %777 : vector<9x128xf32>
    %779 = arith.mulf %777, %778 : vector<9x128xf32>
    %cst_203 = arith.constant 4.471500e-02 : f32
    %780 = vector.broadcast %cst_203 : f32 to vector<9x128xf32>
    %781 = arith.mulf %780, %779 : vector<9x128xf32>
    %782 = arith.addf %777, %781 : vector<9x128xf32>
    %cst_204 = arith.constant 0.797884583 : f32
    %783 = vector.broadcast %cst_204 : f32 to vector<9x128xf32>
    %784 = arith.mulf %783, %782 : vector<9x128xf32>
    %785 = math.tanh %784 : vector<9x128xf32>
    %cst_205 = arith.constant 1.000000e+00 : f32
    %786 = vector.broadcast %cst_205 : f32 to vector<9x128xf32>
    %787 = arith.addf %786, %785 : vector<9x128xf32>
    %cst_206 = arith.constant 5.000000e-01 : f32
    %788 = vector.broadcast %cst_206 : f32 to vector<9x128xf32>
    %789 = arith.mulf %788, %787 : vector<9x128xf32>
    %790 = arith.mulf %777, %789 : vector<9x128xf32>
    %791 = arith.truncf %790 : vector<9x128xf32> to vector<9x128xbf16>
    %cst_207 = arith.constant dense<0.000000e+00> : vector<9x128xf32>
    %792 = tpu.matmul %791, %569, %cst_207 {dimension_numbers = #tpu.dot_dimension_numbers<[1], [0], [0], [1], [0, 0, 1, 1], [], []>} : vector<9x128xbf16>, vector<128x128xbf16>, vector<9x128xf32> -> vector<9x128xf32>
    %793 = vector.extract_strided_slice %792 {offsets = [0, 0], sizes = [9, 32], strides = [1, 1]} : vector<9x128xf32> to vector<9x32xf32>
    %794 = arith.addf %751, %793 : vector<9x32xf32>
    %c3 = arith.constant 3 : index
    %c0_208 = arith.constant 0 : index
    %c0_209 = arith.constant 0 : index
    %795 = vector.load %arg4[%c3, %c0_208, %c0_209] : memref<4x224x128xbf16, #tpu.memory_space<vmem>>, vector<1x224x128xbf16>
    %796 = vector.shape_cast %795 : vector<1x224x128xbf16> to vector<224x128xbf16>
    %797 = vector.extract_strided_slice %796 {offsets = [0, 0], sizes = [32, 128], strides = [1, 1]} : vector<224x128xbf16> to vector<32x128xbf16>
    %798 = vector.extract_strided_slice %796 {offsets = [32, 0], sizes = [32, 128], strides = [1, 1]} : vector<224x128xbf16> to vector<32x128xbf16>
    %799 = vector.extract_strided_slice %796 {offsets = [64, 0], sizes = [32, 128], strides = [1, 1]} : vector<224x128xbf16> to vector<32x128xbf16>
    %800 = vector.extract_strided_slice %796 {offsets = [96, 0], sizes = [128, 128], strides = [1, 1]} : vector<224x128xbf16> to vector<128x128xbf16>
    %801 = vector.extract_strided_slice %0 {offsets = [24, 0], sizes = [1, 32], strides = [1, 1]} : vector<28x128xf32> to vector<1x32xf32>
    %802 = vector.extract_strided_slice %0 {offsets = [25, 0], sizes = [1, 32], strides = [1, 1]} : vector<28x128xf32> to vector<1x32xf32>
    %cst_210 = arith.constant dense<0.000000e+00> : vector<9xf32>
    %803 = vector.multi_reduction <add>, %794, %cst_210 [1] : vector<9x32xf32> to vector<9xf32>
    %804 = vector.shape_cast %803 : vector<9xf32> to vector<9x1xf32>
    %cst_211 = arith.constant 3.200000e+01 : f32
    %805 = vector.broadcast %cst_211 : f32 to vector<9x1xf32>
    %806 = arith.divf %804, %805 : vector<9x1xf32>
    %807 = vector.broadcast %806 : vector<9x1xf32> to vector<9x32xf32>
    %808 = arith.subf %794, %807 : vector<9x32xf32>
    %809 = arith.mulf %808, %808 : vector<9x32xf32>
    %cst_212 = arith.constant dense<0.000000e+00> : vector<9xf32>
    %810 = vector.multi_reduction <add>, %809, %cst_212 [1] : vector<9x32xf32> to vector<9xf32>
    %811 = vector.shape_cast %810 : vector<9xf32> to vector<9x1xf32>
    %cst_213 = arith.constant 3.200000e+01 : f32
    %812 = vector.broadcast %cst_213 : f32 to vector<9x1xf32>
    %813 = arith.divf %811, %812 : vector<9x1xf32>
    %814 = vector.broadcast %806 : vector<9x1xf32> to vector<9x32xf32>
    %815 = arith.subf %794, %814 : vector<9x32xf32>
    %cst_214 = arith.constant 9.99999974E-6 : f32
    %816 = vector.broadcast %cst_214 : f32 to vector<9x1xf32>
    %817 = arith.addf %813, %816 : vector<9x1xf32>
    %818 = math.rsqrt %817 : vector<9x1xf32>
    %819 = vector.broadcast %818 : vector<9x1xf32> to vector<9x32xf32>
    %820 = arith.mulf %815, %819 : vector<9x32xf32>
    %821 = vector.broadcast %801 : vector<1x32xf32> to vector<9x32xf32>
    %822 = arith.mulf %820, %821 : vector<9x32xf32>
    %823 = vector.broadcast %802 : vector<1x32xf32> to vector<9x32xf32>
    %824 = arith.addf %822, %823 : vector<9x32xf32>
    %825 = arith.truncf %824 : vector<9x32xf32> to vector<9x32xbf16>
    %cst_215 = arith.constant dense<0.000000e+00> : vector<9x128xf32>
    %826 = tpu.matmul %825, %797, %cst_215 {dimension_numbers = #tpu.dot_dimension_numbers<[1], [0], [0], [1], [0, 0, 1, 1], [], []>} : vector<9x32xbf16>, vector<32x128xbf16>, vector<9x128xf32> -> vector<9x128xf32>
    %827 = vector.extract_strided_slice %826 {offsets = [0, 0], sizes = [9, 32], strides = [1, 1]} : vector<9x128xf32> to vector<9x32xf32>
    %828 = vector.extract_strided_slice %826 {offsets = [0, 32], sizes = [9, 32], strides = [1, 1]} : vector<9x128xf32> to vector<9x32xf32>
    %829 = tpu.transpose %828, [1, 0] : vector<9x32xf32> -> vector<32x9xf32>
    %830 = arith.truncf %829 : vector<32x9xf32> to vector<32x9xbf16>
    %831 = vector.extract_strided_slice %826 {offsets = [0, 64], sizes = [9, 32], strides = [1, 1]} : vector<9x128xf32> to vector<9x32xf32>
    %832 = arith.truncf %831 : vector<9x32xf32> to vector<9x32xbf16>
    %833 = vector.extract_strided_slice %827 {offsets = [8, 0], sizes = [1, 32], strides = [1, 1]} : vector<9x32xf32> to vector<1x32xf32>
    %834 = arith.truncf %833 : vector<1x32xf32> to vector<1x32xbf16>
    %835 = vector.extract_strided_slice %834 {offsets = [0, 0], sizes = [1, 4], strides = [1, 1]} : vector<1x32xbf16> to vector<1x4xbf16>
    %836 = vector.extract_strided_slice %830 {offsets = [0, 0], sizes = [4, 9], strides = [1, 1]} : vector<32x9xbf16> to vector<4x9xbf16>
    %cst_216 = arith.constant dense<0.000000e+00> : vector<1x9xf32>
    %837 = tpu.matmul %835, %836, %cst_216 {dimension_numbers = #tpu.dot_dimension_numbers<[1], [0], [0], [1], [0, 0, 1, 1], [], []>} : vector<1x4xbf16>, vector<4x9xbf16>, vector<1x9xf32> -> vector<1x9xf32>
    %cst_217 = arith.constant 5.000000e-01 : f32
    %838 = vector.broadcast %cst_217 : f32 to vector<1x9xf32>
    %839 = arith.mulf %837, %838 : vector<1x9xf32>
    %cst_218 = arith.constant dense<0xFF800000> : vector<1xf32>
    %840 = vector.multi_reduction <maximumf>, %839, %cst_218 [1] : vector<1x9xf32> to vector<1xf32>
    %841 = vector.shape_cast %840 : vector<1xf32> to vector<1x1xf32>
    %842 = vector.broadcast %841 : vector<1x1xf32> to vector<1x9xf32>
    %843 = arith.subf %839, %842 : vector<1x9xf32>
    %844 = math.exp %843 : vector<1x9xf32>
    %cst_219 = arith.constant dense<0.000000e+00> : vector<1xf32>
    %845 = vector.multi_reduction <add>, %844, %cst_219 [1] : vector<1x9xf32> to vector<1xf32>
    %846 = vector.shape_cast %845 : vector<1xf32> to vector<1x1xf32>
    %847 = tpu.reciprocal %846 {approx = true} : vector<1x1xf32> -> vector<1x1xf32>
    %848 = vector.broadcast %847 : vector<1x1xf32> to vector<1x9xf32>
    %849 = arith.mulf %844, %848 : vector<1x9xf32>
    %850 = arith.truncf %849 : vector<1x9xf32> to vector<1x9xbf16>
    %851 = vector.extract_strided_slice %832 {offsets = [0, 0], sizes = [9, 4], strides = [1, 1]} : vector<9x32xbf16> to vector<9x4xbf16>
    %cst_220 = arith.constant dense<0.000000e+00> : vector<1x4xf32>
    %852 = tpu.matmul %850, %851, %cst_220 {dimension_numbers = #tpu.dot_dimension_numbers<[1], [0], [0], [1], [0, 0, 1, 1], [], []>} : vector<1x9xbf16>, vector<9x4xbf16>, vector<1x4xf32> -> vector<1x4xf32>
    %853 = vector.extract_strided_slice %834 {offsets = [0, 4], sizes = [1, 4], strides = [1, 1]} : vector<1x32xbf16> to vector<1x4xbf16>
    %854 = vector.extract_strided_slice %830 {offsets = [4, 0], sizes = [4, 9], strides = [1, 1]} : vector<32x9xbf16> to vector<4x9xbf16>
    %cst_221 = arith.constant dense<0.000000e+00> : vector<1x9xf32>
    %855 = tpu.matmul %853, %854, %cst_221 {dimension_numbers = #tpu.dot_dimension_numbers<[1], [0], [0], [1], [0, 0, 1, 1], [], []>} : vector<1x4xbf16>, vector<4x9xbf16>, vector<1x9xf32> -> vector<1x9xf32>
    %cst_222 = arith.constant 5.000000e-01 : f32
    %856 = vector.broadcast %cst_222 : f32 to vector<1x9xf32>
    %857 = arith.mulf %855, %856 : vector<1x9xf32>
    %cst_223 = arith.constant dense<0xFF800000> : vector<1xf32>
    %858 = vector.multi_reduction <maximumf>, %857, %cst_223 [1] : vector<1x9xf32> to vector<1xf32>
    %859 = vector.shape_cast %858 : vector<1xf32> to vector<1x1xf32>
    %860 = vector.broadcast %859 : vector<1x1xf32> to vector<1x9xf32>
    %861 = arith.subf %857, %860 : vector<1x9xf32>
    %862 = math.exp %861 : vector<1x9xf32>
    %cst_224 = arith.constant dense<0.000000e+00> : vector<1xf32>
    %863 = vector.multi_reduction <add>, %862, %cst_224 [1] : vector<1x9xf32> to vector<1xf32>
    %864 = vector.shape_cast %863 : vector<1xf32> to vector<1x1xf32>
    %865 = tpu.reciprocal %864 {approx = true} : vector<1x1xf32> -> vector<1x1xf32>
    %866 = vector.broadcast %865 : vector<1x1xf32> to vector<1x9xf32>
    %867 = arith.mulf %862, %866 : vector<1x9xf32>
    %868 = arith.truncf %867 : vector<1x9xf32> to vector<1x9xbf16>
    %869 = vector.extract_strided_slice %832 {offsets = [0, 4], sizes = [9, 4], strides = [1, 1]} : vector<9x32xbf16> to vector<9x4xbf16>
    %cst_225 = arith.constant dense<0.000000e+00> : vector<1x4xf32>
    %870 = tpu.matmul %868, %869, %cst_225 {dimension_numbers = #tpu.dot_dimension_numbers<[1], [0], [0], [1], [0, 0, 1, 1], [], []>} : vector<1x9xbf16>, vector<9x4xbf16>, vector<1x4xf32> -> vector<1x4xf32>
    %871 = vector.extract_strided_slice %834 {offsets = [0, 8], sizes = [1, 4], strides = [1, 1]} : vector<1x32xbf16> to vector<1x4xbf16>
    %872 = vector.extract_strided_slice %830 {offsets = [8, 0], sizes = [4, 9], strides = [1, 1]} : vector<32x9xbf16> to vector<4x9xbf16>
    %cst_226 = arith.constant dense<0.000000e+00> : vector<1x9xf32>
    %873 = tpu.matmul %871, %872, %cst_226 {dimension_numbers = #tpu.dot_dimension_numbers<[1], [0], [0], [1], [0, 0, 1, 1], [], []>} : vector<1x4xbf16>, vector<4x9xbf16>, vector<1x9xf32> -> vector<1x9xf32>
    %cst_227 = arith.constant 5.000000e-01 : f32
    %874 = vector.broadcast %cst_227 : f32 to vector<1x9xf32>
    %875 = arith.mulf %873, %874 : vector<1x9xf32>
    %cst_228 = arith.constant dense<0xFF800000> : vector<1xf32>
    %876 = vector.multi_reduction <maximumf>, %875, %cst_228 [1] : vector<1x9xf32> to vector<1xf32>
    %877 = vector.shape_cast %876 : vector<1xf32> to vector<1x1xf32>
    %878 = vector.broadcast %877 : vector<1x1xf32> to vector<1x9xf32>
    %879 = arith.subf %875, %878 : vector<1x9xf32>
    %880 = math.exp %879 : vector<1x9xf32>
    %cst_229 = arith.constant dense<0.000000e+00> : vector<1xf32>
    %881 = vector.multi_reduction <add>, %880, %cst_229 [1] : vector<1x9xf32> to vector<1xf32>
    %882 = vector.shape_cast %881 : vector<1xf32> to vector<1x1xf32>
    %883 = tpu.reciprocal %882 {approx = true} : vector<1x1xf32> -> vector<1x1xf32>
    %884 = vector.broadcast %883 : vector<1x1xf32> to vector<1x9xf32>
    %885 = arith.mulf %880, %884 : vector<1x9xf32>
    %886 = arith.truncf %885 : vector<1x9xf32> to vector<1x9xbf16>
    %887 = vector.extract_strided_slice %832 {offsets = [0, 8], sizes = [9, 4], strides = [1, 1]} : vector<9x32xbf16> to vector<9x4xbf16>
    %cst_230 = arith.constant dense<0.000000e+00> : vector<1x4xf32>
    %888 = tpu.matmul %886, %887, %cst_230 {dimension_numbers = #tpu.dot_dimension_numbers<[1], [0], [0], [1], [0, 0, 1, 1], [], []>} : vector<1x9xbf16>, vector<9x4xbf16>, vector<1x4xf32> -> vector<1x4xf32>
    %889 = vector.extract_strided_slice %834 {offsets = [0, 12], sizes = [1, 4], strides = [1, 1]} : vector<1x32xbf16> to vector<1x4xbf16>
    %890 = vector.extract_strided_slice %830 {offsets = [12, 0], sizes = [4, 9], strides = [1, 1]} : vector<32x9xbf16> to vector<4x9xbf16>
    %cst_231 = arith.constant dense<0.000000e+00> : vector<1x9xf32>
    %891 = tpu.matmul %889, %890, %cst_231 {dimension_numbers = #tpu.dot_dimension_numbers<[1], [0], [0], [1], [0, 0, 1, 1], [], []>} : vector<1x4xbf16>, vector<4x9xbf16>, vector<1x9xf32> -> vector<1x9xf32>
    %cst_232 = arith.constant 5.000000e-01 : f32
    %892 = vector.broadcast %cst_232 : f32 to vector<1x9xf32>
    %893 = arith.mulf %891, %892 : vector<1x9xf32>
    %cst_233 = arith.constant dense<0xFF800000> : vector<1xf32>
    %894 = vector.multi_reduction <maximumf>, %893, %cst_233 [1] : vector<1x9xf32> to vector<1xf32>
    %895 = vector.shape_cast %894 : vector<1xf32> to vector<1x1xf32>
    %896 = vector.broadcast %895 : vector<1x1xf32> to vector<1x9xf32>
    %897 = arith.subf %893, %896 : vector<1x9xf32>
    %898 = math.exp %897 : vector<1x9xf32>
    %cst_234 = arith.constant dense<0.000000e+00> : vector<1xf32>
    %899 = vector.multi_reduction <add>, %898, %cst_234 [1] : vector<1x9xf32> to vector<1xf32>
    %900 = vector.shape_cast %899 : vector<1xf32> to vector<1x1xf32>
    %901 = tpu.reciprocal %900 {approx = true} : vector<1x1xf32> -> vector<1x1xf32>
    %902 = vector.broadcast %901 : vector<1x1xf32> to vector<1x9xf32>
    %903 = arith.mulf %898, %902 : vector<1x9xf32>
    %904 = arith.truncf %903 : vector<1x9xf32> to vector<1x9xbf16>
    %905 = vector.extract_strided_slice %832 {offsets = [0, 12], sizes = [9, 4], strides = [1, 1]} : vector<9x32xbf16> to vector<9x4xbf16>
    %cst_235 = arith.constant dense<0.000000e+00> : vector<1x4xf32>
    %906 = tpu.matmul %904, %905, %cst_235 {dimension_numbers = #tpu.dot_dimension_numbers<[1], [0], [0], [1], [0, 0, 1, 1], [], []>} : vector<1x9xbf16>, vector<9x4xbf16>, vector<1x4xf32> -> vector<1x4xf32>
    %907 = vector.extract_strided_slice %834 {offsets = [0, 16], sizes = [1, 4], strides = [1, 1]} : vector<1x32xbf16> to vector<1x4xbf16>
    %908 = vector.extract_strided_slice %830 {offsets = [16, 0], sizes = [4, 9], strides = [1, 1]} : vector<32x9xbf16> to vector<4x9xbf16>
    %cst_236 = arith.constant dense<0.000000e+00> : vector<1x9xf32>
    %909 = tpu.matmul %907, %908, %cst_236 {dimension_numbers = #tpu.dot_dimension_numbers<[1], [0], [0], [1], [0, 0, 1, 1], [], []>} : vector<1x4xbf16>, vector<4x9xbf16>, vector<1x9xf32> -> vector<1x9xf32>
    %cst_237 = arith.constant 5.000000e-01 : f32
    %910 = vector.broadcast %cst_237 : f32 to vector<1x9xf32>
    %911 = arith.mulf %909, %910 : vector<1x9xf32>
    %cst_238 = arith.constant dense<0xFF800000> : vector<1xf32>
    %912 = vector.multi_reduction <maximumf>, %911, %cst_238 [1] : vector<1x9xf32> to vector<1xf32>
    %913 = vector.shape_cast %912 : vector<1xf32> to vector<1x1xf32>
    %914 = vector.broadcast %913 : vector<1x1xf32> to vector<1x9xf32>
    %915 = arith.subf %911, %914 : vector<1x9xf32>
    %916 = math.exp %915 : vector<1x9xf32>
    %cst_239 = arith.constant dense<0.000000e+00> : vector<1xf32>
    %917 = vector.multi_reduction <add>, %916, %cst_239 [1] : vector<1x9xf32> to vector<1xf32>
    %918 = vector.shape_cast %917 : vector<1xf32> to vector<1x1xf32>
    %919 = tpu.reciprocal %918 {approx = true} : vector<1x1xf32> -> vector<1x1xf32>
    %920 = vector.broadcast %919 : vector<1x1xf32> to vector<1x9xf32>
    %921 = arith.mulf %916, %920 : vector<1x9xf32>
    %922 = arith.truncf %921 : vector<1x9xf32> to vector<1x9xbf16>
    %923 = vector.extract_strided_slice %832 {offsets = [0, 16], sizes = [9, 4], strides = [1, 1]} : vector<9x32xbf16> to vector<9x4xbf16>
    %cst_240 = arith.constant dense<0.000000e+00> : vector<1x4xf32>
    %924 = tpu.matmul %922, %923, %cst_240 {dimension_numbers = #tpu.dot_dimension_numbers<[1], [0], [0], [1], [0, 0, 1, 1], [], []>} : vector<1x9xbf16>, vector<9x4xbf16>, vector<1x4xf32> -> vector<1x4xf32>
    %925 = vector.extract_strided_slice %834 {offsets = [0, 20], sizes = [1, 4], strides = [1, 1]} : vector<1x32xbf16> to vector<1x4xbf16>
    %926 = vector.extract_strided_slice %830 {offsets = [20, 0], sizes = [4, 9], strides = [1, 1]} : vector<32x9xbf16> to vector<4x9xbf16>
    %cst_241 = arith.constant dense<0.000000e+00> : vector<1x9xf32>
    %927 = tpu.matmul %925, %926, %cst_241 {dimension_numbers = #tpu.dot_dimension_numbers<[1], [0], [0], [1], [0, 0, 1, 1], [], []>} : vector<1x4xbf16>, vector<4x9xbf16>, vector<1x9xf32> -> vector<1x9xf32>
    %cst_242 = arith.constant 5.000000e-01 : f32
    %928 = vector.broadcast %cst_242 : f32 to vector<1x9xf32>
    %929 = arith.mulf %927, %928 : vector<1x9xf32>
    %cst_243 = arith.constant dense<0xFF800000> : vector<1xf32>
    %930 = vector.multi_reduction <maximumf>, %929, %cst_243 [1] : vector<1x9xf32> to vector<1xf32>
    %931 = vector.shape_cast %930 : vector<1xf32> to vector<1x1xf32>
    %932 = vector.broadcast %931 : vector<1x1xf32> to vector<1x9xf32>
    %933 = arith.subf %929, %932 : vector<1x9xf32>
    %934 = math.exp %933 : vector<1x9xf32>
    %cst_244 = arith.constant dense<0.000000e+00> : vector<1xf32>
    %935 = vector.multi_reduction <add>, %934, %cst_244 [1] : vector<1x9xf32> to vector<1xf32>
    %936 = vector.shape_cast %935 : vector<1xf32> to vector<1x1xf32>
    %937 = tpu.reciprocal %936 {approx = true} : vector<1x1xf32> -> vector<1x1xf32>
    %938 = vector.broadcast %937 : vector<1x1xf32> to vector<1x9xf32>
    %939 = arith.mulf %934, %938 : vector<1x9xf32>
    %940 = arith.truncf %939 : vector<1x9xf32> to vector<1x9xbf16>
    %941 = vector.extract_strided_slice %832 {offsets = [0, 20], sizes = [9, 4], strides = [1, 1]} : vector<9x32xbf16> to vector<9x4xbf16>
    %cst_245 = arith.constant dense<0.000000e+00> : vector<1x4xf32>
    %942 = tpu.matmul %940, %941, %cst_245 {dimension_numbers = #tpu.dot_dimension_numbers<[1], [0], [0], [1], [0, 0, 1, 1], [], []>} : vector<1x9xbf16>, vector<9x4xbf16>, vector<1x4xf32> -> vector<1x4xf32>
    %943 = vector.extract_strided_slice %834 {offsets = [0, 24], sizes = [1, 4], strides = [1, 1]} : vector<1x32xbf16> to vector<1x4xbf16>
    %944 = vector.extract_strided_slice %830 {offsets = [24, 0], sizes = [4, 9], strides = [1, 1]} : vector<32x9xbf16> to vector<4x9xbf16>
    %cst_246 = arith.constant dense<0.000000e+00> : vector<1x9xf32>
    %945 = tpu.matmul %943, %944, %cst_246 {dimension_numbers = #tpu.dot_dimension_numbers<[1], [0], [0], [1], [0, 0, 1, 1], [], []>} : vector<1x4xbf16>, vector<4x9xbf16>, vector<1x9xf32> -> vector<1x9xf32>
    %cst_247 = arith.constant 5.000000e-01 : f32
    %946 = vector.broadcast %cst_247 : f32 to vector<1x9xf32>
    %947 = arith.mulf %945, %946 : vector<1x9xf32>
    %cst_248 = arith.constant dense<0xFF800000> : vector<1xf32>
    %948 = vector.multi_reduction <maximumf>, %947, %cst_248 [1] : vector<1x9xf32> to vector<1xf32>
    %949 = vector.shape_cast %948 : vector<1xf32> to vector<1x1xf32>
    %950 = vector.broadcast %949 : vector<1x1xf32> to vector<1x9xf32>
    %951 = arith.subf %947, %950 : vector<1x9xf32>
    %952 = math.exp %951 : vector<1x9xf32>
    %cst_249 = arith.constant dense<0.000000e+00> : vector<1xf32>
    %953 = vector.multi_reduction <add>, %952, %cst_249 [1] : vector<1x9xf32> to vector<1xf32>
    %954 = vector.shape_cast %953 : vector<1xf32> to vector<1x1xf32>
    %955 = tpu.reciprocal %954 {approx = true} : vector<1x1xf32> -> vector<1x1xf32>
    %956 = vector.broadcast %955 : vector<1x1xf32> to vector<1x9xf32>
    %957 = arith.mulf %952, %956 : vector<1x9xf32>
    %958 = arith.truncf %957 : vector<1x9xf32> to vector<1x9xbf16>
    %959 = vector.extract_strided_slice %832 {offsets = [0, 24], sizes = [9, 4], strides = [1, 1]} : vector<9x32xbf16> to vector<9x4xbf16>
    %cst_250 = arith.constant dense<0.000000e+00> : vector<1x4xf32>
    %960 = tpu.matmul %958, %959, %cst_250 {dimension_numbers = #tpu.dot_dimension_numbers<[1], [0], [0], [1], [0, 0, 1, 1], [], []>} : vector<1x9xbf16>, vector<9x4xbf16>, vector<1x4xf32> -> vector<1x4xf32>
    %961 = vector.extract_strided_slice %834 {offsets = [0, 28], sizes = [1, 4], strides = [1, 1]} : vector<1x32xbf16> to vector<1x4xbf16>
    %962 = vector.extract_strided_slice %830 {offsets = [28, 0], sizes = [4, 9], strides = [1, 1]} : vector<32x9xbf16> to vector<4x9xbf16>
    %cst_251 = arith.constant dense<0.000000e+00> : vector<1x9xf32>
    %963 = tpu.matmul %961, %962, %cst_251 {dimension_numbers = #tpu.dot_dimension_numbers<[1], [0], [0], [1], [0, 0, 1, 1], [], []>} : vector<1x4xbf16>, vector<4x9xbf16>, vector<1x9xf32> -> vector<1x9xf32>
    %cst_252 = arith.constant 5.000000e-01 : f32
    %964 = vector.broadcast %cst_252 : f32 to vector<1x9xf32>
    %965 = arith.mulf %963, %964 : vector<1x9xf32>
    %cst_253 = arith.constant dense<0xFF800000> : vector<1xf32>
    %966 = vector.multi_reduction <maximumf>, %965, %cst_253 [1] : vector<1x9xf32> to vector<1xf32>
    %967 = vector.shape_cast %966 : vector<1xf32> to vector<1x1xf32>
    %968 = vector.broadcast %967 : vector<1x1xf32> to vector<1x9xf32>
    %969 = arith.subf %965, %968 : vector<1x9xf32>
    %970 = math.exp %969 : vector<1x9xf32>
    %cst_254 = arith.constant dense<0.000000e+00> : vector<1xf32>
    %971 = vector.multi_reduction <add>, %970, %cst_254 [1] : vector<1x9xf32> to vector<1xf32>
    %972 = vector.shape_cast %971 : vector<1xf32> to vector<1x1xf32>
    %973 = tpu.reciprocal %972 {approx = true} : vector<1x1xf32> -> vector<1x1xf32>
    %974 = vector.broadcast %973 : vector<1x1xf32> to vector<1x9xf32>
    %975 = arith.mulf %970, %974 : vector<1x9xf32>
    %976 = arith.truncf %975 : vector<1x9xf32> to vector<1x9xbf16>
    %977 = vector.extract_strided_slice %832 {offsets = [0, 28], sizes = [9, 4], strides = [1, 1]} : vector<9x32xbf16> to vector<9x4xbf16>
    %cst_255 = arith.constant dense<0.000000e+00> : vector<1x4xf32>
    %978 = tpu.matmul %976, %977, %cst_255 {dimension_numbers = #tpu.dot_dimension_numbers<[1], [0], [0], [1], [0, 0, 1, 1], [], []>} : vector<1x9xbf16>, vector<9x4xbf16>, vector<1x4xf32> -> vector<1x4xf32>
    %979 = tpu.concatenate %852, %870, %888, %906, %924, %942, %960, %978 in 1 : vector<1x4xf32>, vector<1x4xf32>, vector<1x4xf32>, vector<1x4xf32>, vector<1x4xf32>, vector<1x4xf32>, vector<1x4xf32>, vector<1x4xf32> -> vector<1x32xf32>
    %980 = arith.truncf %979 : vector<1x32xf32> to vector<1x32xbf16>
    %cst_256 = arith.constant dense<0.000000e+00> : vector<1x128xf32>
    %981 = tpu.matmul %980, %798, %cst_256 {dimension_numbers = #tpu.dot_dimension_numbers<[1], [0], [0], [1], [0, 0, 1, 1], [], []>} : vector<1x32xbf16>, vector<32x128xbf16>, vector<1x128xf32> -> vector<1x128xf32>
    %982 = vector.extract_strided_slice %981 {offsets = [0, 0], sizes = [1, 32], strides = [1, 1]} : vector<1x128xf32> to vector<1x32xf32>
    %983 = vector.extract_strided_slice %794 {offsets = [8, 0], sizes = [1, 32], strides = [1, 1]} : vector<9x32xf32> to vector<1x32xf32>
    %984 = arith.addf %983, %982 : vector<1x32xf32>
    %985 = vector.extract_strided_slice %0 {offsets = [26, 0], sizes = [1, 32], strides = [1, 1]} : vector<28x128xf32> to vector<1x32xf32>
    %986 = vector.extract_strided_slice %0 {offsets = [27, 0], sizes = [1, 32], strides = [1, 1]} : vector<28x128xf32> to vector<1x32xf32>
    %cst_257 = arith.constant dense<0.000000e+00> : vector<1xf32>
    %987 = vector.multi_reduction <add>, %984, %cst_257 [1] : vector<1x32xf32> to vector<1xf32>
    %988 = vector.shape_cast %987 : vector<1xf32> to vector<1x1xf32>
    %cst_258 = arith.constant 3.200000e+01 : f32
    %989 = vector.broadcast %cst_258 : f32 to vector<1x1xf32>
    %990 = arith.divf %988, %989 : vector<1x1xf32>
    %991 = vector.broadcast %990 : vector<1x1xf32> to vector<1x32xf32>
    %992 = arith.subf %984, %991 : vector<1x32xf32>
    %993 = arith.mulf %992, %992 : vector<1x32xf32>
    %cst_259 = arith.constant dense<0.000000e+00> : vector<1xf32>
    %994 = vector.multi_reduction <add>, %993, %cst_259 [1] : vector<1x32xf32> to vector<1xf32>
    %995 = vector.shape_cast %994 : vector<1xf32> to vector<1x1xf32>
    %cst_260 = arith.constant 3.200000e+01 : f32
    %996 = vector.broadcast %cst_260 : f32 to vector<1x1xf32>
    %997 = arith.divf %995, %996 : vector<1x1xf32>
    %998 = vector.broadcast %990 : vector<1x1xf32> to vector<1x32xf32>
    %999 = arith.subf %984, %998 : vector<1x32xf32>
    %cst_261 = arith.constant 9.99999974E-6 : f32
    %1000 = vector.broadcast %cst_261 : f32 to vector<1x1xf32>
    %1001 = arith.addf %997, %1000 : vector<1x1xf32>
    %1002 = math.rsqrt %1001 : vector<1x1xf32>
    %1003 = vector.broadcast %1002 : vector<1x1xf32> to vector<1x32xf32>
    %1004 = arith.mulf %999, %1003 : vector<1x32xf32>
    %1005 = arith.mulf %1004, %985 : vector<1x32xf32>
    %1006 = arith.addf %1005, %986 : vector<1x32xf32>
    %1007 = arith.truncf %1006 : vector<1x32xf32> to vector<1x32xbf16>
    %cst_262 = arith.constant dense<0.000000e+00> : vector<1x128xf32>
    %1008 = tpu.matmul %1007, %799, %cst_262 {dimension_numbers = #tpu.dot_dimension_numbers<[1], [0], [0], [1], [0, 0, 1, 1], [], []>} : vector<1x32xbf16>, vector<32x128xbf16>, vector<1x128xf32> -> vector<1x128xf32>
    %1009 = arith.mulf %1008, %1008 : vector<1x128xf32>
    %1010 = arith.mulf %1008, %1009 : vector<1x128xf32>
    %cst_263 = arith.constant 4.471500e-02 : f32
    %1011 = vector.broadcast %cst_263 : f32 to vector<1x128xf32>
    %1012 = arith.mulf %1011, %1010 : vector<1x128xf32>
    %1013 = arith.addf %1008, %1012 : vector<1x128xf32>
    %cst_264 = arith.constant 0.797884583 : f32
    %1014 = vector.broadcast %cst_264 : f32 to vector<1x128xf32>
    %1015 = arith.mulf %1014, %1013 : vector<1x128xf32>
    %1016 = math.tanh %1015 : vector<1x128xf32>
    %cst_265 = arith.constant 1.000000e+00 : f32
    %1017 = vector.broadcast %cst_265 : f32 to vector<1x128xf32>
    %1018 = arith.addf %1017, %1016 : vector<1x128xf32>
    %cst_266 = arith.constant 5.000000e-01 : f32
    %1019 = vector.broadcast %cst_266 : f32 to vector<1x128xf32>
    %1020 = arith.mulf %1019, %1018 : vector<1x128xf32>
    %1021 = arith.mulf %1008, %1020 : vector<1x128xf32>
    %1022 = arith.truncf %1021 : vector<1x128xf32> to vector<1x128xbf16>
    %cst_267 = arith.constant dense<0.000000e+00> : vector<1x128xf32>
    %1023 = tpu.matmul %1022, %800, %cst_267 {dimension_numbers = #tpu.dot_dimension_numbers<[1], [0], [0], [1], [0, 0, 1, 1], [], []>} : vector<1x128xbf16>, vector<128x128xbf16>, vector<1x128xf32> -> vector<1x128xf32>
    %1024 = vector.extract_strided_slice %1023 {offsets = [0, 0], sizes = [1, 32], strides = [1, 1]} : vector<1x128xf32> to vector<1x32xf32>
    %1025 = arith.addf %984, %1024 : vector<1x32xf32>
    %1026 = vector.extract_strided_slice %0 {offsets = [10, 0], sizes = [1, 32], strides = [1, 1]} : vector<28x128xf32> to vector<1x32xf32>
    %1027 = vector.extract_strided_slice %0 {offsets = [11, 0], sizes = [1, 32], strides = [1, 1]} : vector<28x128xf32> to vector<1x32xf32>
    %cst_268 = arith.constant dense<0.000000e+00> : vector<1xf32>
    %1028 = vector.multi_reduction <add>, %1025, %cst_268 [1] : vector<1x32xf32> to vector<1xf32>
    %1029 = vector.shape_cast %1028 : vector<1xf32> to vector<1x1xf32>
    %cst_269 = arith.constant 3.200000e+01 : f32
    %1030 = vector.broadcast %cst_269 : f32 to vector<1x1xf32>
    %1031 = arith.divf %1029, %1030 : vector<1x1xf32>
    %1032 = vector.broadcast %1031 : vector<1x1xf32> to vector<1x32xf32>
    %1033 = arith.subf %1025, %1032 : vector<1x32xf32>
    %1034 = arith.mulf %1033, %1033 : vector<1x32xf32>
    %cst_270 = arith.constant dense<0.000000e+00> : vector<1xf32>
    %1035 = vector.multi_reduction <add>, %1034, %cst_270 [1] : vector<1x32xf32> to vector<1xf32>
    %1036 = vector.shape_cast %1035 : vector<1xf32> to vector<1x1xf32>
    %cst_271 = arith.constant 3.200000e+01 : f32
    %1037 = vector.broadcast %cst_271 : f32 to vector<1x1xf32>
    %1038 = arith.divf %1036, %1037 : vector<1x1xf32>
    %1039 = vector.broadcast %1031 : vector<1x1xf32> to vector<1x32xf32>
    %1040 = arith.subf %1025, %1039 : vector<1x32xf32>
    %cst_272 = arith.constant 9.99999974E-6 : f32
    %1041 = vector.broadcast %cst_272 : f32 to vector<1x1xf32>
    %1042 = arith.addf %1038, %1041 : vector<1x1xf32>
    %1043 = math.rsqrt %1042 : vector<1x1xf32>
    %1044 = vector.broadcast %1043 : vector<1x1xf32> to vector<1x32xf32>
    %1045 = arith.mulf %1040, %1044 : vector<1x32xf32>
    %1046 = arith.mulf %1045, %1026 : vector<1x32xf32>
    %1047 = arith.addf %1046, %1027 : vector<1x32xf32>
    %1048 = vector.shape_cast %1047 : vector<1x32xf32> to vector<1x1x32xf32>
    %c0_273 = arith.constant 0 : index
    %c0_274 = arith.constant 0 : index
    %c0_275 = arith.constant 0 : index
    %1049 = vector.load %arg5[%c0_273, %c0_274, %c0_275] : memref<1x1x32xf32, #tpu.memory_space<vmem>>, vector<1x1x32xf32>
    tpu.vector_store %arg5[%c0_273, %c0_274, %c0_275], %1048 {strides = array<i32>} : memref<1x1x32xf32, #tpu.memory_space<vmem>>, vector<1x1x32xf32>,
    return
  }
  func.func @transform_0(%arg0: i32) -> (i32, i32) {
    %c0_i32 = arith.constant 0 : i32
    %c0_i32_0 = arith.constant 0 : i32
    return %arg0, %c0_i32 : i32, i32
  }
  func.func @transform_1(%arg0: i32) -> (i32, i32) {
    %c0_i32 = arith.constant 0 : i32
    %c0_i32_0 = arith.constant 0 : i32
    %c0_i32_1 = arith.constant 0 : i32
    return %c0_i32, %c0_i32_0 : i32, i32
  }
  func.func @transform_2(%arg0: i32) -> (i32, i32) {
    %c0_i32 = arith.constant 0 : i32
    %c0_i32_0 = arith.constant 0 : i32
    %c0_i32_1 = arith.constant 0 : i32
    return %c0_i32, %c0_i32_0 : i32, i32
  }
  func.func @transform_3(%arg0: i32) -> (i32, i32, i32) {
    %c0_i32 = arith.constant 0 : i32
    %c0_i32_0 = arith.constant 0 : i32
    %c0_i32_1 = arith.constant 0 : i32
    %c0_i32_2 = arith.constant 0 : i32
    return %c0_i32, %c0_i32_0, %c0_i32_1 : i32, i32, i32
  }
  func.func @transform_4(%arg0: i32) -> (i32, i32, i32) {
    %c0_i32 = arith.constant 0 : i32
    %c0_i32_0 = arith.constant 0 : i32
    %c0_i32_1 = arith.constant 0 : i32
    return %arg0, %c0_i32, %c0_i32_0 : i32, i32, i32
  }
}

</mosaic_0001>

<bundles_post_ra>
// kernel: tpu_custom_call.1
= control target key start
LH: loop header
LB: loop body
LE: loop exit
PB: predicated region body
PF: predicated region fallthrough
CT: control target
= control target key end

     0   :  { %9 = vsyncpa [#allocation3], 0  ;;  %s6621_s0 = inlined_call_operand.vmem [shape: f32[16,3], index: 0, kind: input, shape index: {}]   ;;  %s6622_s1 = inlined_call_operand.hbm [shape: f32[28,128], index: 1, kind: input, shape index: {}]   ;;  %s6623_s2 = inlined_call_operand.hbm [shape: bf16[200,128], index: 2, kind: input, shape index: {}]   ;;  %s6624_s3 = inlined_call_operand.hbm [shape: bf16[4,224,128], index: 3, kind: input, shape index: {}]   ;;  %s6625_s4 = inlined_call_operand.hbm [shape: f32[2,1,32], index: 4, kind: output, shape index: {}]  }
   0x1   :  { %10 = vsyncpa [#allocation6], 0 }
   0x2   :  { %11 = vsyncpa [#allocation4], 0 }
   0x3   :  { %13 = vsyncpa [#allocation4 + $0x1], 0  ;;  %s5579_s15 = smov 0   ;;  %s5581_s16 = smov 0  }
   0x4   :  { %s5583_s17 = smov 0   ;;  %s5585_s18 = smov 0  }
   0x5 LB: > { %s5600_s19 = sadd.s32 4294967295, %s5518_s18   ;;  %s4435_s20 = sadd.s32 4294967294, %s5518_s18   ;;  %s5518_s18 = sphi %s5585_s18, %s6695_s18   ;;  %s5514_s17 = sphi %s5583_s17, %s6694_s17   ;;  %s5510_s16 = sphi %s5581_s16, %s6693_s16   ;;  %s5506_s15 = sphi %s5579_s15, %s6692_s15  }
   0x6   : > { %s5604_s21 = sadd.s32 1, %s5518_s18   ;;  %s115_s22 = sadd.s32 1, %s5514_s17 }
   0x7   : > { %s112_s23 = ssub.s32 %s5518_s18, %s5604_s21  ;;  %p125_p0 = scmp.ne.s32.totalorder %s5514_s17, %s5510_s16 }
   0x8   : > { %p113_p1 = scmp.eq.s32.totalorder %s112_s23, 0  ;;  %p126_p2 = scmp.eq.s32.totalorder %s5600_s19, 1 }
   0x9   : > { %p131_p3 = scmp.ne.s32.totalorder %s5510_s16, %s5506_s15  ;;  %p132_p4 = scmp.eq.s32.totalorder %s4435_s20, 1 }
   0xa   : > { %s5615_s24 = scalar_select %p113_p1, %s5514_s17, %s115_s22  }
   0xb   : > { %p5617_p5 = por %p126_p2, %p125_p0  ;;  %p5621_p6 = por %p132_p4, %p131_p3 }
   0xc   : > { %p4436_p7 = scmp.ge.s32.totalorder %s5518_s18, 1  ;;  %p139_p8 = scmp.lt.s32.totalorder %s5518_s18, 3 }
   0xd   : > { %p4894_p9 = scmp.eq.s32.totalorder %s5600_s19, 0  ;;  %s164_s30 = sshll.u32 %s6623_s2, 4  ;;  %s165_s30 = int_to_ptr.hbm [resolvable:$true] %s164_s30 }
   0xe   : > { %p5628_p10 = pnand %p4436_p7, %p139_p8  ;;  %s5520_s5 = smov [#allocation5]  }
   0xf   : > { %s166_s6 = sshll.u32 %s5520_s5, 4  ;;  %s150_s10 = sshll.u32 %s6622_s1, 4  ;;  %s167_s6 = int_to_ptr.vmem [resolvable:$true] %s166_s6  ;;  %s151_s10 = int_to_ptr.hbm [resolvable:$true] %s150_s10 }
  0x10   : > { %p4880_p11 = pneg %p5628_p10  ;;  %s5521_s11 = smov 64  }
  0x11   : > { %s5522_s12 = smov 4   ;;  %s5523_s13 = smov [#allocation2]  }
  0x12   : > { %p5639_p12 = pnand %p4894_p9, %p4880_p11  ;;  %s152_s14 = sshll.u32 %s5523_s13, 4  ;;  %s153_s14 = int_to_ptr.vmem [resolvable:$true] %s152_s14 }
  0x13   : > { %s5524_s20 = smov 128   ;;  %s5525_s22 = smov 8  }
  0x14   : > { %4886 = dma.hbm_to_vmem [thread:$0]  (!%p5639_p12), %s165_s30, 1600, %s167_s6, [#allocation6], %s5521_s11, %s5521_s11, %s5522_s12  }
  0x15   : > { %4883 = dma.hbm_to_vmem [thread:$0]  (!%p5639_p12), %s151_s10, 512, %s153_s14, [#allocation3], %s5524_s20, %s5524_s20, %s5525_s22  }
  0x16   : > { %s178_s29 = sshll.u32 %s6624_s3, 4  ;;  %s5526_s5 = smov [#allocation7]   ;;  %s179_s29 = int_to_ptr.hbm [resolvable:$true] %s178_s29 }
  0x17   : > { %s180_s8 = sshll.u32 %s5526_s5, 4  ;;  %203 = sbr.rel (%p5628_p10) target bundleno = 11920 (0x2e90), region = 36  ;;  %s181_s8 = int_to_ptr.vmem [resolvable:$true] %s180_s8 }
  0x18   : > { %4889 = dma.hbm_to_vmem [thread:$0]  (!%p5639_p12), %s179_s29, 7168, %s181_s8, [#allocation6], %s5521_s11, %s5521_s11, %s5522_s12  }
  0x1c   : > { %5493 = dma.done.wait (%p4894_p9), [#allocation3], 512  }
  0x1d   : > { %5495 = vsyncadd (%p4894_p9), [#allocation3], 4294966784 }
  0x1e   : > { %5497 = dma.done.wait (%p4894_p9), [#allocation6], 8768  }
  0x1f   : > { %5499 = vsyncadd (%p4894_p9), [#allocation6], 4294958528  ;;  %vm254_vm0 = vcmask 1040384   ;;  %p238_p13 = scmp.lt.s32.totalorder %s5600_s19, 1  ;;  %vm255_vm1 = vcmask 1041408   ;;  %v5527_v0 = vmov 65535  }
  0x20   : > { %v256_v1 = vsel %vm254_vm0, 4294967295, %v5527_v0  ;;  %v249_v3 = vld [vmem:[#allocation5] sm:$0x3]  ;;  %vm250_vm2 = vcmask 23552   ;;  %vm276_vm3 = vcmask 523264   ;;  %v5528_v13 = vmov 64.0  }
  0x21   : > { %s239_s27 = scalar_select %p238_p13, %s5600_s19, 1  ;;  %v257_v2 = vsel %vm255_vm1, %v256_v1, 0  ;;  %v5672_v7 = vld [vmem:[#allocation2] sm:$0xff]  ;;  %5073 = vrcp.f32 %v5528_v13  ;;  %v4800_v26 = vld [vmem:[#allocation5 + $0x14] sm:$0xff]  ;;  %v4799_v27 = vld [vmem:[#allocation5 + $0xc] sm:$0xff]  ;;  %v5529_v50 = vmov 128.0  }
  0x22   : > { %v259_v5 = vand.u32 %v257_v2, %v249_v3  ;;  %v274_v8 = vperm.slane %v5672_v7, 0  ;;  %v4801_v25 = vld [vmem:[#allocation5 + $0x1c] sm:$0xff]  ;;  %v4798_v28 = vld [vmem:[#allocation5 + $0x4] sm:$0xff]  ;;  %v306_v38 = vperm.slane %v5672_v7, 1  ;;  %v308_v41 = vperm.slane %v5672_v7, 2  ;;  %v4808_v62 = vld [vmem:[#allocation5 + $0x54] sm:$0xff] }
  0x23   : > { %s4445_s30 = sshll.u32 %s239_s27, 3  ;;  %352 = vmatpush.bf16.msra.mxu2 %v4801_v25  ;;  %v320_v46 = vperm.slane %v5672_v7, 3  ;;  %v4809_v61 = vld [vmem:[#allocation5 + $0x5c] sm:$0xff]  ;;  %v4807_v63 = vld [vmem:[#allocation5 + $0x4c] sm:$0xff]  ;;  %v4806_v1 = vld [vmem:[#allocation5 + $0x44] sm:$0xff]  ;;  %vm473_vm12 = vcmask 261120  }
  0x24   : > { %s241_s9 = scalar_lea.vmem %s6621_s0, %s4445_s30  ;;  %268 = vmatpush.bf16.msra.mxu0 %v259_v5  ;;  %v4805_v2 = vld [vmem:[#allocation5 + $0x3c] sm:$0xff]  ;;  %v4804_v3 = vld [vmem:[#allocation5 + $0x34] sm:$0xff]  ;;  %v4802_v5 = vld [vmem:[#allocation5 + $0x24] sm:$0xff]  ;;  %vm542_vm13 = vcmask 253952   ;;  %s5531_s10 = smov 96  }
  0x25   : > { %v247_v4 = vld [vmem:[%s241_s9] sm:$0xff]  ;;  %s6654_s11 = smov 124   ;;  %s6656_s12 = smov 64  }
  0x26   : > { %v248_v6 = vpack.c.bf16 %v247_v4, %v247_v4  ;;  %v4803_v4 = vld [vmem:[#allocation5 + $0x2c] sm:$0xff]  ;;  %s6657_s13 = smov 120   ;;  %s6650_s14 = smov 112  }
  0x27   : > { %v5074_v14 = vpop.eup %5073  ;;  %353 = vmatpush.bf16.msra.mxu2 %v4800_v26  ;;  %s6648_s20 = smov 104   ;;  %s6655_s22 = smov 116  }
  0x28   : > { %4446 = vmatmul.msk.bf16.vlgmr.msra.gmra.mxu0 %vm250_vm2, %v248_v6  ;;  %v281_v15 = vmul.f32 64.0, %v5074_v14  ;;  %vm285_vm4 = vweird.f32 %v5074_v14  ;;  %s6653_s23 = smov 108   ;;  %s6652_s28 = smov 100  }
  0x29   : > { %s6646_s29 = smov 56   ;;  %s6644_s5 = smov 52  }
  0x2a   : > { %v282_v16 = vsub.f32 1.0, %v281_v15  ;;  %s6642_s8 = smov 60   ;;  %s6640_s27 = smov 48  }
  0x2b   : > { %354 = vmatpush.bf16.msra.mxu2 %v4799_v27  ;;  %s6632_s30 = smov 44   ;;  %s6626_s6 = smov 36  }
  0x2c   : > { %v283_v17 = vmul.f32 %v5074_v14, %v282_v16  ;;  %v388_v16 = vperm.slane %v5672_v7, 4  ;;  %s6634_s7 = smov 40   ;;  %s6630_s9 = smov 4  }
  0x2e   : > { %v284_v18 = vadd.f32 %v5074_v14, %v283_v17 }
  0x2f   : > { %355 = vmatpush.bf16.msra.mxu2 %v4798_v28 }
  0x30   : > { %v286_v19 = vsel %vm285_vm4, %v5074_v14, %v284_v18 }
  0x33   : > { %458 = vmatpush.bf16.msrb.mxu2 %v4809_v61 }
  0x37   : > { %459 = vmatpush.bf16.msrb.mxu2 %v4808_v62 }
  0x3b   : > { %460 = vmatpush.bf16.msrb.mxu2 %v4807_v63 }
  0x3f   : > { %461 = vmatpush.bf16.msrb.mxu2 %v4806_v1 }
  0x43   : > { %462 = vmatpush.bf16.msrb.mxu2 %v4805_v2 }
  0x47   : > { %463 = vmatpush.bf16.msrb.mxu2 %v4804_v3 }
  0x4b   : > { %464 = vmatpush.bf16.msrb.mxu2 %v4803_v4 }
  0x4f   : > { %465 = vmatpush.bf16.msrb.mxu2 %v4802_v5 }
  0xa5   : > { %v270_v9 = vpop.f32.mrf.mxu0 }
  0xa6   : > { %v275_v10 = vadd.f32 %v274_v8, %v270_v9 }
  0xa8   : > { %v277_v11 = vsel %vm276_vm3, %v275_v10, 0.0 }
  0xa9   : > { %278 = vadd.xlane.f32.xlu0 %v277_v11 }
  0xad   : > { %v272_v12 = vpop.f32.mrf.mxu0 }
 0x11c   : > { %v279_v20 = vpop.xlane.xlu0 %278 }
 0x11d   : > { %v287_v21 = vmul.f32 %v286_v19, %v279_v20 }
 0x11f   : > { %v288_v22 = vsub.f32 %v275_v10, %v287_v21 }
 0x121   : > { %v289_v23 = vmul.f32 %v288_v22, %v288_v22 }
 0x123   : > { %v290_v24 = vsel %vm276_vm3, %v289_v23, 0.0 }
 0x124   : > { %291 = vadd.xlane.f32.xlu0 %v290_v24  ;;  %v471_v24 = vperm.slane %v5672_v7, 6 }
 0x197   : > { %v292_v29 = vpop.xlane.xlu0 %291 }
 0x198   : > { %v293_v30 = vmul.f32 %v292_v29, %v286_v19  ;;  %v390_v19 = vperm.slane %v5672_v7, 5  ;;  %v5530_v29 = vmov 32.0  }
 0x19a   : > { %v294_v31 = vadd.f32 1e-05, %v293_v30  ;;  %v5685_v30 = vld [vmem:[#allocation2 + $0x8] sm:$0xff] }
 0x19c   : > { %5075 = vrsqrt.f32 %v294_v31  ;;  %vm301_vm6 = vweird.f32 %v294_v31 }
 0x19d   : > { %5077 = vrcp.f32 %v5529_v50 }
 0x1a2   : > { %v5076_v32 = vpop.eup %5075 }
 0x1a3   : > { %v296_v33 = vmul.f32 %v5076_v32, %v294_v31  ;;  %vm302_vm5 = vweird.f32 %v5076_v32  ;;  %v5078_v51 = vpop.eup %5077  ;;  %v5688_v31 = vrot.slane %v5685_v30, 1 }
 0x1a4   : > { %vm303_vm7 = vmor %vm301_vm6, %vm302_vm5  ;;  %v364_v52 = vmul.f32 128.0, %v5078_v51  ;;  %vm368_vm8 = vweird.f32 %v5078_v51 }
 0x1a5   : > { %v297_v34 = vmul.f32 %v5076_v32, %v296_v33  ;;  %v543_v33 = vsel %vm542_vm13, %v5688_v31, 0.0 }
 0x1a6   : > { %v365_v53 = vsub.f32 1.0, %v364_v52 }
 0x1a7   : > { %v298_v35 = vmul.f32 0.5, %v297_v34 }
 0x1a8   : > { %v366_v54 = vmul.f32 %v5078_v51, %v365_v53  ;;  %v503_v53 = vperm.slane %v5672_v7, 7 }
 0x1a9   : > { %v299_v36 = vsub.f32 1.5, %v298_v35 }
 0x1aa   : > { %v367_v55 = vadd.f32 %v5078_v51, %v366_v54 }
 0x1ab   : > { %v300_v37 = vmul.f32 %v5076_v32, %v299_v36 }
 0x1ac   : > { %v369_v56 = vsel %vm368_vm8, %v5078_v51, %v367_v55 }
 0x1ad   : > { %v304_v39 = vsel %vm303_vm7, %v5076_v32, %v300_v37 }
 0x1ae   : > { %v305_v40 = vmul.f32 %v304_v39, %v288_v22 }
 0x1b0   : > { %v307_v42 = vmul.f32 %v306_v38, %v305_v40 }
 0x1b2   : > { %v309_v43 = vadd.f32 %v308_v41, %v307_v42 }
 0x1b4   : > { %v310_v44 = vmax.f32 %v309_v43, 0.0 }
 0x1b6   : > { %v311_v45 = vpack.c.bf16 %v310_v44, %v310_v44 }
 0x1b8   : > { %4463 = vmatmul.msk.bf16.vlgmr.msra.gmra.mxu2 %vm276_vm3, %v311_v45 }
 0x23b   : > { %v357_v47 = vpop.f32.mrf.mxu2 }
 0x23c   : > { %v358_v48 = vadd.f32 %v357_v47, %v320_v46 }
 0x23e   : > { %361 = vadd.xlane.f32.xlu1 %v358_v48 }
 0x243   : > { %v359_v49 = vpop.f32.mrf.mxu2 }
 0x2b1   : > { %v362_v57 = vpop.xlane.xlu1 %361 }
 0x2b2   : > { %v370_v58 = vmul.f32 %v369_v56, %v362_v57  ;;  %v505_v57 = vperm.slane %v5685_v30, 0 }
 0x2b4   : > { %v371_v59 = vsub.f32 %v358_v48, %v370_v58 }
 0x2b6   : > { %v372_v60 = vmul.f32 %v371_v59, %v371_v59 }
 0x2b8   : > { %373 = vadd.xlane.f32.xlu1 %v372_v60 }
 0x2c0   : > { %544 = vadd.xlane.f32.xlu1 %v543_v33 }
 0x32b   : > { %v374_v6 = vpop.xlane.xlu1 %373 }
 0x32c   : > { %v375_v8 = vmul.f32 %v374_v6, %v369_v56 }
 0x32e   : > { %v376_v9 = vadd.f32 1e-05, %v375_v8 }
 0x330   : > { %5079 = vrsqrt.f32 %v376_v9  ;;  %vm383_vm10 = vweird.f32 %v376_v9 }
 0x331   : > { %5081 = vrcp.f32 %v5530_v29  ;;  %v584_v29 = vperm.slane %v5685_v30, 4 }
 0x333   : > { %v545_v55 = vpop.xlane.xlu1 %544 }
 0x336   : > { %v5080_v10 = vpop.eup %5079 }
 0x337   : > { %v378_v11 = vmul.f32 %v5080_v10, %v376_v9  ;;  %vm384_vm9 = vweird.f32 %v5080_v10  ;;  %v5082_v32 = vpop.eup %5081 }
 0x338   : > { %vm385_vm11 = vmor %vm383_vm10, %vm384_vm9  ;;  %v478_v34 = vmul.f32 32.0, %v5082_v32  ;;  %vm482_vm14 = vweird.f32 %v5082_v32  ;;  %vm671_vm9 = vcmask 31744   ;;  %vm694_vm10 = vcmask 72704  }
 0x339   : > { %v379_v12 = vmul.f32 %v5080_v10, %v378_v11  ;;  %v4811_v11 = vld [vmem:[#allocation7 + $0x8] sm:$0xff] }
 0x33a   : > { %v479_v35 = vsub.f32 1.0, %v478_v34  ;;  %612 = vmatpush.bf16.msra.mxu3 %v4811_v11 }
 0x33b   : > { %v380_v13 = vmul.f32 0.5, %v379_v12  ;;  %v4810_v12 = vld [vmem:[#allocation7] sm:$0xff] }
 0x33c   : > { %v480_v36 = vmul.f32 %v5082_v32, %v479_v35 }
 0x33d   : > { %v381_v14 = vsub.f32 1.5, %v380_v13 }
 0x33e   : > { %v481_v37 = vadd.f32 %v5082_v32, %v480_v36  ;;  %613 = vmatpush.bf16.msra.mxu3 %v4810_v12  ;;  %v587_v36 = vperm.slane %v5685_v30, 5 }
 0x33f   : > { %v382_v15 = vmul.f32 %v5080_v10, %v381_v14 }
 0x340   : > { %v5692_v38 = vsel %vm482_vm14, %v5082_v32, %v481_v37  ;;  %vm724_vm14 = vcmask 1043456  }
 0x341   : > { %v386_v17 = vsel %vm385_vm11, %v5080_v10, %v382_v15  ;;  %vm698_vm11 = vcmask 65536   ;;  %v726_v12 = vsel %vm724_vm14, 4294967295, %v5527_v0 }
 0x342   : > { %v387_v18 = vmul.f32 %v386_v17, %v371_v59  ;;  %v547_v59 = vmul.f32 %v545_v55, %v5692_v38 }
 0x344   : > { %v389_v20 = vmul.f32 %v388_v16, %v387_v18  ;;  %v549_v62 = vsub.f32 %v5688_v31, %v547_v59 }
 0x346   : > { %v391_v21 = vadd.f32 %v390_v19, %v389_v20  ;;  %v551_v1 = vmul.f32 %v549_v62, %v549_v62 }
 0x348   : > { %v392_v22 = vmax.f32 %v391_v21, 0.0  ;;  %v555_v7 = vsel %vm542_vm13, %v551_v1, 0.0 }
 0x34a   : > { %v393_v23 = vpack.c.bf16 %v392_v22, %v392_v22 }
 0x34c   : > { %466 = vmatmul.bf16.vlgmr.msrb.gmra.mxu2 %v393_v23 }
 0x3cf   : > { %v467_v25 = vpop.f32.mrf.mxu2 }
 0x3d0   : > { %v472_v26 = vadd.f32 %v471_v24, %v467_v25 }
 0x3d2   : > { %v474_v27 = vsel %vm473_vm12, %v472_v26, 0.0 }
 0x3d3   : > { %475 = vadd.xlane.f32.xlu2 %v474_v27 }
 0x3d7   : > { %v469_v28 = vpop.f32.mrf.mxu2 }
 0x446   : > { %v476_v39 = vpop.xlane.xlu2 %475 }
 0x447   : > { %v484_v40 = vmul.f32 %v5692_v38, %v476_v39 }
 0x449   : > { %v485_v41 = vsub.f32 %v472_v26, %v484_v40 }
 0x44b   : > { %v486_v42 = vmul.f32 %v485_v41, %v485_v41 }
 0x44d   : > { %v487_v43 = vsel %vm473_vm12, %v486_v42, 0.0 }
 0x44e   : > { %488 = vadd.xlane.f32.xlu2 %v487_v43 }
 0x4c1   : > { %v489_v44 = vpop.xlane.xlu2 %488 }
 0x4c2   : > { %v490_v45 = vmul.f32 %v489_v44, %v5692_v38 }
 0x4c4   : > { %v491_v46 = vadd.f32 1e-05, %v490_v45 }
 0x4c6   : > { %5083 = vrsqrt.f32 %v491_v46  ;;  %vm498_vm0 = vweird.f32 %v491_v46 }
 0x4cc   : > { %v5084_v47 = vpop.eup %5083 }
 0x4cd   : > { %v493_v48 = vmul.f32 %v5084_v47, %v491_v46  ;;  %vm499_vm15 = vweird.f32 %v5084_v47 }
 0x4ce   : > { %vm500_vm2 = vmor %vm498_vm0, %vm499_vm15  ;;  %vm725_vm15 = vcmask 1044480   ;;  %vm1302_vm0 = vcmask 64512  }
 0x4cf   : > { %v494_v49 = vmul.f32 %v5084_v47, %v493_v48 }
 0x4d1   : > { %v495_v50 = vmul.f32 0.5, %v494_v49 }
 0x4d3   : > { %v496_v51 = vsub.f32 1.5, %v495_v50 }
 0x4d5   : > { %v497_v52 = vmul.f32 %v5084_v47, %v496_v51 }
 0x4d7   : > { %v501_v54 = vsel %vm500_vm2, %v5084_v47, %v497_v52  ;;  %vm1305_vm2 = vcmask 97280  }
 0x4d8   : > { %v502_v56 = vmul.f32 %v501_v54, %v485_v41 }
 0x4da   : > { %v504_v58 = vmul.f32 %v503_v53, %v502_v56 }
 0x4dc   : > { %v506_v60 = vadd.f32 %v505_v57, %v504_v58 }
 0x4de   : > { %v5700_v61 = vmax.f32 %v506_v60, 0.0 }
 0x4e0   : > { %v539_v63 = vsel %vm473_vm12, %v5700_v61, 0.0 }
 0x4e1   : > { %540 = vadd.xlane.f32.xlu0 %v539_v63 }
 0x4e9   : > { %556 = vadd.xlane.f32.xlu0 %v555_v7 }
 0x554   : > { %v541_v2 = vpop.xlane.xlu0 %540 }
 0x555   : > { %v546_v3 = vmul.f32 %v541_v2, %v5692_v38 }
 0x557   : > { %v548_v4 = vsub.f32 %v5700_v61, %v546_v3 }
 0x559   : > { %v550_v5 = vmul.f32 %v548_v4, %v548_v4 }
 0x55b   : > { %v552_v6 = vsel %vm473_vm12, %v550_v5, 0.0 }
 0x55c   : > { %553 = vadd.xlane.f32.xlu2 %v552_v6  ;;  %v557_v8 = vpop.xlane.xlu0 %556 }
 0x55d   : > { %v559_v9 = vmul.f32 %v557_v8, %v5692_v38 }
 0x55f   : > { %v561_v10 = vadd.f32 1e-05, %v559_v9 }
 0x561   : > { %5085 = vrsqrt.f32 %v561_v10  ;;  %vm578_vm3 = vweird.f32 %v561_v10 }
 0x567   : > { %v5086_v13 = vpop.eup %5085 }
 0x568   : > { %v573_v14 = vmul.f32 %v5086_v13, %v561_v10  ;;  %vm579_vm4 = vweird.f32 %v5086_v13 }
 0x569   : > { %vm580_vm5 = vmor %vm578_vm3, %vm579_vm4  ;;  %vm1308_vm3 = vcmask 130048   ;;  %vm1311_vm4 = vcmask 162816  }
 0x56a   : > { %v574_v15 = vmul.f32 %v5086_v13, %v573_v14 }
 0x56c   : > { %v575_v19 = vmul.f32 0.5, %v574_v15 }
 0x56e   : > { %v576_v20 = vsub.f32 1.5, %v575_v19 }
 0x570   : > { %v577_v22 = vmul.f32 %v5086_v13, %v576_v20 }
 0x572   : > { %v581_v25 = vsel %vm580_vm5, %v5086_v13, %v577_v22  ;;  %v5738_v13 = vsel %vm725_vm15, %v726_v12, 0  ;;  %vm6639_vm5 = vcmask 195584  }
 0x573   : > { %v583_v28 = vmul.f32 %v581_v25, %v549_v62 }
 0x575   : > { %v586_v35 = vmul.f32 %v584_v29, %v583_v28 }
 0x577   : > { %v589_v40 = vadd.f32 %v587_v36, %v586_v35 }
 0x5cf   : > { %v554_v16 = vpop.xlane.xlu2 %553 }
 0x5d0   : > { %v558_v17 = vmul.f32 %v554_v16, %v5692_v38 }
 0x5d2   : > { %v560_v18 = vadd.f32 1e-05, %v558_v17 }
 0x5d4   : > { %5087 = vrsqrt.f32 %v560_v18  ;;  %vm568_vm7 = vweird.f32 %v560_v18 }
 0x5da   : > { %v5088_v21 = vpop.eup %5087 }
 0x5db   : > { %v563_v23 = vmul.f32 %v5088_v21, %v560_v18  ;;  %vm569_vm6 = vweird.f32 %v5088_v21 }
 0x5dc   : > { %vm570_vm8 = vmor %vm568_vm7, %vm569_vm6  ;;  %vm6638_vm6 = vcmask 228352  }
 0x5dd   : > { %v564_v24 = vmul.f32 %v5088_v21, %v563_v23 }
 0x5df   : > { %v565_v26 = vmul.f32 0.5, %v564_v24 }
 0x5e1   : > { %v566_v27 = vsub.f32 1.5, %v565_v26 }
 0x5e3   : > { %v567_v32 = vmul.f32 %v5088_v21, %v566_v27 }
 0x5e5   : > { %v571_v33 = vsel %vm570_vm8, %v5088_v21, %v567_v32 }
 0x5e6   : > { %v582_v34 = vmul.f32 %v571_v33, %v548_v4 }
 0x5e8   : > { %v585_v37 = vmul.f32 %v584_v29, %v582_v34 }
 0x5ea   : > { %v588_v39 = vadd.f32 %v587_v36, %v585_v37 }
 0x5ec   : > { %v590_v41 = vpack.c.bf16 %v589_v40, %v588_v39 }
 0x5ee   : > { %4504 = vmatmul.msk.bf16.vlgmr.msra.gmra.mxu3 %vm473_vm12, %v590_v41 }
 0x671   : > { %v615_v42 = vpop.f32.mrf.mxu3 }
 0x672   : > { %622 = vrot.lane.b32.xlu1 %v615_v42, %s5531_s10  ;;  %v664_v47 = vpack.c.bf16 %v615_v42, %v615_v42 }
 0x674   : > { %v668_v50 = vunpack.c.l.b16 %v664_v47 }
 0x679   : > { %v617_v43 = vpop.f32.mrf.mxu3 }
 0x67a   : > { %624 = vrot.lane.b32.xlu2 %v617_v43, %s5531_s10  ;;  %v665_v46 = vpack.c.bf16 %v617_v43, %v617_v43 }
 0x67c   : > { %v669_v48 = vunpack.c.l.b16 %v665_v46 }
 0x67e   : > { %v5717_v53 = vpack.c.b16 %v669_v48, %v668_v50 }
 0x6d4   : > { %v625_v45 = vpop.permute.xlu2 %624 }
 0x6e4   : > { %v623_v44 = vpop.permute.xlu1 %622 }
 0x6e5   : > { %628 = vxpose.xlu0.b32.start [1/2] (short) (narrow) %v623_v44, 32 }
 0x6ed   : > { %629 = vxpose.xlu0.b32.end [2/2] (short) (narrow) %v625_v45, 32 }
 0x789   : > { %v644_v30 = vpop.trf.xlu0 }
 0x78a   : > { %v660_v49 = vpack.c.bf16 %v644_v30, %v644_v30 }
 0x78c   : > { %v676_v51 = vsel %vm255_vm1, %v660_v49, 0  ;;  %v748_v52 = vunpack.c.l.b16 %v660_v49 }
 0x78d   : > { %685 = vmatpush.bf16.msrb.mxu0 %v676_v51 }
 0x78e   : > { %v749_v54 = vpack.c.b16 %v748_v52, %v748_v52 }
 0x790   : > { %4505 = vmatmul.msk.bf16.vlgmr.msrb.gmra.mxu0 %vm671_vm9, %v5717_v53  ;;  %v750_v55 = vrot.slane %v749_v54, 2 }
 0x791   : > { %v645_v16 = vpop.trf.xlu0 }
 0x792   : > { %v755_v56 = vsel %vm255_vm1, %v750_v55, 0  ;;  %v661_v0 = vpack.c.bf16 %v645_v16, %v645_v16 }
 0x793   : > { %764 = vmatpush.bf16.msra.mxu1 %v755_v56 }
 0x794   : > { %v890_v17 = vunpack.c.l.b16 %v661_v0  ;;  %v824_v20 = vsel %vm255_vm1, %v661_v0, 0 }
 0x796   : > { %v891_v18 = vpack.c.b16 %v890_v17, %v890_v17 }
 0x798   : > { %v892_v22 = vrot.slane %v891_v18, 2 }
 0x799   : > { %v646_v19 = vpop.trf.xlu0 }
 0x79a   : > { %v662_v21 = vpack.c.bf16 %v646_v19, %v646_v19  ;;  %v897_v24 = vsel %vm255_vm1, %v892_v22, 0 }
 0x79b   : > { %906 = vmatpush.bf16.msra.mxu2 %v897_v24 }
 0x79c   : > { %v1032_v23 = vunpack.c.l.b16 %v662_v21  ;;  %v966_v50 = vsel %vm255_vm1, %v662_v21, 0 }
 0x79e   : > { %v1033_v25 = vpack.c.b16 %v1032_v23, %v1032_v23 }
 0x7a0   : > { %v1034_v26 = vrot.slane %v1033_v25, 2 }
 0x7a1   : > { %v647_v28 = vpop.trf.xlu0 }
 0x7a2   : > { %v1039_v27 = vsel %vm255_vm1, %v1034_v26, 0  ;;  %v663_v29 = vpack.c.bf16 %v647_v28, %v647_v28 }
 0x7a3   : > { %1048 = vmatpush.bf16.msrb.mxu2 %v1039_v27 }
 0x7a4   : > { %v1174_v32 = vunpack.c.l.b16 %v663_v29  ;;  %v1108_v52 = vsel %vm255_vm1, %v663_v29, 0 }
 0x7a6   : > { %v1175_v35 = vpack.c.b16 %v1174_v32, %v1174_v32 }
 0x7a8   : > { %v1176_v40 = vrot.slane %v1175_v35, 2 }
 0x7aa   : > { %v1181_v45 = vsel %vm255_vm1, %v1176_v40, 0 }
 0x80d   : > { %v687_v57 = vpop.f32.mrf.mxu0 }
 0x80e   : > { %v692_v58 = vmul.f32 0.5, %v687_v57 }
 0x810   : > { %v695_v59 = vsel %vm694_vm10, %v692_v58, -inf }
 0x811   : > { %696 = vmax.xlane.f32.xlu2 %v695_v59 }
 0x815   : > { %v689_v60 = vpop.f32.mrf.mxu0 }
 0x816   : > { %v693_v62 = vmul.f32 0.5, %v689_v60 }
 0x818   : > { %v699_v63 = vsel %vm698_vm11, %v693_v62, -inf }
 0x819   : > { %700 = vmax.xlane.f32.xlu1 %v699_v63 }
 0x829   : > { %745 = vrot.lane.b32.xlu2 %v5717_v53, %s6654_s11 }
 0x832   : > { %719 = vrot.lane.b32.xlu1 %v5717_v53, %s6656_s12 }
 0x83a   : > { %818 = vrot.lane.b32.xlu1 %v5717_v53, %s6657_s13 }
 0x842   : > { %960 = vrot.lane.b32.xlu1 %v5717_v53, %s6650_s14 }
 0x84a   : > { %1102 = vrot.lane.b32.xlu1 %v5717_v53, %s6648_s20 }
 0x884   : > { %v697_v1 = vpop.xlane.xlu2 %696 }
 0x885   : > { %v702_v7 = vsub.f32 %v692_v58, %v697_v1 }
 0x887   : > { %v704_v2 = vmul.f32 1.442695, %v702_v7 }
 0x889   : > { %5089 = vpow2.f32 %v704_v2 }
 0x88c   : > { %v746_v3 = vpop.permute.xlu2 %745  ;;  %v701_v4 = vpop.xlane.xlu1 %700 }
 0x88d   : > { %v703_v5 = vsub.f32 %v693_v62, %v701_v4  ;;  %4507 = vmatmul.msk.bf16.vlgmr.msra.gmra.mxu1 %vm671_vm9, %v746_v3 }
 0x88f   : > { %v5090_v6 = vpop.eup %5089  ;;  %v706_v8 = vmul.f32 1.442695, %v703_v5 }
 0x890   : > { %v708_v9 = vsel %vm694_vm10, %v5090_v6, 0.0 }
 0x891   : > { %5091 = vpow2.f32 %v706_v8  ;;  %709 = vadd.xlane.f32.xlu0 %v708_v9 }
 0x897   : > { %v5092_v10 = vpop.eup %5091 }
 0x898   : > { %v711_v11 = vsel %vm698_vm11, %v5092_v10, 0.0 }
 0x899   : > { %712 = vadd.xlane.f32.xlu2 %v711_v11 }
 0x8a4   : > { %v720_v14 = vpop.permute.xlu1 %719 }
 0x8a5   : > { %v729_v15 = vand.u32 %v5738_v13, %v720_v14 }
 0x8a7   : > { %738 = vmatpush.bf16.msrb.mxu3 %v729_v15 }
 0x8ab   : > { %833 = vmatpush.bf16.msra.mxu3 %v824_v20 }
 0x8ac   : > { %v819_v54 = vpop.permute.xlu1 %818 }
 0x8b1   : > { %887 = vrot.lane.b32.xlu2 %v5717_v53, %s6655_s22 }
 0x8b4   : > { %v961_v56 = vpop.permute.xlu1 %960 }
 0x8b9   : > { %1029 = vrot.lane.b32.xlu2 %v5717_v53, %s6653_s23 }
 0x8bc   : > { %v1103_v57 = vpop.permute.xlu1 %1102 }
 0x8c1   : > { %1171 = vrot.lane.b32.xlu2 %v5717_v53, %s6652_s28 }
 0x904   : > { %v710_v33 = vpop.xlane.xlu0 %709 }
 0x905   : > { %5093 = vrcp.f32 %v710_v33 }
 0x90a   : > { %v766_v34 = vpop.f32.mrf.mxu1 }
 0x90b   : > { %v771_v36 = vmul.f32 0.5, %v766_v34  ;;  %v5094_v41 = vpop.eup %5093 }
 0x90c   : > { %v713_v37 = vpop.xlane.xlu2 %712  ;;  %v716_v46 = vmul.f32 %v5094_v41, %v5090_v6 }
 0x90d   : > { %5095 = vrcp.f32 %v713_v37  ;;  %v773_v39 = vsel %vm694_vm10, %v771_v36, -inf }
 0x90e   : > { %774 = vmax.xlane.f32.xlu1 %v773_v39 }
 0x912   : > { %v768_v42 = vpop.f32.mrf.mxu1 }
 0x913   : > { %v5096_v43 = vpop.eup %5095  ;;  %v5751_v44 = vmul.f32 0.5, %v768_v42 }
 0x914   : > { %v717_v47 = vmul.f32 %v5096_v43, %v5092_v10  ;;  %v888_v30 = vpop.permute.xlu2 %887 }
 0x915   : > { %4511 = vmatmul.msk.bf16.vlgmr.msra.gmra.mxu2 %vm671_vm9, %v888_v30  ;;  %v776_v48 = vsel %vm698_vm11, %v5751_v44, -inf }
 0x916   : > { %777 = vmax.xlane.f32.xlu2 %v776_v48  ;;  %v718_v49 = vpack.c.bf16 %v717_v47, %v716_v46  ;;  %1190 = vmatpush.bf16.msra.mxu2 %v1181_v45 }
 0x918   : > { %4506 = vmatmul.msk.bf16.vlgmr.msrb.gmra.mxu3 %vm694_vm10, %v718_v49 }
 0x919   : > { %975 = vmatpush.bf16.msrb.mxu3 %v966_v50 }
 0x91c   : > { %v1030_v51 = vpop.permute.xlu2 %1029 }
 0x924   : > { %v1172_v55 = vpop.permute.xlu2 %1171 }
 0x925   : > { %4515 = vmatmul.msk.bf16.vlgmr.msrb.gmra.mxu2 %vm671_vm9, %v1030_v51 }
 0x928   : > { %4509 = vmatmul.msk.bf16.vlgmr.msra.gmra.mxu3 %vm671_vm9, %v819_v54 }
 0x929   : > { %1117 = vmatpush.bf16.msra.mxu3 %v1108_v52 }
 0x935   : > { %4519 = vmatmul.msk.bf16.vlgmr.msra.gmra.mxu2 %vm671_vm9, %v1172_v55 }
 0x938   : > { %4513 = vmatmul.msk.bf16.vlgmr.msrb.gmra.mxu3 %vm671_vm9, %v961_v56 }
 0x948   : > { %4517 = vmatmul.msk.bf16.vlgmr.msra.gmra.mxu3 %vm671_vm9, %v1103_v57 }
 0x981   : > { %v775_v62 = vpop.xlane.xlu1 %774 }
 0x982   : > { %v779_v7 = vsub.f32 %v771_v36, %v775_v62 }
 0x984   : > { %v781_v3 = vmul.f32 1.442695, %v779_v7 }
 0x986   : > { %5097 = vpow2.f32 %v781_v3 }
 0x989   : > { %v778_v19 = vpop.xlane.xlu2 %777 }
 0x98a   : > { %v780_v20 = vsub.f32 %v5751_v44, %v778_v19 }
 0x98c   : > { %v5768_v8 = vpop.eup %5097  ;;  %v783_v21 = vmul.f32 1.442695, %v780_v20 }
 0x98d   : > { %v785_v12 = vsel %vm694_vm10, %v5768_v8, 0.0 }
 0x98e   : > { %5099 = vpow2.f32 %v783_v21 }
 0x994   : > { %v5790_v23 = vpop.eup %5099 }
 0x995   : > { %v788_v25 = vsel %vm698_vm11, %v5790_v23, 0.0 }
 0x998   : > { %v908_v58 = vpop.f32.mrf.mxu2 }
 0x999   : > { %v913_v59 = vmul.f32 0.5, %v908_v58 }
 0x99b   : > { %v915_v60 = vsel %vm694_vm10, %v913_v59, -inf  ;;  %v5788_v22 = vpop.f32.mrf.mxu3 }
 0x99c   : > { %916 = vmax.xlane.f32.xlu1 %v915_v60 }
 0x9a0   : > { %v910_v63 = vpop.f32.mrf.mxu2 }
 0x9a1   : > { %v914_v1 = vmul.f32 0.5, %v910_v63 }
 0x9a3   : > { %v918_v2 = vsel %vm698_vm11, %v914_v1, -inf  ;;  %v5792_v24 = vpop.f32.mrf.mxu3 }
 0x9a4   : > { %919 = vmax.xlane.f32.xlu2 %v918_v2 }
 0x9a8   : > { %v1050_v4 = vpop.f32.mrf.mxu2 }
 0x9a9   : > { %v1055_v5 = vmul.f32 0.5, %v1050_v4 }
 0x9ab   : > { %v1057_v6 = vsel %vm694_vm10, %v1055_v5, -inf  ;;  %v835_v26 = vpop.f32.mrf.mxu3 }
 0x9ac   : > { %1058 = vmax.xlane.f32.xlu1 %v1057_v6  ;;  %v5800_v40 = vmul.f32 0.5, %v835_v26 }
 0x9ae   : > { %v842_v47 = vsel %vm694_vm10, %v5800_v40, -inf }
 0x9b0   : > { %v1052_v9 = vpop.f32.mrf.mxu2 }
 0x9b1   : > { %v1056_v10 = vmul.f32 0.5, %v1052_v9 }
 0x9b3   : > { %v1060_v11 = vsel %vm698_vm11, %v1056_v10, -inf  ;;  %v837_v27 = vpop.f32.mrf.mxu3 }
 0x9b4   : > { %1061 = vmax.xlane.f32.xlu0 %v1060_v11  ;;  %786 = vadd.xlane.f32.xlu1 %v785_v12 }
 0x9b8   : > { %v1192_v14 = vpop.f32.mrf.mxu2 }
 0x9b9   : > { %v5773_v15 = vmul.f32 0.5, %v1192_v14 }
 0x9bb   : > { %v1199_v16 = vsel %vm694_vm10, %v5773_v15, -inf  ;;  %v977_v33 = vpop.f32.mrf.mxu3 }
 0x9bc   : > { %1200 = vmax.xlane.f32.xlu0 %v1199_v16  ;;  %v5812_v54 = vmul.f32 0.5, %v977_v33 }
 0x9be   : > { %v984_v57 = vsel %vm694_vm10, %v5812_v54, -inf }
 0x9c0   : > { %v1194_v0 = vpop.f32.mrf.mxu2 }
 0x9c1   : > { %v5777_v17 = vmul.f32 0.5, %v1194_v0 }
 0x9c3   : > { %v1202_v18 = vsel %vm698_vm11, %v5777_v17, -inf  ;;  %v979_v42 = vpop.f32.mrf.mxu3 }
 0x9c4   : > { %1203 = vmax.xlane.f32.xlu2 %v1202_v18  ;;  %v5830_v3 = vmul.f32 0.5, %v979_v42 }
 0x9c6   : > { %v987_v12 = vsel %vm698_vm11, %v5830_v3, -inf }
 0x9cb   : > { %v1119_v50 = vpop.f32.mrf.mxu3 }
 0x9cc   : > { %v1124_v14 = vmul.f32 0.5, %v1119_v50 }
 0x9cd   : > { %865 = vrot.lane.b32.xlu1 %v5717_v53, %s6646_s29 }
 0x9ce   : > { %v1126_v16 = vsel %vm694_vm10, %v1124_v14, -inf }
 0x9d0   : > { %938 = vrot.lane.b32.xlu0 %v5717_v53, %s6644_s5 }
 0x9d3   : > { %v1121_v58 = vpop.f32.mrf.mxu3 }
 0x9d4   : > { %v5822_v60 = vmul.f32 0.5, %v1121_v58 }
 0x9d6   : > { %v1129_v2 = vsel %vm698_vm11, %v5822_v60, -inf }
 0x9dc   : > { %796 = vrot.lane.b32.xlu2 %v5717_v53, %s6642_s8 }
 0x9fa   : > { %789 = vadd.xlane.f32.xlu0 %v788_v25 }
 0xa0f   : > { %v917_v28 = vpop.xlane.xlu1 %916 }
 0xa10   : > { %v921_v29 = vsub.f32 %v913_v59, %v917_v28  ;;  %v5820_v59 = vmul.f32 0.5, %v837_v27 }
 0xa12   : > { %v923_v32 = vmul.f32 1.442695, %v921_v29  ;;  %v845_v7 = vsel %vm698_vm11, %v5820_v59, -inf }
 0xa14   : > { %5101 = vpow2.f32 %v923_v32 }
 0xa17   : > { %v920_v34 = vpop.xlane.xlu2 %919 }
 0xa18   : > { %v922_v35 = vsub.f32 %v914_v1, %v920_v34 }
 0xa1a   : > { %v5796_v36 = vpop.eup %5101  ;;  %v925_v37 = vmul.f32 1.442695, %v922_v35 }
 0xa1b   : > { %v927_v39 = vsel %vm694_vm10, %v5796_v36, 0.0 }
 0xa1c   : > { %5103 = vpow2.f32 %v925_v37  ;;  %928 = vadd.xlane.f32.xlu1 %v927_v39 }
 0xa1f   : > { %v1059_v41 = vpop.xlane.xlu1 %1058 }
 0xa20   : > { %v1063_v43 = vsub.f32 %v1055_v5, %v1059_v41 }
 0xa22   : > { %v5802_v44 = vpop.eup %5103  ;;  %v1065_v45 = vmul.f32 1.442695, %v1063_v43 }
 0xa23   : > { %v930_v46 = vsel %vm698_vm11, %v5802_v44, 0.0 }
 0xa24   : > { %5105 = vpow2.f32 %v1065_v45  ;;  %931 = vadd.xlane.f32.xlu0 %v930_v46  ;;  %843 = vmax.xlane.f32.xlu1 %v842_v47 }
 0xa27   : > { %v1062_v30 = vpop.xlane.xlu0 %1061  ;;  %v787_v62 = vpop.xlane.xlu1 %786 }
 0xa28   : > { %v1064_v48 = vsub.f32 %v1056_v10, %v1062_v30 }
 0xa2a   : > { %v5808_v49 = vpop.eup %5105  ;;  %v1067_v51 = vmul.f32 1.442695, %v1064_v48 }
 0xa2b   : > { %v1069_v52 = vsel %vm694_vm10, %v5808_v49, 0.0 }
 0xa2c   : > { %5107 = vpow2.f32 %v1067_v51  ;;  %1070 = vadd.xlane.f32.xlu1 %v1069_v52 }
 0xa2d   : > { %5109 = vrcp.f32 %v787_v62 }
 0xa2f   : > { %v5824_v1 = vpop.xlane.xlu0 %1200 }
 0xa32   : > { %v5814_v55 = vpop.eup %5107 }
 0xa33   : > { %v1072_v56 = vsel %vm698_vm11, %v5814_v55, 0.0  ;;  %v5110_v18 = vpop.eup %5109 }
 0xa34   : > { %1073 = vadd.xlane.f32.xlu2 %v1072_v56  ;;  %985 = vmax.xlane.f32.xlu1 %v984_v57  ;;  %v793_v20 = vmul.f32 %v5110_v18, %v5768_v8 }
 0xa37   : > { %v1204_v63 = vpop.xlane.xlu2 %1203 }
 0xa38   : > { %v1206_v32 = vsub.f32 %v5777_v17, %v1204_v63 }
 0xa3a   : > { %v1209_v37 = vmul.f32 1.442695, %v1206_v32 }
 0xa3c   : > { %846 = vmax.xlane.f32.xlu2 %v845_v7  ;;  %1130 = vmax.xlane.f32.xlu1 %v1129_v2 }
 0xa3f   : > { %v797_v4 = vpop.permute.xlu2 %796  ;;  %v866_v5 = vpop.permute.xlu1 %865 }
 0xa40   : > { %v802_v6 = vand.u32 %v797_v4, %v5738_v13  ;;  %v871_v9 = vand.u32 %v866_v5, %v5738_v13 }
 0xa42   : > { %v939_v10 = vpop.permute.xlu0 %938  ;;  %811 = vmatpush.bf16.msra.mxu0 %v802_v6  ;;  %880 = vmatpush.bf16.msrb.mxu1 %v871_v9  ;;  %v1205_v6 = vsub.f32 %v5773_v15, %v5824_v1 }
 0xa43   : > { %v944_v11 = vand.u32 %v939_v10, %v5738_v13 }
 0xa44   : > { %988 = vmax.xlane.f32.xlu2 %v987_v12  ;;  %v1207_v9 = vmul.f32 1.442695, %v1205_v6 }
 0xa46   : > { %953 = vmatpush.bf16.msrb.mxu0 %v944_v11 }
 0xa4c   : > { %1127 = vmax.xlane.f32.xlu2 %v1126_v16 }
 0xa6d   : > { %v790_v0 = vpop.xlane.xlu0 %789 }
 0xa6e   : > { %5111 = vrcp.f32 %v790_v0 }
 0xa74   : > { %v5112_v19 = vpop.eup %5111 }
 0xa75   : > { %v794_v21 = vmul.f32 %v5112_v19, %v5790_v23 }
 0xa77   : > { %v795_v25 = vpack.c.bf16 %v794_v21, %v793_v20 }
 0xa79   : > { %4508 = vmatmul.msk.bf16.vlgmr.msra.gmra.mxu0 %vm694_vm10, %v795_v25 }
 0xa8f   : > { %v929_v26 = vpop.xlane.xlu1 %928 }
 0xa90   : > { %5113 = vrcp.f32 %v929_v26 }
 0xa96   : > { %v5114_v34 = vpop.eup %5113 }
 0xa97   : > { %v932_v27 = vpop.xlane.xlu0 %931  ;;  %v844_v28 = vpop.xlane.xlu1 %843  ;;  %v935_v8 = vmul.f32 %v5114_v34, %v5796_v36 }
 0xa98   : > { %5115 = vrcp.f32 %v932_v27  ;;  %v848_v29 = vsub.f32 %v5800_v40, %v844_v28 }
 0xa9a   : > { %v850_v33 = vmul.f32 1.442695, %v848_v29 }
 0xa9c   : > { %5117 = vpow2.f32 %v850_v33 }
 0xa9d   : > { %5119 = vpow2.f32 %v1209_v37 }
 0xa9e   : > { %v5116_v35 = vpop.eup %5115 }
 0xa9f   : > { %v936_v23 = vmul.f32 %v5116_v35, %v5802_v44  ;;  %v5845_v39 = vpop.xlane.xlu1 %1070 }
 0xaa1   : > { %v937_v41 = vpack.c.bf16 %v936_v23, %v935_v8 }
 0xaa2   : > { %v5847_v42 = vpop.eup %5117 }
 0xaa3   : > { %4512 = vmatmul.msk.bf16.vlgmr.msrb.gmra.mxu0 %vm694_vm10, %v937_v41  ;;  %v854_v17 = vsel %vm694_vm10, %v5847_v42, 0.0  ;;  %v5854_v45 = vpop.eup %5119 }
 0xaa4   : > { %855 = vadd.xlane.f32.xlu1 %v854_v17  ;;  %v1214_v46 = vsel %vm698_vm11, %v5854_v45, 0.0 }
 0xaa7   : > { %v5852_v40 = vpop.xlane.xlu2 %1073  ;;  %v986_v43 = vpop.xlane.xlu1 %985 }
 0xaa8   : > { %v990_v36 = vsub.f32 %v5812_v54, %v986_v43 }
 0xaaa   : > { %v992_v44 = vmul.f32 1.442695, %v990_v36 }
 0xaac   : > { %5121 = vpow2.f32 %v992_v44  ;;  %1215 = vadd.xlane.f32.xlu1 %v1214_v46 }
 0xaaf   : > { %v847_v47 = vpop.xlane.xlu2 %846  ;;  %v1131_v57 = vpop.xlane.xlu1 %1130 }
 0xab0   : > { %v849_v30 = vsub.f32 %v5820_v59, %v847_v47  ;;  %v1133_v63 = vsub.f32 %v5822_v60, %v1131_v57 }
 0xab2   : > { %v5860_v48 = vpop.eup %5121  ;;  %v852_v50 = vmul.f32 1.442695, %v849_v30  ;;  %v1136_v59 = vmul.f32 1.442695, %v1133_v63 }
 0xab3   : > { %v996_v51 = vsel %vm694_vm10, %v5860_v48, 0.0 }
 0xab4   : > { %5123 = vpow2.f32 %v852_v50  ;;  %997 = vadd.xlane.f32.xlu2 %v996_v51 }
 0xab7   : > { %v989_v52 = vpop.xlane.xlu2 %988 }
 0xab8   : > { %v991_v10 = vsub.f32 %v5830_v3, %v989_v52 }
 0xaba   : > { %v5124_v56 = vpop.eup %5123  ;;  %v994_v11 = vmul.f32 1.442695, %v991_v10 }
 0xabb   : > { %v857_v54 = vsel %vm698_vm11, %v5124_v56, 0.0 }
 0xabc   : > { %858 = vadd.xlane.f32.xlu0 %v857_v54 }
 0xabf   : > { %v1128_v58 = vpop.xlane.xlu2 %1127 }
 0xac0   : > { %v1132_v62 = vsub.f32 %v1124_v14, %v1128_v58 }
 0xac2   : > { %v1134_v7 = vmul.f32 1.442695, %v1132_v62 }
 0xac4   : > { %5125 = vpow2.f32 %v1134_v7 }
 0xac5   : > { %5127 = vpow2.f32 %v1136_v59 }
 0xac6   : > { %5129 = vpow2.f32 %v1207_v9 }
 0xac7   : > { %5131 = vpow2.f32 %v994_v11 }
 0xaca   : > { %v5866_v2 = vpop.eup %5125 }
 0xacb   : > { %v1138_v4 = vsel %vm694_vm10, %v5866_v2, 0.0  ;;  %v5872_v5 = vpop.eup %5127 }
 0xacc   : > { %1139 = vadd.xlane.f32.xlu1 %v1138_v4  ;;  %1007 = vrot.lane.b32.xlu2 %v5717_v53, %s6640_s27  ;;  %v1141_v60 = vsel %vm698_vm11, %v5872_v5, 0.0  ;;  %v5130_v12 = vpop.eup %5129 }
 0xacd   : > { %v1211_v14 = vsel %vm694_vm10, %v5130_v12, 0.0  ;;  %v5132_v16 = vpop.eup %5131 }
 0xace   : > { %v999_v0 = vsel %vm698_vm11, %v5132_v16, 0.0 }
 0xad0   : > { %1080 = vrot.lane.b32.xlu0 %v5717_v53, %s6632_s30  ;;  %s5551_s30 = smov 16  }
 0xad4   : > { %1142 = vadd.xlane.f32.xlu1 %v1141_v60 }
 0xaed   : > { %1222 = vrot.lane.b32.xlu1 %v5717_v53, %s6626_s6  ;;  %s6628_s6 = smov 12  }
 0xaf5   : > { %1212 = vadd.xlane.f32.xlu2 %v1211_v14 }
 0xaf6   : > { %v813_v18 = vpop.f32.mrf.mxu0 }
 0xafa   : > { %1000 = vadd.xlane.f32.xlu0 %v999_v0 }
 0xafe   : > { %v815_v15 = vpop.f32.mrf.mxu0 }
 0xaff   : > { %v4968_v1 = vpack.i.bf16 %v815_v15, %v813_v18 }
 0xb0e   : > { %1149 = vrot.lane.b32.xlu0 %v5717_v53, %s6634_s7  ;;  %s5552_s7 = smov 28  }
 0xb16   : > { %4969 = vrot.lane.b32.xlu0 %v4968_v1, %s6630_s9  ;;  %s5550_s9 = smov 20  }
 0xb17   : > { %v856_v25 = vpop.xlane.xlu1 %855 }
 0xb18   : > { %5133 = vrcp.f32 %v856_v25 }
 0xb1e   : > { %v5134_v53 = vpop.eup %5133 }
 0xb1f   : > { %v862_v32 = vmul.f32 %v5134_v53, %v5847_v42  ;;  %v1216_v43 = vpop.xlane.xlu1 %1215 }
 0xb20   : > { %v955_v3 = vpop.f32.mrf.mxu0 }
 0xb27   : > { %v998_v19 = vpop.xlane.xlu2 %997 }
 0xb28   : > { %v957_v20 = vpop.f32.mrf.mxu0 }
 0xb29   : > { %v4973_v21 = vpack.i.bf16 %v957_v20, %v955_v3 }
 0xb2b   : > { %4974 = vrot.lane.b32.xlu0 %v4973_v21, %s6628_s6  ;;  %s6636_s6 = smov 8   ;;  %v4812_v21 = vld [vmem:[#allocation7 + $0x10] sm:$0xff] }
 0xb2f   : > { %v859_v26 = vpop.xlane.xlu0 %858  ;;  %v1008_v27 = vpop.permute.xlu2 %1007 }
 0xb30   : > { %5135 = vrcp.f32 %v859_v26  ;;  %v1013_v28 = vand.u32 %v1008_v27, %v5738_v13 }
 0xb31   : > { %5137 = vrcp.f32 %v5852_v40 }
 0xb32   : > { %1022 = vmatpush.bf16.msra.mxu1 %v1013_v28  ;;  %5139 = vrcp.f32 %v5845_v39 }
 0xb33   : > { %5141 = vrcp.f32 %v1216_v43 }
 0xb36   : > { %v5136_v29 = vpop.eup %5135 }
 0xb37   : > { %v863_v33 = vmul.f32 %v5136_v29, %v5124_v56  ;;  %v5138_v35 = vpop.eup %5137 }
 0xb38   : > { %v5140_v37 = vpop.eup %5139  ;;  %v1078_v8 = vmul.f32 %v5138_v35, %v5814_v55 }
 0xb39   : > { %v864_v34 = vpack.c.bf16 %v863_v33, %v862_v32  ;;  %v1077_v17 = vmul.f32 %v5140_v37, %v5808_v49  ;;  %v5142_v55 = vpop.eup %5141 }
 0xb3a   : > { %v1220_v49 = vmul.f32 %v5142_v55, %v5854_v45 }
 0xb3b   : > { %4510 = vmatmul.msk.bf16.vlgmr.msrb.gmra.mxu1 %vm694_vm10, %v864_v34  ;;  %v1079_v42 = vpack.c.bf16 %v1078_v8, %v1077_v17 }
 0xb3f   : > { %v1140_v40 = vpop.xlane.xlu1 %1139 }
 0xb42   : > { %v1081_v23 = vpop.permute.xlu0 %1080 }
 0xb43   : > { %v1086_v41 = vand.u32 %v1081_v23, %v5738_v13 }
 0xb45   : > { %1095 = vmatpush.bf16.msra.mxu0 %v1086_v41 }
 0xb47   : > { %v1143_v36 = vpop.xlane.xlu1 %1142 }
 0xb48   : > { %4516 = vmatmul.msk.bf16.vlgmr.msra.gmra.mxu0 %vm694_vm10, %v1079_v42 }
 0xb5f   : > { %v1223_v44 = vpop.permute.xlu1 %1222 }
 0xb60   : > { %v1228_v39 = vand.u32 %v1223_v44, %v5738_v13 }
 0xb62   : > { %1237 = vmatpush.bf16.msrb.mxu0 %v1228_v39 }
 0xb68   : > { %v1213_v46 = vpop.xlane.xlu2 %1212 }
 0xb69   : > { %5143 = vrcp.f32 %v1213_v46 }
 0xb6a   : > { %5145 = vrcp.f32 %v998_v19  ;;  %v4813_v19 = vld [vmem:[#allocation7 + $0x18] sm:$0xff] }
 0xb6b   : > { %1342 = vmatpush.bf16.msrb.mxu3 %v4813_v19 }
 0xb6d   : > { %v1001_v47 = vpop.xlane.xlu0 %1000 }
 0xb6e   : > { %5147 = vrcp.f32 %v1001_v47 }
 0xb6f   : > { %v5144_v30 = vpop.eup %5143  ;;  %5149 = vrcp.f32 %v1143_v36  ;;  %1343 = vmatpush.bf16.msrb.mxu3 %v4812_v21 }
 0xb70   : > { %v1219_v50 = vmul.f32 %v5144_v30, %v5130_v12  ;;  %v5146_v51 = vpop.eup %5145  ;;  %5151 = vrcp.f32 %v1140_v40 }
 0xb71   : > { %v1004_v54 = vmul.f32 %v5146_v51, %v5860_v48 }
 0xb72   : > { %v1221_v52 = vpack.c.bf16 %v1220_v49, %v1219_v50 }
 0xb74   : > { %v5148_v56 = vpop.eup %5147  ;;  %4520 = vmatmul.msk.bf16.vlgmr.msrb.gmra.mxu0 %vm694_vm10, %v1221_v52 }
 0xb75   : > { %v1005_v57 = vmul.f32 %v5148_v56, %v5132_v16  ;;  %v5150_v62 = vpop.eup %5149 }
 0xb76   : > { %v5152_v59 = vpop.eup %5151  ;;  %v1147_v45 = vmul.f32 %v5150_v62, %v5872_v5 }
 0xb77   : > { %v1006_v58 = vpack.c.bf16 %v1005_v57, %v1004_v54  ;;  %v1146_v4 = vmul.f32 %v5152_v59, %v5866_v2 }
 0xb79   : > { %4514 = vmatmul.msk.bf16.vlgmr.msra.gmra.mxu1 %vm694_vm10, %v1006_v58  ;;  %v1148_v60 = vpack.c.bf16 %v1147_v45, %v1146_v4 }
 0xb80   : > { %v1150_v63 = vpop.permute.xlu0 %1149 }
 0xb81   : > { %v1155_v7 = vand.u32 %v1150_v63, %v5738_v13 }
 0xb83   : > { %1164 = vmatpush.bf16.msrb.mxu1 %v1155_v7 }
 0xb88   : > { %v4970_v20 = vpop.permute.xlu0 %4969 }
 0xb89   : > { %4518 = vmatmul.msk.bf16.vlgmr.msrb.gmra.mxu1 %vm694_vm10, %v1148_v60  ;;  %v4972_v27 = vunpack.i.h.bf16 %v4970_v20  ;;  %v4971_v28 = vunpack.i.l.bf16 %v4970_v20 }
 0xb8b   : > { %v1301_v32 = vsel %vm671_vm9, %v5792_v24, %v4972_v27  ;;  %v1300_v33 = vsel %vm671_vm9, %v5788_v22, %v4971_v28 }
 0xb9d   : > { %v4975_v25 = vpop.permute.xlu0 %4974 }
 0xb9e   : > { %v4977_v34 = vunpack.i.h.bf16 %v4975_v25  ;;  %v4976_v23 = vunpack.i.l.bf16 %v4975_v25 }
 0xbb8   : > { %v882_v48 = vpop.f32.mrf.mxu1 }
 0xbc0   : > { %v884_v6 = vpop.f32.mrf.mxu1 }
 0xbc1   : > { %v4978_v9 = vpack.i.bf16 %v884_v6, %v882_v48 }
 0xbc3   : > { %4979 = vrot.lane.b32.xlu0 %v4978_v9, %s6636_s6  ;;  %s6658_s6 = smov 24  }
 0xbc5   : > { %v1097_v10 = vpop.f32.mrf.mxu0 }
 0xbcd   : > { %v1099_v11 = vpop.f32.mrf.mxu0 }
 0xbce   : > { %v4983_v12 = vpack.i.bf16 %v1099_v11, %v1097_v10 }
 0xbd0   : > { %4984 = vrot.lane.b32.xlu0 %v4983_v12, %s5550_s9 }
 0xbf1   : > { %v1239_v5 = vpop.f32.mrf.mxu0 }
 0xbf6   : > { %v1024_v14 = vpop.f32.mrf.mxu1 }
 0xbf9   : > { %v1241_v2 = vpop.f32.mrf.mxu0 }
 0xbfa   : > { %v4998_v15 = vpack.i.bf16 %v1241_v2, %v1239_v5  ;;  %v4815_v5 = vld [vmem:[#allocation7 + $0x28] sm:$0xff]  ;;  %v4814_v2 = vld [vmem:[#allocation7 + $0x20] sm:$0xff] }
 0xbfb   : > { %1424 = vmatpush.bf16.msra.mxu1 %v4815_v5 }
 0xbfe   : > { %v1026_v16 = vpop.f32.mrf.mxu1 }
 0xbff   : > { %v4988_v0 = vpack.i.bf16 %v1026_v16, %v1024_v14  ;;  %1425 = vmatpush.bf16.msra.mxu1 %v4814_v2 }
 0xc01   : > { %4989 = vrot.lane.b32.xlu1 %v4988_v0, %s5551_s30 }
 0xc06   : > { %v1166_v18 = vpop.f32.mrf.mxu1 }
 0xc09   : > { %4999 = vrot.lane.b32.xlu1 %v4998_v15, %s5552_s7 }
 0xc0e   : > { %v1168_v1 = vpop.f32.mrf.mxu1 }
 0xc0f   : > { %v4993_v3 = vpack.i.bf16 %v1168_v1, %v1166_v18 }
 0xc11   : > { %4994 = vrot.lane.b32.xlu2 %v4993_v3, %s6658_s6 }
 0xc35   : > { %v4980_v26 = vpop.permute.xlu0 %4979 }
 0xc36   : > { %v4982_v53 = vunpack.i.h.bf16 %v4980_v26  ;;  %v4981_v29 = vunpack.i.l.bf16 %v4980_v26 }
 0xc38   : > { %v1304_v35 = vsel %vm1302_vm0, %v1301_v32, %v4982_v53  ;;  %v1303_v37 = vsel %vm1302_vm0, %v1300_v33, %v4981_v29 }
 0xc39   : > { %v1306_v42 = vsel %vm1305_vm2, %v1303_v37, %v4976_v23  ;;  %v1307_v40 = vsel %vm1305_vm2, %v1304_v35, %v4977_v34  ;;  %v5355_v35 = vld [vmem:[#allocation2 + $0x8] sm:$0xff] }
 0xc3a   : > { %v1396_v37 = vperm.slane %v5355_v35, 6 }
 0xc42   : > { %v4985_v43 = vpop.permute.xlu0 %4984 }
 0xc43   : > { %v4987_v36 = vunpack.i.h.bf16 %v4985_v43  ;;  %v4986_v44 = vunpack.i.l.bf16 %v4985_v43 }
 0xc6b   : > { %v4995_v39 = vpop.permute.xlu2 %4994 }
 0xc6c   : > { %v4997_v47 = vunpack.i.h.bf16 %v4995_v39  ;;  %v4996_v30 = vunpack.i.l.bf16 %v4995_v39  ;;  %v4822_v39 = vld [vmem:[#allocation7 + $0x60] sm:$0xff] }
 0xc73   : > { %v4990_v8 = vpop.permute.xlu1 %4989 }
 0xc74   : > { %v4992_v41 = vunpack.i.h.bf16 %v4990_v8  ;;  %v4991_v17 = vunpack.i.l.bf16 %v4990_v8 }
 0xc76   : > { %v1310_v24 = vsel %vm1308_vm3, %v1307_v40, %v4992_v41  ;;  %v1309_v22 = vsel %vm1308_vm3, %v1306_v42, %v4991_v17  ;;  %v1399_v42 = vperm.slane %v5355_v35, 7 }
 0xc77   : > { %v1313_v46 = vsel %vm1311_vm4, %v1310_v24, %v4987_v36  ;;  %v1312_v55 = vsel %vm1311_vm4, %v1309_v22, %v4986_v44  ;;  %v4823_v44 = vld [vmem:[#allocation7 + $0x68] sm:$0xff] }
 0xc78   : > { %v1315_v52 = vsel %vm6639_vm5, %v1312_v55, %v4996_v30  ;;  %v1316_v56 = vsel %vm6639_vm5, %v1313_v46, %v4997_v47  ;;  %1499 = vmatpush.bf16.msrb.mxu2 %v4823_v44  ;;  %v4821_v46 = vld [vmem:[#allocation7 + $0x58] sm:$0xff]  ;;  %v4820_v55 = vld [vmem:[#allocation7 + $0x50] sm:$0xff]  ;;  %v4819_v47 = vld [vmem:[#allocation7 + $0x48] sm:$0xff] }
 0xc79   : > { %v4818_v30 = vld [vmem:[#allocation7 + $0x40] sm:$0xff]  ;;  %v5966_v44 = vld [vmem:[#allocation2 + $0x10] sm:$0xff] }
 0xc7b   : > { %v5000_v49 = vpop.permute.xlu1 %4999 }
 0xc7c   : > { %v5002_v50 = vunpack.i.h.bf16 %v5000_v49  ;;  %v5001_v51 = vunpack.i.l.bf16 %v5000_v49  ;;  %1500 = vmatpush.bf16.msrb.mxu2 %v4822_v39  ;;  %v4817_v49 = vld [vmem:[#allocation7 + $0x38] sm:$0xff] }
 0xc7e   : > { %v1318_v54 = vsel %vm6638_vm6, %v1315_v52, %v5001_v51  ;;  %v1319_v57 = vsel %vm6638_vm6, %v1316_v56, %v5002_v50  ;;  %v4816_v50 = vld [vmem:[#allocation7 + $0x30] sm:$0xff] }
 0xc7f   : > { %v1320_v58 = vpack.c.bf16 %v1319_v57, %v1318_v54 }
 0xc80   : > { %1501 = vmatpush.bf16.msrb.mxu2 %v4821_v46 }
 0xc81   : > { %4529 = vmatmul.msk.bf16.vlgmr.msrb.gmra.mxu3 %vm473_vm12, %v1320_v58 }
 0xc84   : > { %1502 = vmatpush.bf16.msrb.mxu2 %v4820_v55 }
 0xc88   : > { %1503 = vmatpush.bf16.msrb.mxu2 %v4819_v47  ;;  %v1588_v47 = vperm.slane %v5966_v44, 0 }
 0xc8c   : > { %1504 = vmatpush.bf16.msrb.mxu2 %v4818_v30 }
 0xc90   : > { %1505 = vmatpush.bf16.msrb.mxu2 %v4817_v49 }
 0xc94   : > { %1506 = vmatpush.bf16.msrb.mxu2 %v4816_v50 }
 0xd04   : > { %v1345_v62 = vpop.f32.mrf.mxu3 }
 0xd05   : > { %v5930_v63 = vadd.f32 %v1345_v62, %v5700_v61 }
 0xd07   : > { %v1352_v7 = vsel %vm473_vm12, %v5930_v63, 0.0 }
 0xd08   : > { %1353 = vadd.xlane.f32.xlu0 %v1352_v7 }
 0xd0c   : > { %v1347_v59 = vpop.f32.mrf.mxu3 }
 0xd0d   : > { %v5935_v45 = vadd.f32 %v1347_v59, %v5688_v31 }
 0xd0f   : > { %v1355_v4 = vsel %vm542_vm13, %v5935_v45, 0.0 }
 0xd10   : > { %1356 = vadd.xlane.f32.xlu1 %v1355_v4 }
 0xd7b   : > { %v1354_v60 = vpop.xlane.xlu0 %1353 }
 0xd7c   : > { %v1358_v48 = vmul.f32 %v1354_v60, %v5692_v38 }
 0xd7e   : > { %v1360_v6 = vsub.f32 %v5930_v63, %v1358_v48 }
 0xd80   : > { %v1362_v9 = vmul.f32 %v1360_v6, %v1360_v6 }
 0xd82   : > { %v1364_v61 = vsel %vm473_vm12, %v1362_v9, 0.0 }
 0xd83   : > { %1365 = vadd.xlane.f32.xlu2 %v1364_v61  ;;  %v1357_v10 = vpop.xlane.xlu1 %1356 }
 0xd84   : > { %v1359_v11 = vmul.f32 %v1357_v10, %v5692_v38 }
 0xd86   : > { %v1361_v12 = vsub.f32 %v5935_v45, %v1359_v11 }
 0xd88   : > { %v1363_v31 = vmul.f32 %v1361_v12, %v1361_v12 }
 0xd8a   : > { %v1367_v14 = vsel %vm542_vm13, %v1363_v31, 0.0 }
 0xd8b   : > { %1368 = vadd.xlane.f32.xlu0 %v1367_v14 }
 0xdf6   : > { %v1366_v16 = vpop.xlane.xlu2 %1365 }
 0xdf7   : > { %v1370_v0 = vmul.f32 %v1366_v16, %v5692_v38 }
 0xdf9   : > { %v1372_v18 = vadd.f32 1e-05, %v1370_v0 }
 0xdfb   : > { %5153 = vrsqrt.f32 %v1372_v18  ;;  %vm1380_vm8 = vweird.f32 %v1372_v18 }
 0xdfe   : > { %v1369_v15 = vpop.xlane.xlu0 %1368 }
 0xdff   : > { %v1371_v1 = vmul.f32 %v1369_v15, %v5692_v38 }
 0xe01   : > { %v5154_v3 = vpop.eup %5153  ;;  %v1373_v19 = vadd.f32 1e-05, %v1371_v1 }
 0xe02   : > { %v1375_v20 = vmul.f32 %v5154_v3, %v1372_v18  ;;  %vm1381_vm7 = vweird.f32 %v5154_v3 }
 0xe03   : > { %5155 = vrsqrt.f32 %v1373_v19  ;;  %vm1382_vm14 = vmor %vm1380_vm8, %vm1381_vm7  ;;  %vm1390_vm6 = vweird.f32 %v1373_v19 }
 0xe04   : > { %v1376_v21 = vmul.f32 %v5154_v3, %v1375_v20 }
 0xe06   : > { %v1377_v25 = vmul.f32 0.5, %v1376_v21 }
 0xe08   : > { %v1378_v26 = vsub.f32 1.5, %v1377_v25 }
 0xe09   : > { %v5156_v27 = vpop.eup %5155 }
 0xe0a   : > { %v1379_v28 = vmul.f32 %v5154_v3, %v1378_v26  ;;  %v1385_v53 = vmul.f32 %v5156_v27, %v1373_v19  ;;  %vm1391_vm15 = vweird.f32 %v5156_v27 }
 0xe0b   : > { %vm1392_vm5 = vmor %vm1390_vm6, %vm1391_vm15 }
 0xe0c   : > { %v1386_v29 = vmul.f32 %v5156_v27, %v1385_v53  ;;  %v1383_v32 = vsel %vm1382_vm14, %v5154_v3, %v1379_v28  ;;  %v4825_v53 = vld [vmem:[#allocation7 + $0x78] sm:$0xff] }
 0xe0d   : > { %v1394_v8 = vmul.f32 %v1383_v32, %v1360_v6  ;;  %1616 = vmatpush.bf16.msra.mxu0 %v4825_v53 }
 0xe0e   : > { %v1387_v33 = vmul.f32 0.5, %v1386_v29 }
 0xe0f   : > { %v1397_v17 = vmul.f32 %v1396_v37, %v1394_v8 }
 0xe10   : > { %v1388_v34 = vsub.f32 1.5, %v1387_v33  ;;  %v4824_v33 = vld [vmem:[#allocation7 + $0x70] sm:$0xff] }
 0xe11   : > { %v1400_v24 = vadd.f32 %v1399_v42, %v1397_v17  ;;  %1617 = vmatpush.bf16.msra.mxu0 %v4824_v33 }
 0xe12   : > { %v1389_v23 = vmul.f32 %v5156_v27, %v1388_v34 }
 0xe14   : > { %v1393_v41 = vsel %vm1392_vm5, %v5156_v27, %v1389_v23 }
 0xe15   : > { %v1395_v43 = vmul.f32 %v1393_v41, %v1361_v12 }
 0xe17   : > { %v1398_v40 = vmul.f32 %v1396_v37, %v1395_v43 }
 0xe19   : > { %v1401_v22 = vadd.f32 %v1399_v42, %v1398_v40 }
 0xe1b   : > { %v1402_v36 = vpack.c.bf16 %v1401_v22, %v1400_v24 }
 0xe1d   : > { %4538 = vmatmul.msk.bf16.vlgmr.msra.gmra.mxu1 %vm473_vm12, %v1402_v36 }
 0xe9a   : > { %v1427_v51 = vpop.f32.mrf.mxu1 }
 0xe9b   : > { %v1432_v52 = vmul.f32 %v1427_v51, %v1427_v51 }
 0xe9d   : > { %v1434_v56 = vmul.f32 %v1432_v52, %v1427_v51 }
 0xe9f   : > { %v1436_v54 = vmul.f32 0.044715, %v1434_v56  ;;  %v1591_v56 = vperm.slane %v5966_v44, 1 }
 0xea1   : > { %v1438_v57 = vadd.f32 %v1436_v54, %v1427_v51 }
 0xea2   : > { %v1429_v58 = vpop.f32.mrf.mxu1 }
 0xea3   : > { %v1440_v62 = vmul.f32 0.7978846, %v1438_v57  ;;  %v1433_v7 = vmul.f32 %v1429_v58, %v1429_v58 }
 0xea5   : > { %v1435_v59 = vmul.f32 %v1433_v7, %v1429_v58  ;;  %5157 = vtanh.f32 %v1440_v62 }
 0xea7   : > { %v1437_v4 = vmul.f32 0.044715, %v1435_v59 }
 0xea9   : > { %v1439_v60 = vadd.f32 %v1437_v4, %v1429_v58 }
 0xeab   : > { %v1441_v48 = vmul.f32 0.7978846, %v1439_v60  ;;  %v5158_v6 = vpop.eup %5157 }
 0xeac   : > { %v1444_v9 = vadd.f32 1.0, %v5158_v6 }
 0xead   : > { %5159 = vtanh.f32 %v1441_v48 }
 0xeae   : > { %v1446_v10 = vmul.f32 0.5, %v1444_v9 }
 0xeb0   : > { %v1448_v31 = vmul.f32 %v1446_v10, %v1427_v51 }
 0xeb3   : > { %v5160_v61 = vpop.eup %5159 }
 0xeb4   : > { %v1445_v11 = vadd.f32 1.0, %v5160_v61 }
 0xeb6   : > { %v1447_v12 = vmul.f32 0.5, %v1445_v11 }
 0xeb8   : > { %v1449_v14 = vmul.f32 %v1447_v12, %v1429_v58 }
 0xeba   : > { %v1450_v5 = vpack.c.bf16 %v1449_v14, %v1448_v31 }
 0xebc   : > { %1507 = vmatmul.bf16.vlgmr.msrb.gmra.mxu2 %v1450_v5 }
 0xf3f   : > { %v1508_v16 = vpop.f32.mrf.mxu2 }
 0xf40   : > { %v5949_v0 = vadd.f32 %v1508_v16, %v5930_v63 }
 0xf42   : > { %v1544_v2 = vsel %vm473_vm12, %v5949_v0, 0.0 }
 0xf43   : > { %1545 = vadd.xlane.f32.xlu1 %v1544_v2 }
 0xf47   : > { %v1510_v18 = vpop.f32.mrf.mxu2 }
 0xf48   : > { %v5954_v15 = vadd.f32 %v1510_v18, %v5935_v45 }
 0xf4a   : > { %v1547_v1 = vsel %vm542_vm13, %v5954_v15, 0.0 }
 0xf4b   : > { %1548 = vadd.xlane.f32.xlu0 %v1547_v1 }
 0xfb6   : > { %v1546_v3 = vpop.xlane.xlu1 %1545 }
 0xfb7   : > { %v1550_v19 = vmul.f32 %v1546_v3, %v5692_v38 }
 0xfb9   : > { %v1552_v20 = vsub.f32 %v5949_v0, %v1550_v19 }
 0xfbb   : > { %v1554_v21 = vmul.f32 %v1552_v20, %v1552_v20 }
 0xfbd   : > { %v1556_v63 = vsel %vm473_vm12, %v1554_v21, 0.0 }
 0xfbe   : > { %1557 = vadd.xlane.f32.xlu1 %v1556_v63  ;;  %v1549_v25 = vpop.xlane.xlu0 %1548 }
 0xfbf   : > { %v1551_v26 = vmul.f32 %v1549_v25, %v5692_v38 }
 0xfc1   : > { %v1553_v27 = vsub.f32 %v5954_v15, %v1551_v26 }
 0xfc3   : > { %v1555_v45 = vmul.f32 %v1553_v27, %v1553_v27 }
 0xfc5   : > { %v1559_v28 = vsel %vm542_vm13, %v1555_v45, 0.0 }
 0xfc6   : > { %1560 = vadd.xlane.f32.xlu2 %v1559_v28 }
0x1031   : > { %v1558_v29 = vpop.xlane.xlu1 %1557 }
0x1032   : > { %v1562_v32 = vmul.f32 %v1558_v29, %v5692_v38 }
0x1034   : > { %v1564_v34 = vadd.f32 1e-05, %v1562_v32 }
0x1036   : > { %5161 = vrsqrt.f32 %v1564_v34  ;;  %vm1572_vm6 = vweird.f32 %v1564_v34 }
0x1039   : > { %v1561_v35 = vpop.xlane.xlu2 %1560 }
0x103a   : > { %v1563_v37 = vmul.f32 %v1561_v35, %v5692_v38 }
0x103c   : > { %v5162_v8 = vpop.eup %5161  ;;  %v1565_v23 = vadd.f32 1e-05, %v1563_v37 }
0x103d   : > { %v1567_v41 = vmul.f32 %v5162_v8, %v1564_v34  ;;  %vm1573_vm5 = vweird.f32 %v5162_v8 }
0x103e   : > { %5163 = vrsqrt.f32 %v1565_v23  ;;  %vm1574_vm7 = vmor %vm1572_vm6, %vm1573_vm5  ;;  %vm1582_vm14 = vweird.f32 %v1565_v23  ;;  %vm6669_vm5 = vcmask 195584  }
0x103f   : > { %v1568_v17 = vmul.f32 %v5162_v8, %v1567_v41  ;;  %vm6670_vm6 = vmmov %vm6669_vm5 }
0x1041   : > { %v1569_v43 = vmul.f32 0.5, %v1568_v17 }
0x1043   : > { %v1570_v42 = vsub.f32 1.5, %v1569_v43 }
0x1044   : > { %v5164_v40 = vpop.eup %5163 }
0x1045   : > { %v1571_v24 = vmul.f32 %v5162_v8, %v1570_v42  ;;  %v1577_v22 = vmul.f32 %v5164_v40, %v1565_v23  ;;  %vm1583_vm8 = vweird.f32 %v5164_v40 }
0x1046   : > { %vm1584_vm15 = vmor %vm1582_vm14, %vm1583_vm8 }
0x1047   : > { %v1578_v36 = vmul.f32 %v5164_v40, %v1577_v22  ;;  %v1575_v39 = vsel %vm1574_vm7, %v5162_v8, %v1571_v24  ;;  %vm6671_vm7 = vcmask 228352  }
0x1048   : > { %v1586_v30 = vmul.f32 %v1575_v39, %v1552_v20  ;;  %vm6672_vm8 = vmmov %vm6671_vm7 }
0x1049   : > { %v1579_v46 = vmul.f32 0.5, %v1578_v36 }
0x104a   : > { %v1589_v51 = vmul.f32 %v1588_v47, %v1586_v30 }
0x104b   : > { %v1580_v55 = vsub.f32 1.5, %v1579_v46 }
0x104c   : > { %v1592_v57 = vadd.f32 %v1591_v56, %v1589_v51 }
0x104d   : > { %v1581_v49 = vmul.f32 %v5164_v40, %v1580_v55 }
0x104f   : > { %v1585_v50 = vsel %vm1584_vm15, %v5164_v40, %v1581_v49 }
0x1050   : > { %v1587_v52 = vmul.f32 %v1585_v50, %v1553_v27 }
0x1052   : > { %v1590_v54 = vmul.f32 %v1588_v47, %v1587_v52 }
0x1054   : > { %v1593_v58 = vadd.f32 %v1591_v56, %v1590_v54 }
0x1056   : > { %v1594_v62 = vpack.c.bf16 %v1593_v58, %v1592_v57 }
0x1058   : > { %4579 = vmatmul.msk.bf16.vlgmr.msra.gmra.mxu0 %vm473_vm12, %v1594_v62 }
0x10d5   : > { %v1619_v7 = vpop.f32.mrf.mxu0 }
0x10d6   : > { %1626 = vrot.lane.b32.xlu0 %v1619_v7, %s5531_s10  ;;  %v1668_v6 = vpack.c.bf16 %v1619_v7, %v1619_v7 }
0x10d8   : > { %v1672_v11 = vunpack.c.l.b16 %v1668_v6 }
0x10dd   : > { %v1621_v59 = vpop.f32.mrf.mxu0 }
0x10de   : > { %1628 = vrot.lane.b32.xlu1 %v1621_v59, %s5531_s10  ;;  %v1669_v48 = vpack.c.bf16 %v1621_v59, %v1621_v59 }
0x10e0   : > { %v1673_v61 = vunpack.c.l.b16 %v1669_v48 }
0x10e2   : > { %v5974_v14 = vpack.c.b16 %v1673_v61, %v1672_v11 }
0x1148   : > { %v1627_v4 = vpop.permute.xlu0 %1626 }
0x1149   : > { %1632 = vxpose.xlu2.b32.start [1/2] (short) (narrow) %v1627_v4, 32 }
0x1150   : > { %v1629_v60 = vpop.permute.xlu1 %1628 }
0x1151   : > { %1633 = vxpose.xlu2.b32.end [2/2] (short) (narrow) %v1629_v60, 32 }
0x11e2   : > { %v1648_v9 = vpop.trf.xlu2 }
0x11e3   : > { %v1664_v10 = vpack.c.bf16 %v1648_v9, %v1648_v9 }
0x11e5   : > { %v1745_v12 = vunpack.c.l.b16 %v1664_v10  ;;  %v1679_v31 = vsel %vm255_vm1, %v1664_v10, 0 }
0x11e6   : > { %1688 = vmatpush.bf16.msra.mxu3 %v1679_v31 }
0x11e7   : > { %v1746_v5 = vpack.c.b16 %v1745_v12, %v1745_v12 }
0x11e9   : > { %v1747_v16 = vrot.slane %v1746_v5, 2  ;;  %4580 = vmatmul.msk.bf16.vlgmr.msra.gmra.mxu3 %vm671_vm9, %v5974_v14 }
0x11ea   : > { %v1649_v8 = vpop.trf.xlu2 }
0x11eb   : > { %v1752_v2 = vsel %vm255_vm1, %v1747_v16, 0  ;;  %v1665_v23 = vpack.c.bf16 %v1649_v8, %v1649_v8 }
0x11ec   : > { %1761 = vmatpush.bf16.msrb.mxu0 %v1752_v2 }
0x11ed   : > { %v1887_v41 = vunpack.c.l.b16 %v1665_v23  ;;  %v1821_v40 = vsel %vm255_vm1, %v1665_v23, 0 }
0x11ef   : > { %v1888_v17 = vpack.c.b16 %v1887_v41, %v1887_v41 }
0x11f1   : > { %v1889_v43 = vrot.slane %v1888_v17, 2 }
0x11f2   : > { %v1650_v42 = vpop.trf.xlu2 }
0x11f3   : > { %v1894_v24 = vsel %vm255_vm1, %v1889_v43, 0  ;;  %v1666_v22 = vpack.c.bf16 %v1650_v42, %v1650_v42 }
0x11f4   : > { %1903 = vmatpush.bf16.msra.mxu0 %v1894_v24 }
0x11f5   : > { %v2029_v39 = vunpack.c.l.b16 %v1666_v22  ;;  %v1963_v59 = vsel %vm255_vm1, %v1666_v22, 0 }
0x11f7   : > { %v2030_v46 = vpack.c.b16 %v2029_v39, %v2029_v39 }
0x11f9   : > { %v2031_v47 = vrot.slane %v2030_v46, 2 }
0x11fa   : > { %v1651_v36 = vpop.trf.xlu2 }
0x11fb   : > { %v2036_v49 = vsel %vm255_vm1, %v2031_v47, 0  ;;  %v1667_v51 = vpack.c.bf16 %v1651_v36, %v1651_v36 }
0x11fd   : > { %v2171_v56 = vunpack.c.l.b16 %v1667_v51  ;;  %v2105_v10 = vsel %vm255_vm1, %v1667_v51, 0 }
0x11ff   : > { %v2172_v62 = vpack.c.b16 %v2171_v56, %v2171_v56 }
0x1201   : > { %v2173_v4 = vrot.slane %v2172_v62, 2 }
0x1203   : > { %v2178_v60 = vsel %vm255_vm1, %v2173_v4, 0 }
0x126c   : > { %v1690_v18 = vpop.f32.mrf.mxu3 }
0x126d   : > { %v1695_v1 = vmul.f32 0.5, %v1690_v18 }
0x126f   : > { %v1697_v3 = vsel %vm694_vm10, %v1695_v1, -inf }
0x1270   : > { %1698 = vmax.xlane.f32.xlu0 %v1697_v3 }
0x1274   : > { %v1692_v19 = vpop.f32.mrf.mxu3 }
0x1275   : > { %v1696_v20 = vmul.f32 0.5, %v1692_v19 }
0x1277   : > { %v1700_v21 = vsel %vm698_vm11, %v1696_v20, -inf }
0x1278   : > { %1701 = vmax.xlane.f32.xlu1 %v1700_v21 }
0x1284   : > { %1720 = vrot.lane.b32.xlu0 %v5974_v14, %s6656_s12 }
0x128c   : > { %1815 = vrot.lane.b32.xlu0 %v5974_v14, %s6657_s13 }
0x1291   : > { %1742 = vrot.lane.b32.xlu1 %v5974_v14, %s6654_s11 }
0x1299   : > { %1957 = vrot.lane.b32.xlu1 %v5974_v14, %s6650_s14  ;;  %s6668_s14 = smov 8  }
0x12a1   : > { %2099 = vrot.lane.b32.xlu1 %v5974_v14, %s6648_s20  ;;  %s6667_s20 = smov 12  }
0x12e3   : > { %v1699_v63 = vpop.xlane.xlu0 %1698 }
0x12e4   : > { %v1703_v25 = vsub.f32 %v1695_v1, %v1699_v63 }
0x12e6   : > { %v1705_v26 = vmul.f32 1.442695, %v1703_v25 }
0x12e8   : > { %5165 = vpow2.f32 %v1705_v26 }
0x12eb   : > { %v1702_v27 = vpop.xlane.xlu1 %1701 }
0x12ec   : > { %v1704_v45 = vsub.f32 %v1696_v20, %v1702_v27 }
0x12ee   : > { %v5166_v28 = vpop.eup %5165  ;;  %v1707_v53 = vmul.f32 1.442695, %v1704_v45 }
0x12ef   : > { %v1709_v29 = vsel %vm694_vm10, %v5166_v28, 0.0 }
0x12f0   : > { %5167 = vpow2.f32 %v1707_v53  ;;  %1710 = vadd.xlane.f32.xlu2 %v1709_v29 }
0x12f6   : > { %v5168_v32 = vpop.eup %5167  ;;  %v1721_v33 = vpop.permute.xlu0 %1720 }
0x12f7   : > { %v1726_v34 = vand.u32 %v1721_v33, %v5738_v13  ;;  %v1712_v35 = vsel %vm698_vm11, %v5168_v32, 0.0 }
0x12f8   : > { %1713 = vadd.xlane.f32.xlu0 %v1712_v35 }
0x12f9   : > { %1735 = vmatpush.bf16.msrb.mxu1 %v1726_v34 }
0x12fd   : > { %1830 = vmatpush.bf16.msra.mxu1 %v1821_v40 }
0x12fe   : > { %v1816_v55 = vpop.permute.xlu0 %1815 }
0x1303   : > { %v1743_v37 = vpop.permute.xlu1 %1742 }
0x1304   : > { %4582 = vmatmul.msk.bf16.vlgmr.msrb.gmra.mxu0 %vm671_vm9, %v1743_v37 }
0x1305   : > { %2045 = vmatpush.bf16.msrb.mxu0 %v2036_v49 }
0x130b   : > { %v1958_v16 = vpop.permute.xlu1 %1957 }
0x130c   : > { %1884 = vrot.lane.b32.xlu0 %v5974_v14, %s6655_s22 }
0x1313   : > { %v2100_v18 = vpop.permute.xlu1 %2099 }
0x1314   : > { %2026 = vrot.lane.b32.xlu0 %v5974_v14, %s6653_s23 }
0x131c   : > { %2168 = vrot.lane.b32.xlu0 %v5974_v14, %s6652_s28 }
0x1363   : > { %v1711_v30 = vpop.xlane.xlu2 %1710 }
0x1364   : > { %5169 = vrcp.f32 %v1711_v30 }
0x136a   : > { %v5170_v52 = vpop.eup %5169 }
0x136b   : > { %v1714_v50 = vpop.xlane.xlu0 %1713  ;;  %v1717_v57 = vmul.f32 %v5170_v52, %v5166_v28 }
0x136c   : > { %5171 = vrcp.f32 %v1714_v50 }
0x1372   : > { %v5172_v54 = vpop.eup %5171 }
0x1373   : > { %v1718_v58 = vmul.f32 %v5172_v54, %v5168_v32 }
0x1375   : > { %v1719_v7 = vpack.c.bf16 %v1718_v58, %v1717_v57 }
0x1377   : > { %4581 = vmatmul.msk.bf16.vlgmr.msrb.gmra.mxu1 %vm694_vm10, %v1719_v7 }
0x1378   : > { %1972 = vmatpush.bf16.msrb.mxu1 %v1963_v59 }
0x137e   : > { %v1885_v48 = vpop.permute.xlu0 %1884 }
0x137f   : > { %4586 = vmatmul.msk.bf16.vlgmr.msra.gmra.mxu0 %vm671_vm9, %v1885_v48 }
0x1380   : > { %2187 = vmatpush.bf16.msra.mxu0 %v2178_v60 }
0x1381   : > { %v1763_v6 = vpop.f32.mrf.mxu0 }
0x1382   : > { %v1768_v9 = vmul.f32 0.5, %v1763_v6 }
0x1384   : > { %v1770_v61 = vsel %vm694_vm10, %v1768_v9, -inf }
0x1385   : > { %1771 = vmax.xlane.f32.xlu1 %v1770_v61 }
0x1386   : > { %v2027_v5 = vpop.permute.xlu0 %2026 }
0x1387   : > { %4584 = vmatmul.msk.bf16.vlgmr.msra.gmra.mxu1 %vm671_vm9, %v1816_v55 }
0x1388   : > { %2114 = vmatpush.bf16.msra.mxu1 %v2105_v10 }
0x1389   : > { %v1765_v11 = vpop.f32.mrf.mxu0 }
0x138a   : > { %v1769_v12 = vmul.f32 0.5, %v1765_v11 }
0x138c   : > { %v1773_v31 = vsel %vm698_vm11, %v1769_v12, -inf }
0x138d   : > { %1774 = vmax.xlane.f32.xlu0 %v1773_v31 }
0x138e   : > { %v2169_v2 = vpop.permute.xlu0 %2168 }
0x138f   : > { %4590 = vmatmul.msk.bf16.vlgmr.msrb.gmra.mxu0 %vm671_vm9, %v2027_v5 }
0x1397   : > { %4588 = vmatmul.msk.bf16.vlgmr.msrb.gmra.mxu1 %vm671_vm9, %v1958_v16 }
0x139f   : > { %4594 = vmatmul.msk.bf16.vlgmr.msra.gmra.mxu0 %vm671_vm9, %v2169_v2 }
0x13a7   : > { %4592 = vmatmul.msk.bf16.vlgmr.msra.gmra.mxu1 %vm671_vm9, %v2100_v18 }
0x13f4   : > { %v6038_v39 = vpop.f32.mrf.mxu1 }
0x13f8   : > { %v1772_v20 = vpop.xlane.xlu1 %1771 }
0x13f9   : > { %v1776_v25 = vsub.f32 %v1768_v9, %v1772_v20 }
0x13fb   : > { %v1778_v27 = vmul.f32 1.442695, %v1776_v25 }
0x13fc   : > { %v1905_v1 = vpop.f32.mrf.mxu0  ;;  %v6042_v46 = vpop.f32.mrf.mxu1 }
0x13fd   : > { %v1910_v3 = vmul.f32 0.5, %v1905_v1  ;;  %5173 = vpow2.f32 %v1778_v27 }
0x13ff   : > { %v1912_v19 = vsel %vm694_vm10, %v1910_v3, -inf }
0x1400   : > { %1913 = vmax.xlane.f32.xlu1 %v1912_v19  ;;  %v1775_v29 = vpop.xlane.xlu0 %1774 }
0x1401   : > { %v1777_v35 = vsub.f32 %v1769_v12, %v1775_v29 }
0x1403   : > { %v6019_v32 = vpop.eup %5173  ;;  %v1780_v23 = vmul.f32 1.442695, %v1777_v35 }
0x1404   : > { %v1907_v21 = vpop.f32.mrf.mxu0  ;;  %v1782_v8 = vsel %vm694_vm10, %v6019_v32, 0.0  ;;  %v1832_v55 = vpop.f32.mrf.mxu1 }
0x1405   : > { %v1911_v63 = vmul.f32 0.5, %v1907_v21  ;;  %5175 = vpow2.f32 %v1780_v23  ;;  %v6058_v48 = vmul.f32 0.5, %v1832_v55 }
0x1407   : > { %v1915_v26 = vsel %vm698_vm11, %v1911_v63, -inf  ;;  %v1839_v31 = vsel %vm694_vm10, %v6058_v48, -inf }
0x1408   : > { %1916 = vmax.xlane.f32.xlu0 %v1915_v26 }
0x140b   : > { %v6028_v42 = vpop.eup %5175 }
0x140c   : > { %v2047_v45 = vpop.f32.mrf.mxu0  ;;  %v1785_v36 = vsel %vm698_vm11, %v6028_v42, 0.0  ;;  %v1834_v47 = vpop.f32.mrf.mxu1 }
0x140d   : > { %v2052_v28 = vmul.f32 0.5, %v2047_v45  ;;  %v6044_v49 = vmul.f32 0.5, %v1834_v47 }
0x140f   : > { %v2054_v53 = vsel %vm694_vm10, %v2052_v28, -inf  ;;  %v1842_v50 = vsel %vm698_vm11, %v6044_v49, -inf }
0x1410   : > { %2055 = vmax.xlane.f32.xlu1 %v2054_v53 }
0x1414   : > { %v2049_v33 = vpop.f32.mrf.mxu0  ;;  %v1974_v30 = vpop.f32.mrf.mxu1 }
0x1415   : > { %v2053_v34 = vmul.f32 0.5, %v2049_v33  ;;  %v6066_v5 = vmul.f32 0.5, %v1974_v30 }
0x1417   : > { %v2057_v37 = vsel %vm698_vm11, %v2053_v34, -inf }
0x1418   : > { %2058 = vmax.xlane.f32.xlu2 %v2057_v37  ;;  %1783 = vadd.xlane.f32.xlu1 %v1782_v8 }
0x141c   : > { %v2189_v41 = vpop.f32.mrf.mxu0  ;;  %v1976_v51 = vpop.f32.mrf.mxu1 }
0x141d   : > { %v6024_v17 = vmul.f32 0.5, %v2189_v41  ;;  %v6048_v52 = vmul.f32 0.5, %v1976_v51 }
0x141f   : > { %v2196_v43 = vsel %vm694_vm10, %v6024_v17, -inf  ;;  %v1984_v56 = vsel %vm698_vm11, %v6048_v52, -inf }
0x1420   : > { %2197 = vmax.xlane.f32.xlu2 %v2196_v43 }
0x1424   : > { %v2191_v40 = vpop.f32.mrf.mxu0  ;;  %v2116_v10 = vpop.f32.mrf.mxu1 }
0x1425   : > { %v6030_v24 = vmul.f32 0.5, %v2191_v40 }
0x1427   : > { %v2199_v22 = vsel %vm698_vm11, %v6030_v24, -inf }
0x1428   : > { %2200 = vmax.xlane.f32.xlu0 %v2199_v22  ;;  %1786 = vadd.xlane.f32.xlu2 %v1785_v36 }
0x142c   : > { %v2118_v20 = vpop.f32.mrf.mxu1 }
0x142d   : > { %v6074_v21 = vmul.f32 0.5, %v2118_v20 }
0x142f   : > { %v2126_v25 = vsel %vm698_vm11, %v6074_v21, -inf }
0x1431   : > { %1862 = vrot.lane.b32.xlu1 %v5974_v14, %s6646_s29  ;;  %s6666_s29 = smov 36  }
0x143c   : > { %1793 = vrot.lane.b32.xlu0 %v5974_v14, %s6642_s8  ;;  %s6664_s8 = smov 44  }
0x1466   : > { %1843 = vmax.xlane.f32.xlu0 %v1842_v50 }
0x146e   : > { %1985 = vmax.xlane.f32.xlu0 %v1984_v56 }
0x1473   : > { %v1914_v54 = vpop.xlane.xlu1 %1913 }
0x1474   : > { %v1918_v57 = vsub.f32 %v1910_v3, %v1914_v54  ;;  %v1981_v3 = vsel %vm694_vm10, %v6066_v5, -inf }
0x1476   : > { %v1920_v58 = vmul.f32 1.442695, %v1918_v57 }
0x1478   : > { %5177 = vpow2.f32 %v1920_v58 }
0x147b   : > { %v1917_v62 = vpop.xlane.xlu0 %1916 }
0x147c   : > { %v1919_v7 = vsub.f32 %v1911_v63, %v1917_v62 }
0x147e   : > { %v6052_v59 = vpop.eup %5177  ;;  %v1922_v4 = vmul.f32 1.442695, %v1919_v7 }
0x147f   : > { %v1924_v60 = vsel %vm694_vm10, %v6052_v59, 0.0 }
0x1480   : > { %5179 = vpow2.f32 %v1922_v4  ;;  %1925 = vadd.xlane.f32.xlu1 %v1924_v60 }
0x1482   : > { %1935 = vrot.lane.b32.xlu0 %v5974_v14, %s6644_s5  ;;  %s6665_s5 = smov 4  }
0x1483   : > { %v2056_v6 = vpop.xlane.xlu1 %2055 }
0x1484   : > { %v2060_v9 = vsub.f32 %v2052_v28, %v2056_v6 }
0x1486   : > { %v6060_v61 = vpop.eup %5179  ;;  %v2062_v11 = vmul.f32 1.442695, %v2060_v9 }
0x1487   : > { %v1927_v12 = vsel %vm698_vm11, %v6060_v61, 0.0 }
0x1488   : > { %5181 = vpow2.f32 %v2062_v11  ;;  %1928 = vadd.xlane.f32.xlu2 %v1927_v12  ;;  %1840 = vmax.xlane.f32.xlu1 %v1839_v31 }
0x148b   : > { %v2059_v16 = vpop.xlane.xlu2 %2058  ;;  %v1784_v45 = vpop.xlane.xlu1 %1783 }
0x148c   : > { %v2061_v2 = vsub.f32 %v2053_v34, %v2059_v16  ;;  %v6083_v34 = vmul.f32 0.5, %v2116_v10 }
0x148e   : > { %v6068_v18 = vpop.eup %5181  ;;  %v2064_v1 = vmul.f32 1.442695, %v2061_v2  ;;  %v2123_v37 = vsel %vm694_vm10, %v6083_v34, -inf }
0x148f   : > { %v2066_v19 = vsel %vm694_vm10, %v6068_v18, 0.0 }
0x1490   : > { %5183 = vpow2.f32 %v2064_v1  ;;  %1982 = vmax.xlane.f32.xlu1 %v1981_v3  ;;  %2067 = vadd.xlane.f32.xlu2 %v2066_v19 }
0x1493   : > { %v2198_v27 = vpop.xlane.xlu2 %2197 }
0x1494   : > { %v2202_v51 = vsub.f32 %v6024_v17, %v2198_v27 }
0x1496   : > { %v6076_v63 = vpop.eup %5183  ;;  %v2204_v54 = vmul.f32 1.442695, %v2202_v51 }
0x1497   : > { %v2069_v26 = vsel %vm698_vm11, %v6076_v63, 0.0 }
0x1498   : > { %2127 = vmax.xlane.f32.xlu1 %v2126_v25  ;;  %2070 = vadd.xlane.f32.xlu2 %v2069_v26 }
0x149b   : > { %v1787_v28 = vpop.xlane.xlu2 %1786  ;;  %v2201_v33 = vpop.xlane.xlu0 %2200 }
0x149c   : > { %5185 = vrcp.f32 %v1787_v28 }
0x149d   : > { %5187 = vrcp.f32 %v1784_v45 }
0x14a2   : > { %v5186_v35 = vpop.eup %5185 }
0x14a3   : > { %v1863_v53 = vpop.permute.xlu1 %1862  ;;  %v5188_v8 = vpop.eup %5187  ;;  %v1791_v23 = vmul.f32 %v5186_v35, %v6028_v42 }
0x14a4   : > { %v1868_v29 = vand.u32 %v1863_v53, %v5738_v13  ;;  %v1790_v40 = vmul.f32 %v5188_v8, %v6019_v32 }
0x14a6   : > { %1877 = vmatpush.bf16.msra.mxu2 %v1868_v29  ;;  %v1792_v22 = vpack.c.bf16 %v1791_v23, %v1790_v40 }
0x14ac   : > { %2124 = vmax.xlane.f32.xlu0 %v2123_v37 }
0x14ae   : > { %v1794_v41 = vpop.permute.xlu0 %1793 }
0x14af   : > { %v1799_v43 = vand.u32 %v1794_v41, %v5738_v13 }
0x14b1   : > { %1808 = vmatpush.bf16.msrb.mxu3 %v1799_v43  ;;  %2004 = vrot.lane.b32.xlu1 %v5974_v14, %s6640_s27  ;;  %s6663_s27 = smov 40  }
0x14b4   : > { %4583 = vmatmul.msk.bf16.vlgmr.msrb.gmra.mxu3 %vm694_vm10, %v1792_v22 }
0x14d9   : > { %v1844_v36 = vpop.xlane.xlu0 %1843 }
0x14da   : > { %v1846_v55 = vsub.f32 %v6044_v49, %v1844_v36  ;;  %v2203_v49 = vsub.f32 %v6030_v24, %v2201_v33 }
0x14dc   : > { %v1849_v47 = vmul.f32 1.442695, %v1846_v55 }
0x14de   : > { %5189 = vpow2.f32 %v1849_v47 }
0x14e1   : > { %v1986_v30 = vpop.xlane.xlu0 %1985 }
0x14e2   : > { %v1988_v42 = vsub.f32 %v6048_v52, %v1986_v30  ;;  %v2206_v52 = vmul.f32 1.442695, %v2203_v49 }
0x14e4   : > { %v6095_v50 = vpop.eup %5189  ;;  %v1991_v32 = vmul.f32 1.442695, %v1988_v42 }
0x14e5   : > { %v1854_v56 = vsel %vm698_vm11, %v6095_v50, 0.0 }
0x14e6   : > { %5191 = vpow2.f32 %v1991_v32  ;;  %1855 = vadd.xlane.f32.xlu2 %v1854_v56 }
0x14e7   : > { %5193 = vpow2.f32 %v2204_v54 }
0x14e8   : > { %5195 = vpow2.f32 %v2206_v52 }
0x14ec   : > { %v6100_v57 = vpop.eup %5191 }
0x14ed   : > { %v1996_v58 = vsel %vm698_vm11, %v6100_v57, 0.0  ;;  %v6105_v62 = vpop.eup %5193 }
0x14ee   : > { %1997 = vadd.xlane.f32.xlu0 %v1996_v58  ;;  %v2208_v60 = vsel %vm694_vm10, %v6105_v62, 0.0  ;;  %v6110_v6 = vpop.eup %5195 }
0x14ef   : > { %v2211_v11 = vsel %vm698_vm11, %v6110_v6, 0.0 }
0x14f3   : > { %v1926_v17 = vpop.xlane.xlu1 %1925 }
0x14f4   : > { %v1936_v7 = vpop.permute.xlu0 %1935  ;;  %5197 = vrcp.f32 %v1926_v17 }
0x14f5   : > { %v1941_v4 = vand.u32 %v1936_v7, %v5738_v13 }
0x14f6   : > { %2209 = vadd.xlane.f32.xlu0 %v2208_v60 }
0x14f7   : > { %1950 = vmatpush.bf16.msra.mxu3 %v1941_v4 }
0x14fa   : > { %v5198_v31 = vpop.eup %5197 }
0x14fb   : > { %v1929_v24 = vpop.xlane.xlu2 %1928  ;;  %v1841_v9 = vpop.xlane.xlu1 %1840  ;;  %v1932_v2 = vmul.f32 %v5198_v31, %v6052_v59 }
0x14fc   : > { %5199 = vrcp.f32 %v1929_v24  ;;  %v1845_v10 = vsub.f32 %v6058_v48, %v1841_v9 }
0x14fe   : > { %v1847_v12 = vmul.f32 1.442695, %v1845_v10  ;;  %2212 = vadd.xlane.f32.xlu0 %v2211_v11 }
0x1500   : > { %5201 = vpow2.f32 %v1847_v12 }
0x1502   : > { %v5200_v16 = vpop.eup %5199 }
0x1503   : > { %v1933_v1 = vmul.f32 %v5200_v16, %v6060_v61  ;;  %v1983_v3 = vpop.xlane.xlu1 %1982  ;;  %v2068_v22 = vpop.xlane.xlu2 %2067 }
0x1504   : > { %v1987_v19 = vsub.f32 %v6066_v5, %v1983_v3 }
0x1505   : > { %v1934_v20 = vpack.c.bf16 %v1933_v1, %v1932_v2 }
0x1506   : > { %v5202_v25 = vpop.eup %5201  ;;  %v1989_v26 = vmul.f32 1.442695, %v1987_v19 }
0x1507   : > { %4587 = vmatmul.msk.bf16.vlgmr.msra.gmra.mxu3 %vm694_vm10, %v1934_v20  ;;  %v1851_v48 = vsel %vm694_vm10, %v5202_v25, 0.0 }
0x1508   : > { %5203 = vpow2.f32 %v1989_v26  ;;  %1852 = vadd.xlane.f32.xlu1 %v1851_v48 }
0x150b   : > { %v2128_v59 = vpop.xlane.xlu1 %2127  ;;  %v2071_v55 = vpop.xlane.xlu2 %2070 }
0x150c   : > { %v2130_v8 = vsub.f32 %v6074_v21, %v2128_v59 }
0x150e   : > { %v5204_v27 = vpop.eup %5203  ;;  %v2133_v41 = vmul.f32 1.442695, %v2130_v8 }
0x150f   : > { %v1993_v45 = vsel %vm694_vm10, %v5204_v27, 0.0 }
0x1510   : > { %1994 = vadd.xlane.f32.xlu2 %v1993_v45 }
0x1512   : > { %2146 = vrot.lane.b32.xlu0 %v5974_v14, %s6663_s27 }
0x151f   : > { %v2125_v61 = vpop.xlane.xlu0 %2124 }
0x1520   : > { %v2129_v5 = vsub.f32 %v6083_v34, %v2125_v61 }
0x1522   : > { %v2131_v28 = vmul.f32 1.442695, %v2129_v5 }
0x1523   : > { %v2005_v53 = vpop.permute.xlu1 %2004 }
0x1524   : > { %5205 = vpow2.f32 %v2131_v28  ;;  %v2010_v29 = vand.u32 %v2005_v53, %v5738_v13 }
0x1525   : > { %5207 = vpow2.f32 %v2133_v41 }
0x1526   : > { %2019 = vmatpush.bf16.msrb.mxu2 %v2010_v29 }
0x1528   : > { %2077 = vrot.lane.b32.xlu2 %v5974_v14, %s6664_s8 }
0x152a   : > { %v6127_v33 = vpop.eup %5205 }
0x152b   : > { %v2135_v35 = vsel %vm694_vm10, %v6127_v33, 0.0  ;;  %v6135_v43 = vpop.eup %5207 }
0x152c   : > { %2136 = vadd.xlane.f32.xlu1 %v2135_v35  ;;  %v2138_v40 = vsel %vm698_vm11, %v6135_v43, 0.0 }
0x1537   : > { %v1810_v37 = vpop.f32.mrf.mxu3 }
0x153f   : > { %v1812_v23 = vpop.f32.mrf.mxu3 }
0x1540   : > { %v5003_v34 = vpack.i.bf16 %v1812_v23, %v1810_v37 }
0x1542   : > { %5004 = vrot.lane.b32.xlu0 %v5003_v34, %s6665_s5 }
0x1545   : > { %2219 = vrot.lane.b32.xlu1 %v5974_v14, %s6666_s29 }
0x1551   : > { %2139 = vadd.xlane.f32.xlu2 %v2138_v40 }
0x1559   : > { %v1856_v21 = vpop.xlane.xlu2 %1855 }
0x155a   : > { %5209 = vrcp.f32 %v1856_v21 }
0x1560   : > { %v5210_v51 = vpop.eup %5209 }
0x1561   : > { %v1998_v36 = vpop.xlane.xlu0 %1997  ;;  %v1860_v14 = vmul.f32 %v5210_v51, %v6095_v50 }
0x1569   : > { %v2210_v47 = vpop.xlane.xlu0 %2209 }
0x1571   : > { %v2213_v42 = vpop.xlane.xlu0 %2212 }
0x157b   : > { %v1853_v30 = vpop.xlane.xlu1 %1852 }
0x157c   : > { %5211 = vrcp.f32 %v1853_v30 }
0x157d   : > { %5213 = vrcp.f32 %v2071_v55  ;;  %v4827_v55 = vld [vmem:[#allocation7 + $0x88] sm:$0xff] }
0x157e   : > { %5215 = vrcp.f32 %v2068_v22  ;;  %2333 = vmatpush.bf16.msrb.mxu1 %v4827_v55 }
0x1582   : > { %v5212_v32 = vpop.eup %5211 }
0x1583   : > { %v1859_v56 = vmul.f32 %v5212_v32, %v5202_v25  ;;  %v1995_v54 = vpop.xlane.xlu2 %1994  ;;  %v5214_v17 = vpop.eup %5213 }
0x1584   : > { %v2147_v49 = vpop.permute.xlu0 %2146  ;;  %5217 = vrcp.f32 %v1995_v54  ;;  %v5216_v7 = vpop.eup %5215  ;;  %v2075_v60 = vmul.f32 %v5214_v17, %v6076_v63 }
0x1585   : > { %v1861_v58 = vpack.c.bf16 %v1860_v14, %v1859_v56  ;;  %v2152_v52 = vand.u32 %v2147_v49, %v5738_v13  ;;  %5219 = vrcp.f32 %v1998_v36  ;;  %v2074_v9 = vmul.f32 %v5216_v7, %v6068_v18 }
0x1586   : > { %5221 = vrcp.f32 %v2213_v42 }
0x1587   : > { %4585 = vmatmul.msk.bf16.vlgmr.msra.gmra.mxu2 %vm694_vm10, %v1861_v58  ;;  %v2076_v11 = vpack.c.bf16 %v2075_v60, %v2074_v9  ;;  %5223 = vrcp.f32 %v2210_v47  ;;  %v4826_v47 = vld [vmem:[#allocation7 + $0x80] sm:$0xff] }
0x1588   : > { %2161 = vmatpush.bf16.msra.mxu2 %v2152_v52  ;;  %2334 = vmatpush.bf16.msrb.mxu1 %v4826_v47 }
0x158a   : > { %v1952_v4 = vpop.f32.mrf.mxu3  ;;  %v5218_v10 = vpop.eup %5217 }
0x158b   : > { %v2078_v24 = vpop.permute.xlu2 %2077  ;;  %v5220_v12 = vpop.eup %5219  ;;  %v2001_v31 = vmul.f32 %v5218_v10, %v5204_v27 }
0x158c   : > { %v2083_v50 = vand.u32 %v2078_v24, %v5738_v13  ;;  %v2002_v2 = vmul.f32 %v5220_v12, %v6100_v57  ;;  %v5222_v18 = vpop.eup %5221 }
0x158d   : > { %v5224_v19 = vpop.eup %5223  ;;  %v2217_v20 = vmul.f32 %v5222_v18, %v6110_v6 }
0x158e   : > { %2092 = vmatpush.bf16.msrb.mxu3 %v2083_v50  ;;  %v2003_v3 = vpack.c.bf16 %v2002_v2, %v2001_v31  ;;  %v2216_v48 = vmul.f32 %v5224_v19, %v6105_v62 }
0x1590   : > { %v2218_v57 = vpack.c.bf16 %v2217_v20, %v2216_v48 }
0x1591   : > { %4591 = vmatmul.msk.bf16.vlgmr.msrb.gmra.mxu3 %vm694_vm10, %v2076_v11 }
0x1592   : > { %v1954_v16 = vpop.f32.mrf.mxu3 }
0x1593   : > { %v5013_v1 = vpack.i.bf16 %v1954_v16, %v1952_v4 }
0x1595   : > { %5014 = vrot.lane.b32.xlu0 %v5013_v1, %s6667_s20 }
0x1597   : > { %4589 = vmatmul.msk.bf16.vlgmr.msrb.gmra.mxu2 %vm694_vm10, %v2003_v3 }
0x159f   : > { %v2137_v63 = vpop.xlane.xlu1 %2136 }
0x15a0   : > { %5225 = vrcp.f32 %v2137_v63 }
0x15a6   : > { %v5226_v45 = vpop.eup %5225 }
0x15a7   : > { %v2143_v61 = vmul.f32 %v5226_v45, %v6127_v33 }
0x15b4   : > { %v5005_v21 = vpop.permute.xlu0 %5004 }
0x15b5   : > { %v5007_v51 = vunpack.i.h.bf16 %v5005_v21  ;;  %v5006_v32 = vunpack.i.l.bf16 %v5005_v21 }
0x15b7   : > { %v2220_v25 = vpop.permute.xlu1 %2219  ;;  %v2298_v58 = vsel %vm671_vm9, %v6042_v46, %v5007_v51  ;;  %v2297_v52 = vsel %vm671_vm9, %v6038_v39, %v5006_v32 }
0x15b8   : > { %v2225_v26 = vand.u32 %v2220_v25, %v5738_v13 }
0x15ba   : > { %2234 = vmatpush.bf16.msra.mxu3 %v2225_v26 }
0x15bd   : > { %4595 = vmatmul.msk.bf16.vlgmr.msra.gmra.mxu3 %vm694_vm10, %v2218_v57 }
0x15c4   : > { %v2140_v27 = vpop.xlane.xlu2 %2139 }
0x15c5   : > { %5227 = vrcp.f32 %v2140_v27 }
0x15cb   : > { %v5228_v59 = vpop.eup %5227 }
0x15cc   : > { %v2144_v5 = vmul.f32 %v5228_v59, %v6135_v43 }
0x15ce   : > { %v2145_v28 = vpack.c.bf16 %v2144_v5, %v2143_v61 }
0x15d0   : > { %4593 = vmatmul.msk.bf16.vlgmr.msra.gmra.mxu2 %vm694_vm10, %v2145_v28 }
0x1607   : > { %v5015_v30 = vpop.permute.xlu0 %5014 }
0x1608   : > { %v5017_v24 = vunpack.i.h.bf16 %v5015_v30  ;;  %v5016_v50 = vunpack.i.l.bf16 %v5015_v30 }
0x160a   : > { %v1879_v6 = vpop.f32.mrf.mxu2 }
0x1612   : > { %v1881_v53 = vpop.f32.mrf.mxu2 }
0x1613   : > { %v5008_v29 = vpack.i.bf16 %v1881_v53, %v1879_v6 }
0x1614   : > { %v2094_v62 = vpop.f32.mrf.mxu3 }
0x1615   : > { %5009 = vrot.lane.b32.xlu2 %v5008_v29, %s6668_s14 }
0x161a   : > { %v2021_v35 = vpop.f32.mrf.mxu2 }
0x161c   : > { %v2096_v37 = vpop.f32.mrf.mxu3 }
0x161d   : > { %v5018_v8 = vpack.i.bf16 %v2096_v37, %v2094_v62 }
0x161f   : > { %5019 = vrot.lane.b32.xlu0 %v5018_v8, %s5550_s9 }
0x1622   : > { %v2023_v23 = vpop.f32.mrf.mxu2 }
0x1623   : > { %v5023_v34 = vpack.i.bf16 %v2023_v23, %v2021_v35 }
0x1625   : > { %5024 = vrot.lane.b32.xlu1 %v5023_v34, %s5551_s30  ;;  %v4829_v34 = vld [vmem:[#allocation7 + $0x98] sm:$0xff] }
0x1626   : > { %2415 = vmatpush.bf16.msrb.mxu2 %v4829_v34 }
0x1640   : > { %v2236_v33 = vpop.f32.mrf.mxu3 }
0x1648   : > { %v2238_v41 = vpop.f32.mrf.mxu3 }
0x1649   : > { %v5033_v43 = vpack.i.bf16 %v2238_v41, %v2236_v33 }
0x164b   : > { %5034 = vrot.lane.b32.xlu0 %v5033_v43, %s5552_s7 }
0x1653   : > { %v2163_v40 = vpop.f32.mrf.mxu2 }
0x165b   : > { %v2165_v22 = vpop.f32.mrf.mxu2 }
0x165c   : > { %v5028_v36 = vpack.i.bf16 %v2165_v22, %v2163_v40  ;;  %v4828_v40 = vld [vmem:[#allocation7 + $0x90] sm:$0xff] }
0x165d   : > { %2416 = vmatpush.bf16.msrb.mxu2 %v4828_v40 }
0x165e   : > { %5029 = vrot.lane.b32.xlu1 %v5028_v36, %s6658_s6 }
0x166f   : > { %v5010_v42 = vpop.permute.xlu2 %5009 }
0x1670   : > { %v5012_v14 = vunpack.i.h.bf16 %v5010_v42  ;;  %v5011_v56 = vunpack.i.l.bf16 %v5010_v42 }
0x1672   : > { %v2300_v17 = vsel %vm1302_vm0, %v2298_v58, %v5012_v14  ;;  %v2299_v7 = vsel %vm1302_vm0, %v2297_v52, %v5011_v56 }
0x1673   : > { %v2301_v9 = vsel %vm1305_vm2, %v2299_v7, %v5016_v50  ;;  %v2302_v10 = vsel %vm1305_vm2, %v2300_v17, %v5017_v24  ;;  %v2387_v17 = vperm.slane %v5966_v44, 2  ;;  %v2390_v24 = vperm.slane %v5966_v44, 3  ;;  %v4831_v44 = vld [vmem:[#allocation7 + $0xa8] sm:$0xff] }
0x1691   : > { %v5020_v54 = vpop.permute.xlu0 %5019 }
0x1692   : > { %v5022_v31 = vunpack.i.h.bf16 %v5020_v54  ;;  %v5021_v16 = vunpack.i.l.bf16 %v5020_v54 }
0x1697   : > { %v5025_v49 = vpop.permute.xlu1 %5024 }
0x1698   : > { %v5027_v4 = vunpack.i.h.bf16 %v5025_v49  ;;  %v5026_v60 = vunpack.i.l.bf16 %v5025_v49 }
0x169a   : > { %v2304_v11 = vsel %vm1308_vm3, %v2302_v10, %v5027_v4  ;;  %v2303_v12 = vsel %vm1308_vm3, %v2301_v9, %v5026_v60 }
0x169b   : > { %v2305_v18 = vsel %vm1311_vm4, %v2303_v12, %v5021_v16  ;;  %v2306_v19 = vsel %vm1311_vm4, %v2304_v11, %v5022_v31  ;;  %v4837_v31 = vld [vmem:[#allocation7 + $0xd8] sm:$0xff]  ;;  %v4836_v16 = vld [vmem:[#allocation7 + $0xd0] sm:$0xff] }
0x169c   : > { %2490 = vmatpush.bf16.msrb.mxu0 %v4837_v31 }
0x16a0   : > { %2491 = vmatpush.bf16.msrb.mxu0 %v4836_v16 }
0x16bd   : > { %v5035_v46 = vpop.permute.xlu0 %5034 }
0x16be   : > { %v5037_v3 = vunpack.i.h.bf16 %v5035_v46  ;;  %v5036_v63 = vunpack.i.l.bf16 %v5035_v46 }
0x16d0   : > { %v5030_v39 = vpop.permute.xlu1 %5029 }
0x16d1   : > { %v5032_v2 = vunpack.i.h.bf16 %v5030_v39  ;;  %v5031_v1 = vunpack.i.l.bf16 %v5030_v39  ;;  %v4835_v39 = vld [vmem:[#allocation7 + $0xc8] sm:$0xff] }
0x16d2   : > { %2492 = vmatpush.bf16.msrb.mxu0 %v4835_v39 }
0x16d3   : > { %v2307_v20 = vsel %vm6669_vm5, %v2305_v18, %v5031_v1  ;;  %v2308_v25 = vsel %vm6670_vm6, %v2306_v19, %v5032_v2  ;;  %v4834_v2 = vld [vmem:[#allocation7 + $0xc0] sm:$0xff]  ;;  %v4833_v1 = vld [vmem:[#allocation7 + $0xb8] sm:$0xff] }
0x16d4   : > { %v2309_v26 = vsel %vm6671_vm7, %v2307_v20, %v5036_v63  ;;  %v2310_v48 = vsel %vm6672_vm8, %v2308_v25, %v5037_v3  ;;  %v4832_v3 = vld [vmem:[#allocation7 + $0xb0] sm:$0xff]  ;;  %v4830_v63 = vld [vmem:[#allocation7 + $0xa0] sm:$0xff] }
0x16d5   : > { %v2311_v57 = vpack.c.bf16 %v2310_v48, %v2309_v26 }
0x16d6   : > { %2493 = vmatpush.bf16.msrb.mxu0 %v4834_v2  ;;  %v6217_v2 = vld [vmem:[#allocation2 + $0x10] sm:$0xff] }
0x16d7   : > { %4604 = vmatmul.msk.bf16.vlgmr.msrb.gmra.mxu1 %vm473_vm12, %v2311_v57 }
0x16da   : > { %2494 = vmatpush.bf16.msrb.mxu0 %v4833_v1  ;;  %v2579_v1 = vperm.slane %v6217_v2, 4 }
0x16de   : > { %2495 = vmatpush.bf16.msrb.mxu0 %v4832_v3 }
0x16e2   : > { %2496 = vmatpush.bf16.msrb.mxu0 %v4831_v44 }
0x16e6   : > { %2497 = vmatpush.bf16.msrb.mxu0 %v4830_v63 }
0x1754   : > { %v2336_v27 = vpop.f32.mrf.mxu1 }
0x1755   : > { %v6179_v45 = vadd.f32 %v2336_v27, %v5949_v0 }
0x1757   : > { %v2343_v59 = vsel %vm473_vm12, %v6179_v45, 0.0 }
0x1758   : > { %2344 = vadd.xlane.f32.xlu1 %v2343_v59 }
0x175c   : > { %v2338_v61 = vpop.f32.mrf.mxu1 }
0x175d   : > { %v6184_v5 = vadd.f32 %v2338_v61, %v5954_v15 }
0x175f   : > { %v2346_v28 = vsel %vm542_vm13, %v6184_v5, 0.0 }
0x1760   : > { %2347 = vadd.xlane.f32.xlu2 %v2346_v28 }
0x17cb   : > { %v2345_v6 = vpop.xlane.xlu1 %2344 }
0x17cc   : > { %v2349_v53 = vmul.f32 %v2345_v6, %v5692_v38 }
0x17ce   : > { %v2351_v29 = vsub.f32 %v6179_v45, %v2349_v53 }
0x17d0   : > { %v2353_v62 = vmul.f32 %v2351_v29, %v2351_v29 }
0x17d2   : > { %v2355_v0 = vsel %vm473_vm12, %v2353_v62, 0.0 }
0x17d3   : > { %2356 = vadd.xlane.f32.xlu0 %v2355_v0  ;;  %v2348_v35 = vpop.xlane.xlu2 %2347 }
0x17d4   : > { %v2350_v37 = vmul.f32 %v2348_v35, %v5692_v38 }
0x17d6   : > { %v2352_v8 = vsub.f32 %v6184_v5, %v2350_v37 }
0x17d8   : > { %v2354_v15 = vmul.f32 %v2352_v8, %v2352_v8 }
0x17da   : > { %v2358_v23 = vsel %vm542_vm13, %v2354_v15, 0.0 }
0x17db   : > { %2359 = vadd.xlane.f32.xlu1 %v2358_v23 }
0x1846   : > { %v2357_v33 = vpop.xlane.xlu0 %2356 }
0x1847   : > { %v2361_v41 = vmul.f32 %v2357_v33, %v5692_v38 }
0x1849   : > { %v2363_v43 = vadd.f32 1e-05, %v2361_v41 }
0x184b   : > { %5229 = vrsqrt.f32 %v2363_v43  ;;  %vm2371_vm15 = vweird.f32 %v2363_v43 }
0x184e   : > { %v2360_v22 = vpop.xlane.xlu1 %2359 }
0x184f   : > { %v2362_v36 = vmul.f32 %v2360_v22, %v5692_v38 }
0x1851   : > { %v5230_v55 = vpop.eup %5229  ;;  %v2364_v47 = vadd.f32 1e-05, %v2362_v36 }
0x1852   : > { %v2366_v21 = vmul.f32 %v5230_v55, %v2363_v43  ;;  %vm2372_vm14 = vweird.f32 %v5230_v55 }
0x1853   : > { %5231 = vrsqrt.f32 %v2364_v47  ;;  %vm2373_vm5 = vmor %vm2371_vm15, %vm2372_vm14  ;;  %vm2381_vm7 = vweird.f32 %v2364_v47 }
0x1854   : > { %v2367_v30 = vmul.f32 %v5230_v55, %v2366_v21 }
0x1856   : > { %v2368_v42 = vmul.f32 0.5, %v2367_v30 }
0x1858   : > { %v2369_v51 = vsub.f32 1.5, %v2368_v42 }
0x1859   : > { %v5232_v32 = vpop.eup %5231 }
0x185a   : > { %v2370_v14 = vmul.f32 %v5230_v55, %v2369_v51  ;;  %v2376_v56 = vmul.f32 %v5232_v32, %v2364_v47  ;;  %vm2382_vm6 = vweird.f32 %v5232_v32 }
0x185b   : > { %vm2383_vm8 = vmor %vm2381_vm7, %vm2382_vm6 }
0x185c   : > { %v2377_v54 = vmul.f32 %v5232_v32, %v2376_v56  ;;  %v2374_v49 = vsel %vm2373_vm5, %v5230_v55, %v2370_v14  ;;  %v4839_v14 = vld [vmem:[#allocation7 + $0xe8] sm:$0xff] }
0x185d   : > { %v2385_v7 = vmul.f32 %v2374_v49, %v2351_v29  ;;  %2607 = vmatpush.bf16.msrb.mxu3 %v4839_v14 }
0x185e   : > { %v2378_v58 = vmul.f32 0.5, %v2377_v54 }
0x185f   : > { %v2388_v50 = vmul.f32 %v2387_v17, %v2385_v7 }
0x1860   : > { %v2379_v52 = vsub.f32 1.5, %v2378_v58  ;;  %v4838_v58 = vld [vmem:[#allocation7 + $0xe0] sm:$0xff] }
0x1861   : > { %v2391_v11 = vadd.f32 %v2390_v24, %v2388_v50  ;;  %2608 = vmatpush.bf16.msrb.mxu3 %v4838_v58 }
0x1862   : > { %v2380_v4 = vmul.f32 %v5232_v32, %v2379_v52 }
0x1864   : > { %v2384_v60 = vsel %vm2383_vm8, %v5232_v32, %v2380_v4 }
0x1865   : > { %v2386_v9 = vmul.f32 %v2384_v60, %v2352_v8 }
0x1867   : > { %v2389_v10 = vmul.f32 %v2387_v17, %v2386_v9 }
0x1869   : > { %v2392_v12 = vadd.f32 %v2390_v24, %v2389_v10 }
0x186b   : > { %v2393_v46 = vpack.c.bf16 %v2392_v12, %v2391_v11 }
0x186d   : > { %4613 = vmatmul.msk.bf16.vlgmr.msrb.gmra.mxu2 %vm473_vm12, %v2393_v46 }
0x18f0   : > { %v2418_v18 = vpop.f32.mrf.mxu2 }
0x18f1   : > { %v2423_v19 = vmul.f32 %v2418_v18, %v2418_v18 }
0x18f3   : > { %v2425_v20 = vmul.f32 %v2423_v19, %v2418_v18 }
0x18f5   : > { %v2427_v25 = vmul.f32 0.044715, %v2425_v20 }
0x18f7   : > { %v2429_v26 = vadd.f32 %v2427_v25, %v2418_v18 }
0x18f8   : > { %v2420_v48 = vpop.f32.mrf.mxu2 }
0x18f9   : > { %v2431_v57 = vmul.f32 0.7978846, %v2429_v26  ;;  %v2424_v27 = vmul.f32 %v2420_v48, %v2420_v48 }
0x18fb   : > { %v2426_v59 = vmul.f32 %v2424_v27, %v2420_v48  ;;  %5233 = vtanh.f32 %v2431_v57 }
0x18fd   : > { %v2428_v61 = vmul.f32 0.044715, %v2426_v59 }
0x18ff   : > { %v2430_v28 = vadd.f32 %v2428_v61, %v2420_v48 }
0x1901   : > { %v2432_v6 = vmul.f32 0.7978846, %v2430_v28  ;;  %v5234_v53 = vpop.eup %5233 }
0x1902   : > { %v2435_v29 = vadd.f32 1.0, %v5234_v53 }
0x1903   : > { %5235 = vtanh.f32 %v2432_v6 }
0x1904   : > { %v2437_v0 = vmul.f32 0.5, %v2435_v29 }
0x1906   : > { %v2439_v8 = vmul.f32 %v2437_v0, %v2418_v18  ;;  %v2582_v18 = vperm.slane %v6217_v2, 5 }
0x1909   : > { %v5236_v62 = vpop.eup %5235 }
0x190a   : > { %v2436_v35 = vadd.f32 1.0, %v5236_v62 }
0x190c   : > { %v2438_v37 = vmul.f32 0.5, %v2436_v35 }
0x190e   : > { %v2440_v15 = vmul.f32 %v2438_v37, %v2420_v48 }
0x1910   : > { %v2441_v23 = vpack.c.bf16 %v2440_v15, %v2439_v8 }
0x1912   : > { %2498 = vmatmul.bf16.vlgmr.msrb.gmra.mxu0 %v2441_v23 }
0x198f   : > { %v2499_v34 = vpop.f32.mrf.mxu0 }
0x1990   : > { %v6200_v33 = vadd.f32 %v2499_v34, %v6179_v45 }
0x1992   : > { %v2535_v41 = vsel %vm473_vm12, %v6200_v33, 0.0 }
0x1993   : > { %2536 = vadd.xlane.f32.xlu2 %v2535_v41 }
0x1997   : > { %v2501_v43 = vpop.f32.mrf.mxu0 }
0x1998   : > { %v6205_v40 = vadd.f32 %v2501_v43, %v6184_v5 }
0x199a   : > { %v2538_v22 = vsel %vm542_vm13, %v6205_v40, 0.0 }
0x199b   : > { %2539 = vadd.xlane.f32.xlu0 %v2538_v22 }
0x1a06   : > { %v2537_v36 = vpop.xlane.xlu2 %2536 }
0x1a07   : > { %v2541_v55 = vmul.f32 %v2537_v36, %v5692_v38 }
0x1a09   : > { %v2543_v47 = vsub.f32 %v6200_v33, %v2541_v55 }
0x1a0b   : > { %v2545_v21 = vmul.f32 %v2543_v47, %v2543_v47 }
0x1a0d   : > { %v2547_v45 = vsel %vm473_vm12, %v2545_v21, 0.0 }
0x1a0e   : > { %2548 = vadd.xlane.f32.xlu1 %v2547_v45  ;;  %v2540_v30 = vpop.xlane.xlu0 %2539 }
0x1a0f   : > { %v2542_v42 = vmul.f32 %v2540_v30, %v5692_v38 }
0x1a11   : > { %v2544_v51 = vsub.f32 %v6205_v40, %v2542_v42 }
0x1a13   : > { %v2546_v5 = vmul.f32 %v2544_v51, %v2544_v51 }
0x1a15   : > { %v2550_v32 = vsel %vm542_vm13, %v2546_v5, 0.0 }
0x1a16   : > { %2551 = vadd.xlane.f32.xlu2 %v2550_v32 }
0x1a81   : > { %v2549_v56 = vpop.xlane.xlu1 %2548 }
0x1a82   : > { %v2553_v54 = vmul.f32 %v2549_v56, %v5692_v38 }
0x1a84   : > { %v2555_v49 = vadd.f32 1e-05, %v2553_v54 }
0x1a86   : > { %5237 = vrsqrt.f32 %v2555_v49  ;;  %vm2563_vm15 = vweird.f32 %v2555_v49 }
0x1a89   : > { %v2552_v52 = vpop.xlane.xlu2 %2551 }
0x1a8a   : > { %v2554_v17 = vmul.f32 %v2552_v52, %v5692_v38 }
0x1a8c   : > { %v5238_v7 = vpop.eup %5237  ;;  %v2556_v4 = vadd.f32 1e-05, %v2554_v17 }
0x1a8d   : > { %v2558_v60 = vmul.f32 %v5238_v7, %v2555_v49  ;;  %vm2564_vm14 = vweird.f32 %v5238_v7 }
0x1a8e   : > { %5239 = vrsqrt.f32 %v2556_v4  ;;  %vm2565_vm5 = vmor %vm2563_vm15, %vm2564_vm14  ;;  %vm2573_vm7 = vweird.f32 %v2556_v4  ;;  %vm6679_vm14 = vcmask 195584  }
0x1a8f   : > { %v2559_v24 = vmul.f32 %v5238_v7, %v2558_v60  ;;  %vm6680_vm15 = vmmov %vm6679_vm14 }
0x1a91   : > { %v2560_v50 = vmul.f32 0.5, %v2559_v24 }
0x1a93   : > { %v2561_v9 = vsub.f32 1.5, %v2560_v50 }
0x1a94   : > { %v5240_v10 = vpop.eup %5239 }
0x1a95   : > { %v2562_v11 = vmul.f32 %v5238_v7, %v2561_v9  ;;  %v2568_v12 = vmul.f32 %v5240_v10, %v2556_v4  ;;  %vm2574_vm6 = vweird.f32 %v5240_v10 }
0x1a96   : > { %vm2575_vm8 = vmor %vm2573_vm7, %vm2574_vm6 }
0x1a97   : > { %v2569_v46 = vmul.f32 %v5240_v10, %v2568_v12  ;;  %v2566_v31 = vsel %vm2565_vm5, %v5238_v7, %v2562_v11  ;;  %vm6681_vm5 = vcmask 228352  }
0x1a98   : > { %v2577_v3 = vmul.f32 %v2566_v31, %v2543_v47  ;;  %vm6682_vm6 = vmmov %vm6681_vm5 }
0x1a99   : > { %v2570_v16 = vmul.f32 0.5, %v2569_v46 }
0x1a9a   : > { %v2580_v19 = vmul.f32 %v2579_v1, %v2577_v3 }
0x1a9b   : > { %v2571_v39 = vsub.f32 1.5, %v2570_v16 }
0x1a9c   : > { %v2583_v26 = vadd.f32 %v2582_v18, %v2580_v19 }
0x1a9d   : > { %v2572_v44 = vmul.f32 %v5240_v10, %v2571_v39 }
0x1a9f   : > { %v2576_v63 = vsel %vm2575_vm8, %v5240_v10, %v2572_v44 }
0x1aa0   : > { %v2578_v20 = vmul.f32 %v2576_v63, %v2544_v51 }
0x1aa2   : > { %v2581_v25 = vmul.f32 %v2579_v1, %v2578_v20 }
0x1aa4   : > { %v2584_v48 = vadd.f32 %v2582_v18, %v2581_v25 }
0x1aa6   : > { %v2585_v57 = vpack.c.bf16 %v2584_v48, %v2583_v26 }
0x1aa8   : > { %4654 = vmatmul.msk.bf16.vlgmr.msrb.gmra.mxu3 %vm473_vm12, %v2585_v57 }
0x1b2b   : > { %v2610_v27 = vpop.f32.mrf.mxu3 }
0x1b2c   : > { %2617 = vrot.lane.b32.xlu0 %v2610_v27, %s5531_s10  ;;  %v2659_v53 = vpack.c.bf16 %v2610_v27, %v2610_v27 }
0x1b2e   : > { %v2663_v35 = vunpack.c.l.b16 %v2659_v53 }
0x1b33   : > { %v2612_v59 = vpop.f32.mrf.mxu3 }
0x1b34   : > { %2619 = vrot.lane.b32.xlu1 %v2612_v59, %s5531_s10  ;;  %v2660_v6 = vpack.c.bf16 %v2612_v59, %v2612_v59 }
0x1b36   : > { %v2664_v62 = vunpack.c.l.b16 %v2660_v6 }
0x1b38   : > { %v6225_v15 = vpack.c.b16 %v2664_v62, %v2663_v35 }
0x1b9e   : > { %v2618_v61 = vpop.permute.xlu0 %2617 }
0x1b9f   : > { %2623 = vxpose.xlu2.b32.start [1/2] (short) (narrow) %v2618_v61, 32 }
0x1ba6   : > { %v2620_v28 = vpop.permute.xlu1 %2619 }
0x1ba7   : > { %2624 = vxpose.xlu2.b32.end [2/2] (short) (narrow) %v2620_v28, 32 }
0x1c38   : > { %v2639_v29 = vpop.trf.xlu2 }
0x1c39   : > { %v2655_v0 = vpack.c.bf16 %v2639_v29, %v2639_v29 }
0x1c3b   : > { %v2670_v37 = vsel %vm255_vm1, %v2655_v0, 0  ;;  %v2736_v8 = vunpack.c.l.b16 %v2655_v0 }
0x1c3c   : > { %2679 = vmatpush.bf16.msra.mxu1 %v2670_v37 }
0x1c3d   : > { %v2737_v23 = vpack.c.b16 %v2736_v8, %v2736_v8 }
0x1c3f   : > { %v2738_v34 = vrot.slane %v2737_v23, 2  ;;  %4655 = vmatmul.msk.bf16.vlgmr.msra.gmra.mxu1 %vm671_vm9, %v6225_v15 }
0x1c40   : > { %v2640_v45 = vpop.trf.xlu2 }
0x1c41   : > { %v2743_v41 = vsel %vm255_vm1, %v2738_v34, 0  ;;  %v2656_v30 = vpack.c.bf16 %v2640_v45, %v2640_v45 }
0x1c42   : > { %2752 = vmatpush.bf16.msra.mxu3 %v2743_v41 }
0x1c43   : > { %v2878_v42 = vunpack.c.l.b16 %v2656_v30  ;;  %v2812_v63 = vsel %vm255_vm1, %v2656_v30, 0 }
0x1c45   : > { %v2879_v51 = vpack.c.b16 %v2878_v42, %v2878_v42 }
0x1c47   : > { %v2880_v32 = vrot.slane %v2879_v51, 2 }
0x1c48   : > { %v2641_v52 = vpop.trf.xlu2 }
0x1c49   : > { %v2885_v54 = vsel %vm255_vm1, %v2880_v32, 0  ;;  %v2657_v17 = vpack.c.bf16 %v2641_v52, %v2641_v52 }
0x1c4a   : > { %2894 = vmatpush.bf16.msrb.mxu3 %v2885_v54 }
0x1c4b   : > { %v3020_v24 = vunpack.c.l.b16 %v2657_v17  ;;  %v2954_v53 = vsel %vm255_vm1, %v2657_v17, 0 }
0x1c4d   : > { %v3021_v50 = vpack.c.b16 %v3020_v24, %v3020_v24 }
0x1c4f   : > { %v3022_v9 = vrot.slane %v3021_v50, 2 }
0x1c50   : > { %v2642_v31 = vpop.trf.xlu2 }
0x1c51   : > { %v3027_v10 = vsel %vm255_vm1, %v3022_v9, 0  ;;  %v2658_v16 = vpack.c.bf16 %v2642_v31, %v2642_v31 }
0x1c53   : > { %v3162_v39 = vunpack.c.l.b16 %v2658_v16  ;;  %v3096_v34 = vsel %vm255_vm1, %v2658_v16, 0 }
0x1c55   : > { %v3163_v1 = vpack.c.b16 %v3162_v39, %v3162_v39 }
0x1c57   : > { %v3164_v18 = vrot.slane %v3163_v1, 2 }
0x1c59   : > { %v3169_v19 = vsel %vm255_vm1, %v3164_v18, 0 }
0x1cbc   : > { %v2681_v43 = vpop.f32.mrf.mxu1 }
0x1cbd   : > { %v2686_v22 = vmul.f32 0.5, %v2681_v43 }
0x1cbf   : > { %v2688_v36 = vsel %vm694_vm10, %v2686_v22, -inf }
0x1cc0   : > { %2689 = vmax.xlane.f32.xlu0 %v2688_v36 }
0x1cc4   : > { %v2683_v55 = vpop.f32.mrf.mxu1 }
0x1cc5   : > { %v2687_v47 = vmul.f32 0.5, %v2683_v55 }
0x1cc7   : > { %v2691_v21 = vsel %vm698_vm11, %v2687_v47, -inf }
0x1cc8   : > { %2692 = vmax.xlane.f32.xlu1 %v2691_v21 }
0x1cd4   : > { %2733 = vrot.lane.b32.xlu0 %v6225_v15, %s6654_s11  ;;  %s6675_s11 = smov 56  }
0x1ce1   : > { %2711 = vrot.lane.b32.xlu1 %v6225_v15, %s6656_s12  ;;  %s6677_s12 = smov 60  }
0x1ce9   : > { %2875 = vrot.lane.b32.xlu1 %v6225_v15, %s6655_s22  ;;  %s6676_s22 = smov 52  }
0x1cf1   : > { %3017 = vrot.lane.b32.xlu1 %v6225_v15, %s6653_s23  ;;  %s6674_s23 = smov 104  }
0x1cf9   : > { %3159 = vrot.lane.b32.xlu1 %v6225_v15, %s6652_s28  ;;  %s6673_s28 = smov 112  }
0x1d33   : > { %v2690_v5 = vpop.xlane.xlu0 %2689 }
0x1d34   : > { %v2694_v14 = vsub.f32 %v2686_v22, %v2690_v5 }
0x1d36   : > { %v2696_v56 = vmul.f32 1.442695, %v2694_v14 }
0x1d38   : > { %5241 = vpow2.f32 %v2696_v56 }
0x1d3b   : > { %v2693_v49 = vpop.xlane.xlu1 %2692 }
0x1d3c   : > { %v2695_v58 = vsub.f32 %v2687_v47, %v2693_v49 }
0x1d3e   : > { %v5242_v7 = vpop.eup %5241  ;;  %v2698_v4 = vmul.f32 1.442695, %v2695_v58 }
0x1d3f   : > { %v2700_v60 = vsel %vm694_vm10, %v5242_v7, 0.0 }
0x1d40   : > { %5243 = vpow2.f32 %v2698_v4  ;;  %2701 = vadd.xlane.f32.xlu2 %v2700_v60 }
0x1d46   : > { %v5244_v11 = vpop.eup %5243  ;;  %v2734_v12 = vpop.permute.xlu0 %2733 }
0x1d47   : > { %4657 = vmatmul.msk.bf16.vlgmr.msra.gmra.mxu3 %vm671_vm9, %v2734_v12  ;;  %v2703_v46 = vsel %vm698_vm11, %v5244_v11, 0.0 }
0x1d48   : > { %2704 = vadd.xlane.f32.xlu0 %v2703_v46  ;;  %3036 = vmatpush.bf16.msra.mxu3 %v3027_v10 }
0x1d53   : > { %v2712_v3 = vpop.permute.xlu1 %2711 }
0x1d54   : > { %v2717_v44 = vand.u32 %v2712_v3, %v5738_v13 }
0x1d56   : > { %2726 = vmatpush.bf16.msra.mxu2 %v2717_v44 }
0x1d5a   : > { %2821 = vmatpush.bf16.msrb.mxu2 %v2812_v63 }
0x1d5b   : > { %v2876_v20 = vpop.permute.xlu1 %2875 }
0x1d5c   : > { %2806 = vrot.lane.b32.xlu0 %v6225_v15, %s6657_s13  ;;  %4661 = vmatmul.msk.bf16.vlgmr.msrb.gmra.mxu3 %vm671_vm9, %v2876_v20  ;;  %s6678_s13 = smov 48  }
0x1d5d   : > { %3178 = vmatpush.bf16.msrb.mxu3 %v3169_v19 }
0x1d63   : > { %v3018_v25 = vpop.permute.xlu1 %3017 }
0x1d64   : > { %2948 = vrot.lane.b32.xlu0 %v6225_v15, %s6673_s28 }
0x1d6b   : > { %v3160_v26 = vpop.permute.xlu1 %3159 }
0x1d6c   : > { %3090 = vrot.lane.b32.xlu0 %v6225_v15, %s6674_s23  ;;  %4665 = vmatmul.msk.bf16.vlgmr.msra.gmra.mxu3 %vm671_vm9, %v3018_v25 }
0x1d7c   : > { %4669 = vmatmul.msk.bf16.vlgmr.msrb.gmra.mxu3 %vm671_vm9, %v3160_v26 }
0x1db3   : > { %v2702_v48 = vpop.xlane.xlu2 %2701 }
0x1db4   : > { %5245 = vrcp.f32 %v2702_v48 }
0x1dba   : > { %v5246_v27 = vpop.eup %5245 }
0x1dbb   : > { %v2705_v57 = vpop.xlane.xlu0 %2704  ;;  %v2708_v61 = vmul.f32 %v5246_v27, %v5242_v7 }
0x1dbc   : > { %5247 = vrcp.f32 %v2705_v57 }
0x1dc2   : > { %v5248_v59 = vpop.eup %5247 }
0x1dc3   : > { %v2709_v28 = vmul.f32 %v5248_v59, %v5244_v11 }
0x1dc5   : > { %v2710_v6 = vpack.c.bf16 %v2709_v28, %v2708_v61 }
0x1dc7   : > { %4656 = vmatmul.msk.bf16.vlgmr.msra.gmra.mxu2 %vm694_vm10, %v2710_v6 }
0x1dc8   : > { %2963 = vmatpush.bf16.msra.mxu2 %v2954_v53 }
0x1dca   : > { %v2754_v29 = vpop.f32.mrf.mxu3 }
0x1dcb   : > { %v2759_v62 = vmul.f32 0.5, %v2754_v29 }
0x1dcd   : > { %v2761_v0 = vsel %vm694_vm10, %v2759_v62, -inf }
0x1dce   : > { %2762 = vmax.xlane.f32.xlu0 %v2761_v0  ;;  %v2807_v23 = vpop.permute.xlu0 %2806 }
0x1dd2   : > { %v2756_v35 = vpop.f32.mrf.mxu3 }
0x1dd3   : > { %v2760_v37 = vmul.f32 0.5, %v2756_v35 }
0x1dd5   : > { %v2764_v8 = vsel %vm698_vm11, %v2760_v37, -inf }
0x1dd6   : > { %2765 = vmax.xlane.f32.xlu1 %v2764_v8  ;;  %v2949_v36 = vpop.permute.xlu0 %2948 }
0x1dd7   : > { %4659 = vmatmul.msk.bf16.vlgmr.msrb.gmra.mxu2 %vm671_vm9, %v2807_v23 }
0x1dd8   : > { %3105 = vmatpush.bf16.msrb.mxu2 %v3096_v34 }
0x1dde   : > { %v3091_v51 = vpop.permute.xlu0 %3090 }
0x1ddf   : > { %v2896_v41 = vpop.f32.mrf.mxu3 }
0x1de0   : > { %v2901_v43 = vmul.f32 0.5, %v2896_v41 }
0x1de2   : > { %v2903_v22 = vsel %vm694_vm10, %v2901_v43, -inf }
0x1de3   : > { %2904 = vmax.xlane.f32.xlu0 %v2903_v22 }
0x1de7   : > { %v2898_v55 = vpop.f32.mrf.mxu3  ;;  %4663 = vmatmul.msk.bf16.vlgmr.msra.gmra.mxu2 %vm671_vm9, %v2949_v36 }
0x1de8   : > { %v2902_v47 = vmul.f32 0.5, %v2898_v55 }
0x1dea   : > { %v2906_v21 = vsel %vm698_vm11, %v2902_v47, -inf }
0x1deb   : > { %2907 = vmax.xlane.f32.xlu1 %v2906_v21 }
0x1def   : > { %v3038_v45 = vpop.f32.mrf.mxu3 }
0x1df0   : > { %v3043_v30 = vmul.f32 0.5, %v3038_v45 }
0x1df2   : > { %v3045_v42 = vsel %vm694_vm10, %v3043_v30, -inf }
0x1df3   : > { %3046 = vmax.xlane.f32.xlu0 %v3045_v42 }
0x1df7   : > { %v3040_v5 = vpop.f32.mrf.mxu3  ;;  %4667 = vmatmul.msk.bf16.vlgmr.msrb.gmra.mxu2 %vm671_vm9, %v3091_v51 }
0x1df8   : > { %v3044_v32 = vmul.f32 0.5, %v3040_v5 }
0x1dfa   : > { %v3048_v14 = vsel %vm698_vm11, %v3044_v32, -inf }
0x1dfb   : > { %3049 = vmax.xlane.f32.xlu2 %v3048_v14 }
0x1dff   : > { %v3180_v56 = vpop.f32.mrf.mxu3 }
0x1e00   : > { %v6271_v54 = vmul.f32 0.5, %v3180_v56 }
0x1e02   : > { %v3187_v49 = vsel %vm694_vm10, %v6271_v54, -inf }
0x1e03   : > { %3188 = vmax.xlane.f32.xlu2 %v3187_v49 }
0x1e07   : > { %2853 = vrot.lane.b32.xlu0 %v6225_v15, %s6675_s11  ;;  %v3182_v58 = vpop.f32.mrf.mxu3 }
0x1e08   : > { %v6277_v52 = vmul.f32 0.5, %v3182_v58 }
0x1e0a   : > { %v3190_v17 = vsel %vm698_vm11, %v6277_v52, -inf }
0x1e0b   : > { %3191 = vmax.xlane.f32.xlu1 %v3190_v17 }
0x1e1b   : > { %2926 = vrot.lane.b32.xlu2 %v6225_v15, %s6676_s22 }
0x1e24   : > { %2784 = vrot.lane.b32.xlu1 %v6225_v15, %s6677_s12 }
0x1e41   : > { %v2763_v7 = vpop.xlane.xlu0 %2762 }
0x1e42   : > { %v2767_v4 = vsub.f32 %v2759_v62, %v2763_v7 }
0x1e44   : > { %v2769_v60 = vmul.f32 1.442695, %v2767_v4 }
0x1e46   : > { %5249 = vpow2.f32 %v2769_v60 }
0x1e49   : > { %v2766_v24 = vpop.xlane.xlu1 %2765 }
0x1e4a   : > { %v2768_v50 = vsub.f32 %v2760_v37, %v2766_v24  ;;  %v6285_v9 = vpop.f32.mrf.mxu2 }
0x1e4c   : > { %v6287_v10 = vpop.eup %5249  ;;  %v2771_v11 = vmul.f32 1.442695, %v2768_v50 }
0x1e4d   : > { %v2773_v12 = vsel %vm694_vm10, %v6287_v10, 0.0 }
0x1e4e   : > { %5251 = vpow2.f32 %v2771_v11  ;;  %2774 = vadd.xlane.f32.xlu0 %v2773_v12 }
0x1e52   : > { %v6291_v46 = vpop.f32.mrf.mxu2 }
0x1e54   : > { %v6293_v31 = vpop.eup %5251 }
0x1e55   : > { %v2776_v16 = vsel %vm698_vm11, %v6293_v31, 0.0 }
0x1e56   : > { %v2905_v39 = vpop.xlane.xlu0 %2904  ;;  %2777 = vadd.xlane.f32.xlu2 %v2776_v16 }
0x1e57   : > { %v2909_v1 = vsub.f32 %v2901_v43, %v2905_v39 }
0x1e59   : > { %v2911_v3 = vmul.f32 1.442695, %v2909_v1 }
0x1e5a   : > { %v2823_v44 = vpop.f32.mrf.mxu2 }
0x1e5b   : > { %5253 = vpow2.f32 %v2911_v3  ;;  %v6301_v48 = vmul.f32 0.5, %v2823_v44 }
0x1e5d   : > { %v2830_v6 = vsel %vm694_vm10, %v6301_v48, -inf }
0x1e5e   : > { %v2908_v63 = vpop.xlane.xlu1 %2907 }
0x1e5f   : > { %v2910_v18 = vsub.f32 %v2902_v47, %v2908_v63 }
0x1e61   : > { %v6297_v19 = vpop.eup %5253  ;;  %v2913_v20 = vmul.f32 1.442695, %v2910_v18 }
0x1e62   : > { %v2825_v25 = vpop.f32.mrf.mxu2  ;;  %v2915_v26 = vsel %vm694_vm10, %v6297_v19, 0.0 }
0x1e63   : > { %5255 = vpow2.f32 %v2913_v20  ;;  %2916 = vadd.xlane.f32.xlu0 %v2915_v26  ;;  %v2829_v47 = vmul.f32 0.5, %v2825_v25 }
0x1e65   : > { %v2833_v45 = vsel %vm698_vm11, %v2829_v47, -inf }
0x1e66   : > { %v3047_v57 = vpop.xlane.xlu0 %3046 }
0x1e67   : > { %v3051_v27 = vsub.f32 %v3043_v30, %v3047_v57 }
0x1e69   : > { %v6303_v59 = vpop.eup %5255  ;;  %v3053_v61 = vmul.f32 1.442695, %v3051_v27 }
0x1e6a   : > { %v2965_v28 = vpop.f32.mrf.mxu2  ;;  %v2918_v53 = vsel %vm698_vm11, %v6303_v59, 0.0 }
0x1e6b   : > { %5257 = vpow2.f32 %v3053_v61  ;;  %2831 = vmax.xlane.f32.xlu0 %v2830_v6  ;;  %2919 = vadd.xlane.f32.xlu2 %v2918_v53  ;;  %v6309_v29 = vmul.f32 0.5, %v2965_v28 }
0x1e6d   : > { %v2972_v23 = vsel %vm694_vm10, %v6309_v29, -inf }
0x1e6e   : > { %v3050_v62 = vpop.xlane.xlu2 %3049 }
0x1e6f   : > { %v3052_v0 = vsub.f32 %v3044_v32, %v3050_v62 }
0x1e71   : > { %v6311_v35 = vpop.eup %5257  ;;  %v3055_v37 = vmul.f32 1.442695, %v3052_v0 }
0x1e72   : > { %v2967_v8 = vpop.f32.mrf.mxu2  ;;  %v3057_v34 = vsel %vm694_vm10, %v6311_v35, 0.0 }
0x1e73   : > { %5259 = vpow2.f32 %v3055_v37  ;;  %2973 = vmax.xlane.f32.xlu0 %v2972_v23  ;;  %3058 = vadd.xlane.f32.xlu2 %v3057_v34  ;;  %v2971_v51 = vmul.f32 0.5, %v2967_v8 }
0x1e75   : > { %v2975_v5 = vsel %vm698_vm11, %v2971_v51, -inf }
0x1e76   : > { %v6328_v32 = vpop.xlane.xlu2 %3188 }
0x1e79   : > { %v6317_v41 = vpop.eup %5259  ;;  %v2854_v43 = vpop.permute.xlu0 %2853 }
0x1e7a   : > { %v2859_v22 = vand.u32 %v2854_v43, %v5738_v13  ;;  %v3107_v36 = vpop.f32.mrf.mxu2  ;;  %v3060_v55 = vsel %vm698_vm11, %v6317_v41, 0.0 }
0x1e7b   : > { %3061 = vadd.xlane.f32.xlu1 %v3060_v55  ;;  %v6330_v14 = vmul.f32 0.5, %v3107_v36  ;;  %v3193_v36 = vsub.f32 %v6271_v54, %v6328_v32 }
0x1e7c   : > { %2868 = vmatpush.bf16.msra.mxu0 %v2859_v22 }
0x1e7d   : > { %v3114_v49 = vsel %vm694_vm10, %v6330_v14, -inf  ;;  %v3195_v55 = vmul.f32 1.442695, %v3193_v36 }
0x1e7e   : > { %v6332_v56 = vpop.xlane.xlu1 %3191  ;;  %v2927_v58 = vpop.permute.xlu2 %2926 }
0x1e7f   : > { %v2932_v4 = vand.u32 %v2927_v58, %v5738_v13 }
0x1e82   : > { %v3109_v21 = vpop.f32.mrf.mxu2 }
0x1e83   : > { %v6323_v30 = vmul.f32 0.5, %v3109_v21  ;;  %2834 = vmax.xlane.f32.xlu1 %v2833_v45 }
0x1e85   : > { %v3117_v42 = vsel %vm698_vm11, %v6323_v30, -inf }
0x1e86   : > { %3118 = vmax.xlane.f32.xlu0 %v3117_v42 }
0x1e8b   : > { %2976 = vmax.xlane.f32.xlu1 %v2975_v5  ;;  %v3194_v5 = vsub.f32 %v6277_v52, %v6332_v56 }
0x1e8d   : > { %v3197_v54 = vmul.f32 1.442695, %v3194_v5 }
0x1e93   : > { %3115 = vmax.xlane.f32.xlu1 %v3114_v49 }
0x1e96   : > { %v2785_v17 = vpop.permute.xlu1 %2784 }
0x1e97   : > { %v2790_v7 = vand.u32 %v2785_v17, %v5738_v13 }
0x1e99   : > { %2799 = vmatpush.bf16.msrb.mxu1 %v2790_v7 }
0x1e9d   : > { %2941 = vmatpush.bf16.msra.mxu1 %v2932_v4 }
0x1ec1   : > { %v2775_v60 = vpop.xlane.xlu0 %2774 }
0x1ec2   : > { %5261 = vrcp.f32 %v2775_v60 }
0x1ec8   : > { %v5262_v50 = vpop.eup %5261 }
0x1ec9   : > { %v2778_v24 = vpop.xlane.xlu2 %2777  ;;  %v2781_v12 = vmul.f32 %v5262_v50, %v6287_v10 }
0x1eca   : > { %5263 = vrcp.f32 %v2778_v24 }
0x1ed0   : > { %v5264_v11 = vpop.eup %5263 }
0x1ed1   : > { %v2782_v16 = vmul.f32 %v5264_v11, %v6293_v31 }
0x1ed3   : > { %v2783_v39 = vpack.c.bf16 %v2782_v16, %v2781_v12 }
0x1ed5   : > { %4658 = vmatmul.msk.bf16.vlgmr.msrb.gmra.mxu1 %vm694_vm10, %v2783_v39 }
0x1ed6   : > { %v2917_v1 = vpop.xlane.xlu0 %2916 }
0x1ed7   : > { %5265 = vrcp.f32 %v2917_v1 }
0x1edd   : > { %v5266_v20 = vpop.eup %5265 }
0x1ede   : > { %v2832_v3 = vpop.xlane.xlu0 %2831  ;;  %v2920_v44 = vpop.xlane.xlu2 %2919  ;;  %v2923_v26 = vmul.f32 %v5266_v20, %v6297_v19 }
0x1edf   : > { %v2836_v63 = vsub.f32 %v6301_v48, %v2832_v3  ;;  %5267 = vrcp.f32 %v2920_v44 }
0x1ee1   : > { %v2838_v18 = vmul.f32 1.442695, %v2836_v63 }
0x1ee3   : > { %5269 = vpow2.f32 %v2838_v18 }
0x1ee5   : > { %v5268_v25 = vpop.eup %5267 }
0x1ee6   : > { %v2924_v10 = vmul.f32 %v5268_v25, %v6303_v59  ;;  %v2974_v57 = vpop.xlane.xlu0 %2973  ;;  %v3059_v11 = vpop.xlane.xlu2 %3058 }
0x1ee7   : > { %v2978_v31 = vsub.f32 %v6309_v29, %v2974_v57 }
0x1ee8   : > { %v2925_v27 = vpack.c.bf16 %v2924_v10, %v2923_v26 }
0x1ee9   : > { %v6345_v61 = vpop.eup %5269  ;;  %v2980_v28 = vmul.f32 1.442695, %v2978_v31 }
0x1eea   : > { %4662 = vmatmul.msk.bf16.vlgmr.msra.gmra.mxu1 %vm694_vm10, %v2925_v27  ;;  %v2842_v48 = vsel %vm694_vm10, %v6345_v61, 0.0 }
0x1eeb   : > { %5271 = vpow2.f32 %v2980_v28  ;;  %2843 = vadd.xlane.f32.xlu0 %v2842_v48 }
0x1eee   : > { %v6350_v6 = vpop.xlane.xlu1 %3061 }
0x1ef1   : > { %v6352_v53 = vpop.eup %5271 }
0x1ef2   : > { %v2984_v19 = vsel %vm694_vm10, %v6352_v53, 0.0 }
0x1ef3   : > { %2985 = vadd.xlane.f32.xlu1 %v2984_v19 }
0x1ef6   : > { %v2835_v59 = vpop.xlane.xlu1 %2834 }
0x1ef7   : > { %v2837_v29 = vsub.f32 %v2829_v47, %v2835_v59 }
0x1ef9   : > { %v2840_v62 = vmul.f32 1.442695, %v2837_v29  ;;  %v3119_v49 = vpop.xlane.xlu0 %3118 }
0x1efa   : > { %v3121_v58 = vsub.f32 %v6323_v30, %v3119_v49 }
0x1efb   : > { %5273 = vpow2.f32 %v2840_v62 }
0x1efc   : > { %v3124_v32 = vmul.f32 1.442695, %v3121_v58 }
0x1efe   : > { %v2977_v0 = vpop.xlane.xlu1 %2976 }
0x1eff   : > { %v2979_v37 = vsub.f32 %v2971_v51, %v2977_v0 }
0x1f01   : > { %v5274_v8 = vpop.eup %5273  ;;  %v2982_v23 = vmul.f32 1.442695, %v2979_v37 }
0x1f02   : > { %v2845_v34 = vsel %vm698_vm11, %v5274_v8, 0.0 }
0x1f03   : > { %5275 = vpow2.f32 %v2982_v23  ;;  %2846 = vadd.xlane.f32.xlu2 %v2845_v34 }
0x1f04   : > { %5277 = vpow2.f32 %v3195_v55 }
0x1f06   : > { %v3116_v47 = vpop.xlane.xlu1 %3115 }
0x1f07   : > { %v3120_v45 = vsub.f32 %v6330_v14, %v3116_v47 }
0x1f09   : > { %v6357_v43 = vpop.eup %5275  ;;  %v3122_v51 = vmul.f32 1.442695, %v3120_v45 }
0x1f0a   : > { %v2987_v22 = vsel %vm698_vm11, %v6357_v43, 0.0  ;;  %v6369_v21 = vpop.eup %5277 }
0x1f0b   : > { %2988 = vadd.xlane.f32.xlu0 %v2987_v22  ;;  %v3199_v42 = vsel %vm694_vm10, %v6369_v21, 0.0  ;;  %5279 = vpow2.f32 %v3122_v51 }
0x1f0c   : > { %2995 = vrot.lane.b32.xlu1 %v6225_v15, %s6678_s13  ;;  %5281 = vpow2.f32 %v3197_v54 }
0x1f0d   : > { %5283 = vpow2.f32 %v3124_v32 }
0x1f11   : > { %v6377_v17 = vpop.eup %5279 }
0x1f12   : > { %v3126_v14 = vsel %vm694_vm10, %v6377_v17, 0.0  ;;  %v6381_v7 = vpop.eup %5281 }
0x1f13   : > { %v6383_v4 = vpop.eup %5283  ;;  %v3202_v52 = vsel %vm698_vm11, %v6381_v7, 0.0 }
0x1f14   : > { %v3129_v30 = vsel %vm698_vm11, %v6383_v4, 0.0 }
0x1f1b   : > { %3137 = vrot.lane.b32.xlu2 %v6225_v15, %s6663_s27 }
0x1f1f   : > { %3068 = vrot.lane.b32.xlu0 %v6225_v15, %s6664_s8 }
0x1f36   : > { %3200 = vadd.xlane.f32.xlu1 %v3199_v42 }
0x1f44   : > { %3127 = vadd.xlane.f32.xlu2 %v3126_v14 }
0x1f49   : > { %3203 = vadd.xlane.f32.xlu0 %v3202_v52 }
0x1f4c   : > { %3130 = vadd.xlane.f32.xlu2 %v3129_v30 }
0x1f52   : > { %v2801_v56 = vpop.f32.mrf.mxu1 }
0x1f5a   : > { %v2803_v60 = vpop.f32.mrf.mxu1 }
0x1f5b   : > { %v5038_v50 = vpack.i.bf16 %v2803_v60, %v2801_v56 }
0x1f5e   : > { %v2844_v16 = vpop.xlane.xlu0 %2843 }
0x1f5f   : > { %5285 = vrcp.f32 %v2844_v16  ;;  %v4841_v16 = vld [vmem:[#allocation7 + $0xf8] sm:$0xff] }
0x1f60   : > { %3324 = vmatpush.bf16.msra.mxu2 %v4841_v16 }
0x1f64   : > { %3210 = vrot.lane.b32.xlu2 %v6225_v15, %s6666_s29 }
0x1f65   : > { %v5286_v44 = vpop.eup %5285 }
0x1f66   : > { %v2986_v3 = vpop.xlane.xlu1 %2985  ;;  %v2850_v18 = vmul.f32 %v5286_v44, %v6345_v61 }
0x1f67   : > { %v2943_v24 = vpop.f32.mrf.mxu1 }
0x1f6c   : > { %5039 = vrot.lane.b32.xlu2 %v5038_v50, %s6665_s5 }
0x1f6f   : > { %v2945_v12 = vpop.f32.mrf.mxu1 }
0x1f70   : > { %v5048_v39 = vpack.i.bf16 %v2945_v12, %v2943_v24 }
0x1f74   : > { %5049 = vrot.lane.b32.xlu2 %v5048_v39, %s6667_s20 }
0x1f76   : > { %v2847_v1 = vpop.xlane.xlu2 %2846 }
0x1f77   : > { %5287 = vrcp.f32 %v2847_v1  ;;  %v4840_v1 = vld [vmem:[#allocation7 + $0xf0] sm:$0xff] }
0x1f78   : > { %3325 = vmatpush.bf16.msra.mxu2 %v4840_v1 }
0x1f7d   : > { %v5288_v63 = vpop.eup %5287 }
0x1f7e   : > { %v2851_v20 = vmul.f32 %v5288_v63, %v5274_v8  ;;  %v3138_v15 = vpop.permute.xlu2 %3137  ;;  %v2996_v25 = vpop.permute.xlu1 %2995 }
0x1f7f   : > { %v3143_v10 = vand.u32 %v3138_v15, %v5738_v13  ;;  %v3001_v57 = vand.u32 %v2996_v25, %v5738_v13  ;;  %v2989_v31 = vpop.xlane.xlu0 %2988 }
0x1f80   : > { %v2852_v26 = vpack.c.bf16 %v2851_v20, %v2850_v18  ;;  %5289 = vrcp.f32 %v2989_v31 }
0x1f81   : > { %3010 = vmatpush.bf16.msrb.mxu0 %v3001_v57  ;;  %5291 = vrcp.f32 %v2986_v3 }
0x1f82   : > { %4660 = vmatmul.msk.bf16.vlgmr.msra.gmra.mxu0 %vm694_vm10, %v2852_v26  ;;  %5293 = vrcp.f32 %v6350_v6 }
0x1f83   : > { %5295 = vrcp.f32 %v3059_v11 }
0x1f85   : > { %3152 = vmatpush.bf16.msra.mxu0 %v3143_v10 }
0x1f86   : > { %v5290_v27 = vpop.eup %5289 }
0x1f87   : > { %v5292_v61 = vpop.eup %5291  ;;  %v2993_v28 = vmul.f32 %v5290_v27, %v6357_v43 }
0x1f88   : > { %v5294_v48 = vpop.eup %5293  ;;  %v2992_v19 = vmul.f32 %v5292_v61, %v6352_v53 }
0x1f89   : > { %v5296_v59 = vpop.eup %5295  ;;  %v3066_v29 = vmul.f32 %v5294_v48, %v6317_v41 }
0x1f8a   : > { %v2994_v62 = vpack.c.bf16 %v2993_v28, %v2992_v19  ;;  %v3065_v8 = vmul.f32 %v5296_v59, %v6311_v35 }
0x1f8c   : > { %v3067_v6 = vpack.c.bf16 %v3066_v29, %v3065_v8 }
0x1f91   : > { %v3069_v0 = vpop.permute.xlu0 %3068 }
0x1f92   : > { %v3074_v37 = vand.u32 %v3069_v0, %v5738_v13  ;;  %4664 = vmatmul.msk.bf16.vlgmr.msrb.gmra.mxu0 %vm694_vm10, %v2994_v62 }
0x1f94   : > { %3083 = vmatpush.bf16.msrb.mxu1 %v3074_v37 }
0x1f97   : > { %4666 = vmatmul.msk.bf16.vlgmr.msrb.gmra.mxu1 %vm694_vm10, %v3067_v6 }
0x1fa9   : > { %v3201_v34 = vpop.xlane.xlu1 %3200 }
0x1fb7   : > { %v3128_v23 = vpop.xlane.xlu2 %3127 }
0x1fb8   : > { %5297 = vrcp.f32 %v3128_v23 }
0x1fbc   : > { %v3204_v43 = vpop.xlane.xlu0 %3203 }
0x1fbd   : > { %5299 = vrcp.f32 %v3204_v43 }
0x1fbe   : > { %5301 = vrcp.f32 %v3201_v34  ;;  %v5298_v41 = vpop.eup %5297 }
0x1fbf   : > { %v3131_v53 = vpop.xlane.xlu2 %3130  ;;  %v3134_v35 = vmul.f32 %v5298_v41, %v6377_v17 }
0x1fc0   : > { %5303 = vrcp.f32 %v3131_v53 }
0x1fc3   : > { %v5300_v22 = vpop.eup %5299 }
0x1fc4   : > { %v5302_v36 = vpop.eup %5301  ;;  %v3208_v47 = vmul.f32 %v5300_v22, %v6381_v7 }
0x1fc5   : > { %v3207_v5 = vmul.f32 %v5302_v36, %v6369_v21 }
0x1fc6   : > { %v5304_v55 = vpop.eup %5303 }
0x1fc7   : > { %v3135_v45 = vmul.f32 %v5304_v55, %v6383_v4  ;;  %v3211_v42 = vpop.permute.xlu2 %3210  ;;  %v3209_v58 = vpack.c.bf16 %v3208_v47, %v3207_v5 }
0x1fc8   : > { %v3216_v51 = vand.u32 %v3211_v42, %v5738_v13 }
0x1fc9   : > { %v3136_v49 = vpack.c.bf16 %v3135_v45, %v3134_v35 }
0x1fca   : > { %3225 = vmatpush.bf16.msra.mxu1 %v3216_v51 }
0x1fcb   : > { %4668 = vmatmul.msk.bf16.vlgmr.msra.gmra.mxu0 %vm694_vm10, %v3136_v49 }
0x1fcd   : > { %4670 = vmatmul.msk.bf16.vlgmr.msra.gmra.mxu1 %vm694_vm10, %v3209_v58 }
0x1fcf   : > { %v5040_v39 = vpop.permute.xlu2 %5039 }
0x1fd0   : > { %v5042_v18 = vunpack.i.h.bf16 %v5040_v39  ;;  %v5041_v20 = vunpack.i.l.bf16 %v5040_v39 }
0x1fd2   : > { %v3289_v10 = vsel %vm671_vm9, %v6291_v46, %v5042_v18  ;;  %v3288_v57 = vsel %vm671_vm9, %v6285_v9, %v5041_v20 }
0x1fd7   : > { %v5050_v3 = vpop.permute.xlu2 %5049 }
0x1fd8   : > { %v5052_v48 = vunpack.i.h.bf16 %v5050_v3  ;;  %v5051_v19 = vunpack.i.l.bf16 %v5050_v3 }
0x1fff   : > { %v2870_v54 = vpop.f32.mrf.mxu0 }
0x2007   : > { %v2872_v32 = vpop.f32.mrf.mxu0 }
0x2008   : > { %v5043_v14 = vpack.i.bf16 %v2872_v32, %v2870_v54 }
0x200a   : > { %5044 = vrot.lane.b32.xlu1 %v5043_v14, %s6668_s14 }
0x200f   : > { %v3012_v17 = vpop.f32.mrf.mxu0 }
0x2014   : > { %v3085_v7 = vpop.f32.mrf.mxu1 }
0x2017   : > { %v3014_v4 = vpop.f32.mrf.mxu0 }
0x2018   : > { %v5058_v52 = vpack.i.bf16 %v3014_v4, %v3012_v17 }
0x201a   : > { %5059 = vrot.lane.b32.xlu0 %v5058_v52, %s5551_s30 }
0x201c   : > { %v3087_v30 = vpop.f32.mrf.mxu1 }
0x201d   : > { %v5053_v21 = vpack.i.bf16 %v3087_v30, %v3085_v7 }
0x201f   : > { %5054 = vrot.lane.b32.xlu2 %v5053_v21, %s5550_s9 }
0x2048   : > { %v3154_v56 = vpop.f32.mrf.mxu0 }
0x204a   : > { %v3227_v60 = vpop.f32.mrf.mxu1 }
0x2050   : > { %v3156_v24 = vpop.f32.mrf.mxu0 }
0x2051   : > { %v5063_v50 = vpack.i.bf16 %v3156_v24, %v3154_v56  ;;  %v4843_v56 = vld [vmem:[#allocation7 + $0x108] sm:$0xff] }
0x2052   : > { %v3229_v11 = vpop.f32.mrf.mxu1  ;;  %3406 = vmatpush.bf16.msrb.mxu0 %v4843_v56 }
0x2053   : > { %v5068_v12 = vpack.i.bf16 %v3229_v11, %v3227_v60  ;;  %5064 = vrot.lane.b32.xlu2 %v5063_v50, %s6658_s6  ;;  %v4842_v50 = vld [vmem:[#allocation7 + $0x100] sm:$0xff]  ;;  %s6683_s6 = smov 120  }
0x2055   : > { %5069 = vrot.lane.b32.xlu0 %v5068_v12, %s5552_s7 }
0x2056   : > { %3407 = vmatpush.bf16.msrb.mxu0 %v4842_v50 }
0x2079   : > { %v5055_v44 = vpop.permute.xlu2 %5054 }
0x207a   : > { %v5057_v9 = vunpack.i.h.bf16 %v5055_v44  ;;  %v5056_v6 = vunpack.i.l.bf16 %v5055_v44 }
0x207c   : > { %v5045_v63 = vpop.permute.xlu1 %5044 }
0x207d   : > { %v5047_v15 = vunpack.i.h.bf16 %v5045_v63  ;;  %v5046_v25 = vunpack.i.l.bf16 %v5045_v63 }
0x207f   : > { %v3291_v31 = vsel %vm1302_vm0, %v3289_v10, %v5047_v15  ;;  %v3290_v27 = vsel %vm1302_vm0, %v3288_v57, %v5046_v25 }
0x2080   : > { %v3292_v29 = vsel %vm1305_vm2, %v3290_v27, %v5051_v19  ;;  %v3293_v62 = vsel %vm1305_vm2, %v3291_v31, %v5052_v48  ;;  %v3378_v31 = vperm.slane %v6217_v2, 6  ;;  %v3381_v48 = vperm.slane %v6217_v2, 7  ;;  %v4845_v2 = vld [vmem:[#allocation7 + $0x118] sm:$0xff] }
0x208c   : > { %v5060_v26 = vpop.permute.xlu0 %5059 }
0x208d   : > { %v5062_v61 = vunpack.i.h.bf16 %v5060_v26  ;;  %v5061_v28 = vunpack.i.l.bf16 %v5060_v26 }
0x208f   : > { %v3294_v0 = vsel %vm1308_vm3, %v3292_v29, %v5061_v28  ;;  %v3295_v46 = vsel %vm1308_vm3, %v3293_v62, %v5062_v61 }
0x2090   : > { %v3296_v34 = vsel %vm1311_vm4, %v3294_v0, %v5056_v6  ;;  %v3297_v43 = vsel %vm1311_vm4, %v3295_v46, %v5057_v9  ;;  %v4849_v9 = vld [vmem:[#allocation7 + $0x138] sm:$0xff]  ;;  %v4848_v6 = vld [vmem:[#allocation7 + $0x130] sm:$0xff] }
0x20ad   : > { %v5065_v59 = vpop.permute.xlu2 %5064 }
0x20ae   : > { %v5067_v37 = vunpack.i.h.bf16 %v5065_v59  ;;  %v5066_v8 = vunpack.i.l.bf16 %v5065_v59 }
0x20b0   : > { %v3298_v22 = vsel %vm6679_vm14, %v3296_v34, %v5066_v8  ;;  %v3299_v36 = vsel %vm6680_vm15, %v3297_v43, %v5067_v37  ;;  %v4851_v37 = vld [vmem:[#allocation7 + $0x148] sm:$0xff]  ;;  %v4850_v8 = vld [vmem:[#allocation7 + $0x140] sm:$0xff]  ;;  %v4844_v43 = vld [vmem:[#allocation7 + $0x110] sm:$0xff] }
0x20b1   : > { %3481 = vmatpush.bf16.msra.mxu3 %v4851_v37  ;;  %v4846_v34 = vld [vmem:[#allocation7 + $0x120] sm:$0xff]  ;;  %v6469_v37 = vld [vmem:[#allocation2 + $0x18] sm:$0xf] }
0x20b5   : > { %3482 = vmatpush.bf16.msra.mxu3 %v4850_v8 }
0x20b9   : > { %3483 = vmatpush.bf16.msra.mxu3 %v4849_v9 }
0x20bd   : > { %3484 = vmatpush.bf16.msra.mxu3 %v4848_v6 }
0x20c7   : > { %v5070_v23 = vpop.permute.xlu0 %5069 }
0x20c8   : > { %v5072_v53 = vunpack.i.h.bf16 %v5070_v23  ;;  %v5071_v41 = vunpack.i.l.bf16 %v5070_v23  ;;  %v4847_v23 = vld [vmem:[#allocation7 + $0x128] sm:$0xff] }
0x20c9   : > { %3485 = vmatpush.bf16.msra.mxu3 %v4847_v23  ;;  %v3570_v23 = vperm.slane %v6469_v37, 0 }
0x20ca   : > { %v3300_v55 = vsel %vm6681_vm5, %v3298_v22, %v5071_v41  ;;  %v3301_v35 = vsel %vm6682_vm6, %v3299_v36, %v5072_v53 }
0x20cb   : > { %v3302_v47 = vpack.c.bf16 %v3301_v35, %v3300_v55 }
0x20cd   : > { %4679 = vmatmul.msk.bf16.vlgmr.msra.gmra.mxu2 %vm473_vm12, %v3302_v47  ;;  %3486 = vmatpush.bf16.msra.mxu3 %v4846_v34 }
0x20d1   : > { %3487 = vmatpush.bf16.msra.mxu3 %v4845_v2 }
0x20d5   : > { %3488 = vmatpush.bf16.msra.mxu3 %v4844_v43 }
0x2150   : > { %v3327_v45 = vpop.f32.mrf.mxu2 }
0x2151   : > { %v6435_v42 = vadd.f32 %v3327_v45, %v6200_v33 }
0x2153   : > { %v3334_v51 = vsel %vm473_vm12, %v6435_v42, 0.0 }
0x2154   : > { %3335 = vadd.xlane.f32.xlu2 %v3334_v51 }
0x2158   : > { %v3329_v5 = vpop.f32.mrf.mxu2 }
0x2159   : > { %v6440_v49 = vadd.f32 %v3329_v5, %v6205_v40 }
0x215b   : > { %v3337_v58 = vsel %vm542_vm13, %v6440_v49, 0.0 }
0x215c   : > { %3338 = vadd.xlane.f32.xlu1 %v3337_v58 }
0x21c7   : > { %v3336_v54 = vpop.xlane.xlu2 %3335 }
0x21c8   : > { %v3340_v32 = vmul.f32 %v3336_v54, %v5692_v38 }
0x21ca   : > { %v3342_v14 = vsub.f32 %v6435_v42, %v3340_v32 }
0x21cc   : > { %v3344_v17 = vmul.f32 %v3342_v14, %v3342_v14 }
0x21ce   : > { %v3346_v33 = vsel %vm473_vm12, %v3344_v17, 0.0 }
0x21cf   : > { %3347 = vadd.xlane.f32.xlu0 %v3346_v33  ;;  %v3339_v7 = vpop.xlane.xlu1 %3338 }
0x21d0   : > { %v3341_v4 = vmul.f32 %v3339_v7, %v5692_v38 }
0x21d2   : > { %v3343_v52 = vsub.f32 %v6440_v49, %v3341_v4 }
0x21d4   : > { %v3345_v40 = vmul.f32 %v3343_v52, %v3343_v52 }
0x21d6   : > { %v3349_v30 = vsel %vm542_vm13, %v3345_v40, 0.0 }
0x21d7   : > { %3350 = vadd.xlane.f32.xlu2 %v3349_v30 }
0x2242   : > { %v3348_v21 = vpop.xlane.xlu0 %3347 }
0x2243   : > { %v3352_v60 = vmul.f32 %v3348_v21, %v5692_v38 }
0x2245   : > { %v3354_v24 = vadd.f32 1e-05, %v3352_v60 }
0x2247   : > { %5305 = vrsqrt.f32 %v3354_v24  ;;  %vm3362_vm8 = vweird.f32 %v3354_v24 }
0x224a   : > { %v3351_v11 = vpop.xlane.xlu2 %3350 }
0x224b   : > { %v3353_v12 = vmul.f32 %v3351_v11, %v5692_v38 }
0x224d   : > { %v5306_v16 = vpop.eup %5305  ;;  %v3355_v39 = vadd.f32 1e-05, %v3353_v12 }
0x224e   : > { %v3357_v1 = vmul.f32 %v5306_v16, %v3354_v24  ;;  %vm3363_vm7 = vweird.f32 %v5306_v16 }
0x224f   : > { %5307 = vrsqrt.f32 %v3355_v39  ;;  %vm3364_vm14 = vmor %vm3362_vm8, %vm3363_vm7  ;;  %vm3372_vm5 = vweird.f32 %v3355_v39 }
0x2250   : > { %v3358_v3 = vmul.f32 %v5306_v16, %v3357_v1 }
0x2252   : > { %v3359_v44 = vmul.f32 0.5, %v3358_v3 }
0x2254   : > { %v3360_v63 = vsub.f32 1.5, %v3359_v44 }
0x2255   : > { %v5308_v18 = vpop.eup %5307 }
0x2256   : > { %v3361_v20 = vmul.f32 %v5306_v16, %v3360_v63  ;;  %v3367_v15 = vmul.f32 %v5308_v18, %v3355_v39  ;;  %vm3373_vm15 = vweird.f32 %v5308_v18 }
0x2257   : > { %vm3374_vm6 = vmor %vm3372_vm5, %vm3373_vm15 }
0x2258   : > { %v3368_v25 = vmul.f32 %v5308_v18, %v3367_v15  ;;  %v3365_v26 = vsel %vm3364_vm14, %v5306_v16, %v3361_v20  ;;  %v4853_v15 = vld [vmem:[#allocation7 + $0x158] sm:$0xff] }
0x2259   : > { %v3376_v27 = vmul.f32 %v3365_v26, %v3342_v14  ;;  %3598 = vmatpush.bf16.msrb.mxu1 %v4853_v15 }
0x225a   : > { %v3369_v10 = vmul.f32 0.5, %v3368_v25 }
0x225b   : > { %v3379_v19 = vmul.f32 %v3378_v31, %v3376_v27 }
0x225c   : > { %v3370_v57 = vsub.f32 1.5, %v3369_v10  ;;  %v4852_v10 = vld [vmem:[#allocation7 + $0x150] sm:$0xff] }
0x225d   : > { %v3382_v62 = vadd.f32 %v3381_v48, %v3379_v19  ;;  %3599 = vmatpush.bf16.msrb.mxu1 %v4852_v10 }
0x225e   : > { %v3371_v61 = vmul.f32 %v5308_v18, %v3370_v57 }
0x2260   : > { %v3375_v28 = vsel %vm3374_vm6, %v5308_v18, %v3371_v61 }
0x2261   : > { %v3377_v59 = vmul.f32 %v3375_v28, %v3343_v52 }
0x2263   : > { %v3380_v29 = vmul.f32 %v3378_v31, %v3377_v59 }
0x2265   : > { %v3383_v0 = vadd.f32 %v3381_v48, %v3380_v29 }
0x2267   : > { %v3384_v46 = vpack.c.bf16 %v3383_v0, %v3382_v62 }
0x2269   : > { %4688 = vmatmul.msk.bf16.vlgmr.msrb.gmra.mxu0 %vm473_vm12, %v3384_v46 }
0x22e6   : > { %v3409_v53 = vpop.f32.mrf.mxu0 }
0x22e7   : > { %v3414_v41 = vmul.f32 %v3409_v53, %v3409_v53 }
0x22e9   : > { %v3416_v22 = vmul.f32 %v3414_v41, %v3409_v53 }
0x22eb   : > { %v3418_v36 = vmul.f32 0.044715, %v3416_v22 }
0x22ed   : > { %v3420_v55 = vadd.f32 %v3418_v36, %v3409_v53 }
0x22ee   : > { %v3411_v35 = vpop.f32.mrf.mxu0 }
0x22ef   : > { %v3422_v47 = vmul.f32 0.7978846, %v3420_v55  ;;  %v3415_v45 = vmul.f32 %v3411_v35, %v3411_v35 }
0x22f1   : > { %v3417_v51 = vmul.f32 %v3415_v45, %v3411_v35  ;;  %5309 = vtanh.f32 %v3422_v47 }
0x22f3   : > { %v3419_v5 = vmul.f32 0.044715, %v3417_v51 }
0x22f5   : > { %v3421_v58 = vadd.f32 %v3419_v5, %v3411_v35 }
0x22f7   : > { %v3423_v54 = vmul.f32 0.7978846, %v3421_v58  ;;  %v5310_v32 = vpop.eup %5309 }
0x22f8   : > { %v3426_v14 = vadd.f32 1.0, %v5310_v32 }
0x22f9   : > { %5311 = vtanh.f32 %v3423_v54 }
0x22fa   : > { %v3428_v33 = vmul.f32 0.5, %v3426_v14 }
0x22fc   : > { %v3430_v52 = vmul.f32 %v3428_v33, %v3409_v53  ;;  %v3573_v53 = vperm.slane %v6469_v37, 1 }
0x22ff   : > { %v5312_v17 = vpop.eup %5311 }
0x2300   : > { %v3427_v7 = vadd.f32 1.0, %v5312_v17 }
0x2302   : > { %v3429_v4 = vmul.f32 0.5, %v3427_v7 }
0x2304   : > { %v3431_v40 = vmul.f32 %v3429_v4, %v3411_v35 }
0x2306   : > { %v3432_v30 = vpack.c.bf16 %v3431_v40, %v3430_v52 }
0x2308   : > { %3489 = vmatmul.bf16.vlgmr.msra.gmra.mxu3 %v3432_v30 }
0x238b   : > { %v3490_v21 = vpop.f32.mrf.mxu3 }
0x238c   : > { %v3495_v56 = vadd.f32 %v3490_v21, %v6435_v42 }
0x238e   : > { %v3526_v60 = vsel %vm473_vm12, %v3495_v56, 0.0 }
0x238f   : > { %3527 = vadd.xlane.f32.xlu1 %v3526_v60 }
0x2393   : > { %v3492_v24 = vpop.f32.mrf.mxu3 }
0x2394   : > { %v6458_v50 = vadd.f32 %v3492_v24, %v6440_v49 }
0x2396   : > { %v3529_v11 = vsel %vm542_vm13, %v6458_v50, 0.0 }
0x2397   : > { %3530 = vadd.xlane.f32.xlu0 %v3529_v11 }
0x2402   : > { %v3528_v12 = vpop.xlane.xlu1 %3527 }
0x2403   : > { %v3532_v16 = vmul.f32 %v3528_v12, %v5692_v38 }
0x2405   : > { %v3534_v39 = vsub.f32 %v3495_v56, %v3532_v16 }
0x2407   : > { %v3536_v1 = vmul.f32 %v3534_v39, %v3534_v39 }
0x2409   : > { %v3538_v3 = vsel %vm473_vm12, %v3536_v1, 0.0 }
0x240a   : > { %3539 = vadd.xlane.f32.xlu2 %v3538_v3  ;;  %v3531_v42 = vpop.xlane.xlu0 %3530 }
0x240b   : > { %v3533_v44 = vmul.f32 %v3531_v42, %v5692_v38 }
0x240d   : > { %v3535_v63 = vsub.f32 %v6458_v50, %v3533_v44 }
0x240f   : > { %v3537_v18 = vmul.f32 %v3535_v63, %v3535_v63 }
0x2411   : > { %v3541_v49 = vsel %vm542_vm13, %v3537_v18, 0.0 }
0x2412   : > { %3542 = vadd.xlane.f32.xlu1 %v3541_v49 }
0x247d   : > { %v3540_v20 = vpop.xlane.xlu2 %3539 }
0x247e   : > { %v3544_v25 = vmul.f32 %v3540_v20, %v5692_v38 }
0x2480   : > { %v3546_v26 = vadd.f32 1e-05, %v3544_v25 }
0x2482   : > { %5313 = vrsqrt.f32 %v3546_v26  ;;  %vm3554_vm8 = vweird.f32 %v3546_v26 }
0x2485   : > { %v3543_v57 = vpop.xlane.xlu1 %3542 }
0x2486   : > { %v3545_v31 = vmul.f32 %v3543_v57, %v5692_v38 }
0x2488   : > { %v5314_v27 = vpop.eup %5313  ;;  %v3547_v61 = vadd.f32 1e-05, %v3545_v31 }
0x2489   : > { %v3549_v28 = vmul.f32 %v5314_v27, %v3546_v26  ;;  %vm3555_vm7 = vweird.f32 %v5314_v27 }
0x248a   : > { %5315 = vrsqrt.f32 %v3547_v61  ;;  %vm3556_vm14 = vmor %vm3554_vm8, %vm3555_vm7  ;;  %vm3564_vm5 = vweird.f32 %v3547_v61 }
0x248b   : > { %v3550_v48 = vmul.f32 %v5314_v27, %v3549_v28 }
0x248d   : > { %v3551_v19 = vmul.f32 0.5, %v3550_v48 }
0x248f   : > { %v3552_v59 = vsub.f32 1.5, %v3551_v19 }
0x2490   : > { %v5316_v29 = vpop.eup %5315 }
0x2491   : > { %v3553_v62 = vmul.f32 %v5314_v27, %v3552_v59  ;;  %v3559_v0 = vmul.f32 %v5316_v29, %v3547_v61  ;;  %vm3565_vm15 = vweird.f32 %v5316_v29 }
0x2492   : > { %vm3566_vm6 = vmor %vm3564_vm5, %vm3565_vm15 }
0x2493   : > { %v3560_v46 = vmul.f32 %v5316_v29, %v3559_v0  ;;  %v3557_v8 = vsel %vm3556_vm14, %v5314_v27, %v3553_v62 }
0x2494   : > { %v3568_v34 = vmul.f32 %v3557_v8, %v3534_v39 }
0x2495   : > { %v3561_v9 = vmul.f32 0.5, %v3560_v46 }
0x2496   : > { %v3571_v41 = vmul.f32 %v3570_v23, %v3568_v34 }
0x2497   : > { %v3562_v6 = vsub.f32 1.5, %v3561_v9 }
0x2498   : > { %v3574_v55 = vadd.f32 %v3573_v53, %v3571_v41 }
0x2499   : > { %v3563_v2 = vmul.f32 %v5316_v29, %v3562_v6 }
0x249b   : > { %v3567_v43 = vsel %vm3566_vm6, %v5316_v29, %v3563_v2 }
0x249c   : > { %v3569_v22 = vmul.f32 %v3567_v43, %v3535_v63 }
0x249e   : > { %v3572_v36 = vmul.f32 %v3570_v23, %v3569_v22 }
0x24a0   : > { %v3575_v35 = vadd.f32 %v3573_v53, %v3572_v36 }
0x24a2   : > { %v3576_v47 = vpack.c.bf16 %v3575_v35, %v3574_v55 }
0x24a4   : > { %4729 = vmatmul.msk.bf16.vlgmr.msrb.gmra.mxu1 %vm473_vm12, %v3576_v47 }
0x2521   : > { %v3601_v45 = vpop.f32.mrf.mxu1 }
0x2522   : > { %3608 = vrot.lane.b32.xlu0 %v3601_v45, %s5531_s10  ;;  %v3650_v51 = vpack.c.bf16 %v3601_v45, %v3601_v45 }
0x2524   : > { %v3686_v54 = vunpack.c.l.b16 %v3650_v51 }
0x2529   : > { %v3603_v5 = vpop.f32.mrf.mxu1 }
0x252a   : > { %v3651_v58 = vpack.c.bf16 %v3603_v5, %v3603_v5  ;;  %3610 = vrot.lane.b32.xlu2 %v3603_v5, %s5531_s10  ;;  %s6684_s10 = smov 64  }
0x252c   : > { %v3687_v32 = vunpack.c.l.b16 %v3651_v58 }
0x252e   : > { %v6476_v14 = vpack.c.b16 %v3687_v32, %v3686_v54  ;;  %v3710_v7 = vpack.c.b16 %v3687_v32, %v3687_v32 }
0x2584   : > { %v3611_v33 = vpop.permute.xlu2 %3610 }
0x2594   : > { %v3609_v17 = vpop.permute.xlu0 %3608 }
0x2595   : > { %3614 = vxpose.xlu1.b32.start [1/2] (short) (narrow) %v3609_v17, 32 }
0x259d   : > { %3615 = vxpose.xlu1.b32.end [2/2] (short) (narrow) %v3611_v33, 32 }
0x2607   : > { %3770 = vrot.lane.b32.xlu1 %v3710_v7, %s6683_s6  ;;  %s6685_s6 = smov 116  }
0x2639   : > { %v3630_v4 = vpop.trf.xlu1 }
0x263a   : > { %v3646_v52 = vpack.c.bf16 %v3630_v4, %v3630_v4 }
0x263c   : > { %v3656_v40 = vsel %vm255_vm1, %v3646_v52, 0  ;;  %v3714_v30 = vunpack.c.l.b16 %v3646_v52 }
0x263d   : > { %3665 = vmatpush.bf16.msrb.mxu2 %v3656_v40 }
0x263e   : > { %v3715_v21 = vpack.c.b16 %v3714_v30, %v3714_v30 }
0x2640   : > { %v3716_v56 = vrot.slane %v3715_v21, 2  ;;  %4730 = vmatmul.msk.bf16.vlgmr.msrb.gmra.mxu2 %vm671_vm9, %v3651_v58 }
0x2641   : > { %v3631_v63 = vpop.trf.xlu1 }
0x2642   : > { %v3721_v60 = vsel %vm255_vm1, %v3716_v56, 0  ;;  %v3647_v18 = vpack.c.bf16 %v3631_v63, %v3631_v63 }
0x2643   : > { %3730 = vmatpush.bf16.msra.mxu1 %v3721_v60 }
0x2644   : > { %v3776_v20 = vsel %vm255_vm1, %v3647_v18, 0  ;;  %v3828_v25 = vunpack.c.l.b16 %v3647_v18 }
0x2646   : > { %v3829_v26 = vpack.c.b16 %v3828_v25, %v3828_v25 }
0x2648   : > { %v3830_v10 = vrot.slane %v3829_v26, 2 }
0x2649   : > { %v3632_v31 = vpop.trf.xlu1 }
0x264a   : > { %v3835_v57 = vsel %vm255_vm1, %v3830_v10, 0  ;;  %v3648_v27 = vpack.c.bf16 %v3632_v31, %v3632_v31 }
0x264b   : > { %3844 = vmatpush.bf16.msrb.mxu1 %v3835_v57 }
0x264c   : > { %v3942_v61 = vunpack.c.l.b16 %v3648_v27  ;;  %v3890_v9 = vsel %vm255_vm1, %v3648_v27, 0 }
0x264e   : > { %v3943_v28 = vpack.c.b16 %v3942_v61, %v3942_v61 }
0x2650   : > { %v3944_v19 = vrot.slane %v3943_v28, 2 }
0x2651   : > { %v3633_v59 = vpop.trf.xlu1 }
0x2652   : > { %v3649_v62 = vpack.c.bf16 %v3633_v59, %v3633_v59  ;;  %v3949_v0 = vsel %vm255_vm1, %v3944_v19, 0 }
0x2654   : > { %v4056_v23 = vunpack.c.l.b16 %v3649_v62  ;;  %v4004_v41 = vsel %vm255_vm1, %v3649_v62, 0 }
0x2656   : > { %v4057_v34 = vpack.c.b16 %v4056_v23, %v4056_v23 }
0x2658   : > { %v4058_v2 = vrot.slane %v4057_v34, 2 }
0x265a   : > { %v4063_v43 = vsel %vm255_vm1, %v4058_v2, 0  ;;  %vm6690_vm1 = vcmask 195584  }
0x2679   : > { %v3771_v22 = vpop.permute.xlu1 %3770 }
0x26c3   : > { %v3667_v24 = vpop.f32.mrf.mxu2 }
0x26c4   : > { %v3671_v11 = vmul.f32 0.5, %v3667_v24 }
0x26c6   : > { %v3672_v12 = vsel %vm698_vm11, %v3671_v11, -inf }
0x26c7   : > { %3673 = vmax.xlane.f32.xlu0 %v3672_v12 }
0x26cb   : > { %v3669_v16 = vpop.f32.mrf.mxu2 }
0x26db   : > { %3689 = vrot.lane.b32.xlu0 %v6476_v14, %s6684_s10  ;;  %s6688_s10 = smov 100  }
0x26e3   : > { %3825 = vrot.lane.b32.xlu0 %v3710_v7, %s6685_s6 }
0x26eb   : > { %3884 = vrot.lane.b32.xlu0 %v3710_v7, %s6673_s28  ;;  %s6686_s28 = smov 124  }
0x26f3   : > { %3998 = vrot.lane.b32.xlu0 %v3710_v7, %s6674_s23  ;;  %s6687_s23 = smov 108  }
0x273a   : > { %v3674_v39 = vpop.xlane.xlu0 %3673 }
0x273b   : > { %v3675_v1 = vsub.f32 %v3671_v11, %v3674_v39 }
0x273d   : > { %v3676_v3 = vmul.f32 1.442695, %v3675_v1 }
0x273f   : > { %5317 = vpow2.f32 %v3676_v3 }
0x2745   : > { %v5318_v42 = vpop.eup %5317 }
0x2746   : > { %v3678_v44 = vsel %vm698_vm11, %v5318_v42, 0.0 }
0x2747   : > { %3679 = vadd.xlane.f32.xlu2 %v3678_v44 }
0x274d   : > { %v3690_v49 = vpop.permute.xlu0 %3689 }
0x274e   : > { %v3695_v15 = vand.u32 %v3690_v49, %v5738_v13 }
0x2750   : > { %3704 = vmatpush.bf16.msra.mxu0 %v3695_v15 }
0x2754   : > { %3785 = vmatpush.bf16.msrb.mxu0 %v3776_v20 }
0x2755   : > { %v3826_v53 = vpop.permute.xlu0 %3825 }
0x275d   : > { %v3885_v55 = vpop.permute.xlu0 %3884 }
0x275f   : > { %3711 = vrot.lane.b32.xlu2 %v3710_v7, %s6686_s28 }
0x2765   : > { %v3999_v47 = vpop.permute.xlu0 %3998 }
0x2767   : > { %3939 = vrot.lane.b32.xlu2 %v3710_v7, %s6687_s23 }
0x276f   : > { %4053 = vrot.lane.b32.xlu2 %v3710_v7, %s6688_s10 }
0x27ba   : > { %v3680_v48 = vpop.xlane.xlu2 %3679 }
0x27bb   : > { %5319 = vrcp.f32 %v3680_v48 }
0x27c1   : > { %v5320_v29 = vpop.eup %5319 }
0x27c2   : > { %v3682_v46 = vmul.f32 %v5320_v29, %v5318_v42  ;;  %v3712_v8 = vpop.permute.xlu2 %3711 }
0x27c3   : > { %4732 = vmatmul.msk.bf16.vlgmr.msra.gmra.mxu1 %vm671_vm9, %v3712_v8 }
0x27c4   : > { %v3683_v6 = vpack.c.bf16 %v3682_v46, %v3682_v46  ;;  %3958 = vmatpush.bf16.msra.mxu1 %v3949_v0 }
0x27c6   : > { %4731 = vmatmul.msk.bf16.vlgmr.msra.gmra.mxu0 %vm694_vm10, %v3683_v6 }
0x27c7   : > { %3899 = vmatpush.bf16.msra.mxu0 %v3890_v9 }
0x27ca   : > { %v3940_v36 = vpop.permute.xlu2 %3939 }
0x27d2   : > { %v4054_v35 = vpop.permute.xlu2 %4053 }
0x27d3   : > { %4736 = vmatmul.msk.bf16.vlgmr.msrb.gmra.mxu1 %vm671_vm9, %v3826_v53 }
0x27d4   : > { %4072 = vmatpush.bf16.msrb.mxu1 %v4063_v43 }
0x27d6   : > { %4734 = vmatmul.msk.bf16.vlgmr.msrb.gmra.mxu0 %vm671_vm9, %v3771_v22 }
0x27d7   : > { %4013 = vmatpush.bf16.msrb.mxu0 %v4004_v41 }
0x27e3   : > { %4740 = vmatmul.msk.bf16.vlgmr.msra.gmra.mxu1 %vm671_vm9, %v3940_v36 }
0x27e6   : > { %4738 = vmatmul.msk.bf16.vlgmr.msra.gmra.mxu0 %vm671_vm9, %v3885_v55 }
0x27f3   : > { %4744 = vmatmul.msk.bf16.vlgmr.msrb.gmra.mxu1 %vm671_vm9, %v4054_v35 }
0x27f6   : > { %4742 = vmatmul.msk.bf16.vlgmr.msrb.gmra.mxu0 %vm671_vm9, %v3999_v47 }
0x2840   : > { %v3732_v45 = vpop.f32.mrf.mxu1 }
0x2841   : > { %v3736_v51 = vmul.f32 0.5, %v3732_v45 }
0x2843   : > { %v6507_v5 = vpop.f32.mrf.mxu0  ;;  %v3737_v58 = vsel %vm698_vm11, %v3736_v51, -inf }
0x2844   : > { %3738 = vmax.xlane.f32.xlu0 %v3737_v58 }
0x2848   : > { %v3734_v54 = vpop.f32.mrf.mxu1 }
0x284b   : > { %v3708_v32 = vpop.f32.mrf.mxu0 }
0x2850   : > { %v3846_v17 = vpop.f32.mrf.mxu1 }
0x2851   : > { %v3850_v33 = vmul.f32 0.5, %v3846_v17 }
0x2853   : > { %v3787_v7 = vpop.f32.mrf.mxu0  ;;  %v3851_v4 = vsel %vm698_vm11, %v3850_v33, -inf }
0x2854   : > { %3852 = vmax.xlane.f32.xlu2 %v3851_v4  ;;  %v3791_v44 = vmul.f32 0.5, %v3787_v7 }
0x2856   : > { %v3792_v63 = vsel %vm698_vm11, %v3791_v44, -inf }
0x2858   : > { %3804 = vrot.lane.b32.xlu0 %v6476_v14, %s6675_s11  ;;  %v3848_v52 = vpop.f32.mrf.mxu1  ;;  %s6689_s11 = smov 24  }
0x285b   : > { %v3789_v40 = vpop.f32.mrf.mxu0 }
0x2860   : > { %v3960_v30 = vpop.f32.mrf.mxu1 }
0x2861   : > { %v3964_v21 = vmul.f32 0.5, %v3960_v30 }
0x2863   : > { %v3901_v56 = vpop.f32.mrf.mxu0  ;;  %v3965_v60 = vsel %vm698_vm11, %v3964_v21, -inf }
0x2864   : > { %3966 = vmax.xlane.f32.xlu2 %v3965_v60  ;;  %v3905_v26 = vmul.f32 0.5, %v3901_v56 }
0x2866   : > { %v3906_v28 = vsel %vm698_vm11, %v3905_v26, -inf }
0x2868   : > { %v3962_v24 = vpop.f32.mrf.mxu1 }
0x286b   : > { %v3903_v11 = vpop.f32.mrf.mxu0 }
0x2870   : > { %v4074_v12 = vpop.f32.mrf.mxu1 }
0x2871   : > { %v4078_v16 = vmul.f32 0.5, %v4074_v12 }
0x2873   : > { %v4015_v39 = vpop.f32.mrf.mxu0  ;;  %v4079_v1 = vsel %vm698_vm11, %v4078_v16, -inf }
0x2874   : > { %4080 = vmax.xlane.f32.xlu2 %v4079_v1  ;;  %v4019_v48 = vmul.f32 0.5, %v4015_v39 }
0x2876   : > { %v4020_v29 = vsel %vm698_vm11, %v4019_v48, -inf }
0x2878   : > { %v4076_v3 = vpop.f32.mrf.mxu1 }
0x287b   : > { %v4017_v42 = vpop.f32.mrf.mxu0 }
0x288c   : > { %3749 = vrot.lane.b32.xlu2 %v6476_v14, %s6677_s12  ;;  %s236_s12 = sand.u32 1, %s5510_s16  }
0x28b5   : > { %3793 = vmax.xlane.f32.xlu2 %v3792_v63 }
0x28b7   : > { %v3739_v18 = vpop.xlane.xlu0 %3738 }
0x28b8   : > { %v3740_v49 = vsub.f32 %v3736_v51, %v3739_v18 }
0x28ba   : > { %v3741_v20 = vmul.f32 1.442695, %v3740_v49 }
0x28bc   : > { %5321 = vpow2.f32 %v3741_v20 }
0x28c2   : > { %v5322_v15 = vpop.eup %5321 }
0x28c3   : > { %v3743_v25 = vsel %vm698_vm11, %v5322_v15, 0.0 }
0x28c4   : > { %3744 = vadd.xlane.f32.xlu0 %v3743_v25 }
0x28c7   : > { %v3853_v10 = vpop.xlane.xlu2 %3852 }
0x28c8   : > { %v3854_v57 = vsub.f32 %v3850_v33, %v3853_v10 }
0x28ca   : > { %v3855_v31 = vmul.f32 1.442695, %v3854_v57  ;;  %v3805_v27 = vpop.permute.xlu0 %3804 }
0x28cb   : > { %v3810_v61 = vand.u32 %v3805_v27, %v5738_v13 }
0x28cc   : > { %5323 = vpow2.f32 %v3855_v31  ;;  %3907 = vmax.xlane.f32.xlu0 %v3906_v28 }
0x28cd   : > { %3863 = vrot.lane.b32.xlu2 %v6476_v14, %s6676_s22  ;;  %3819 = vmatpush.bf16.msrb.mxu3 %v3810_v61  ;;  %s237_s22 = scalar_lea.vmem [#allocation8], %s236_s12 }
0x28d2   : > { %v5324_v19 = vpop.eup %5323 }
0x28d3   : > { %v3857_v59 = vsel %vm698_vm11, %v5324_v19, 0.0 }
0x28d4   : > { %3858 = vadd.xlane.f32.xlu1 %v3857_v59  ;;  %4021 = vmax.xlane.f32.xlu0 %v4020_v29 }
0x28d7   : > { %v3967_v62 = vpop.xlane.xlu2 %3966 }
0x28d8   : > { %v3968_v0 = vsub.f32 %v3964_v21, %v3967_v62 }
0x28da   : > { %v3969_v8 = vmul.f32 1.442695, %v3968_v0 }
0x28dc   : > { %5325 = vpow2.f32 %v3969_v8 }
0x28e2   : > { %v5326_v2 = vpop.eup %5325 }
0x28e3   : > { %v3971_v43 = vsel %vm698_vm11, %v5326_v2, 0.0 }
0x28e7   : > { %v4081_v46 = vpop.xlane.xlu2 %4080 }
0x28e8   : > { %3977 = vrot.lane.b32.xlu0 %v6476_v14, %s6664_s8  ;;  %v4082_v9 = vsub.f32 %v4078_v16, %v4081_v46  ;;  %s4337_s8 = scalar_lea.sflag [#allocation4], %s236_s12 }
0x28ea   : > { %v4083_v23 = vmul.f32 1.442695, %v4082_v9 }
0x28ec   : > { %5327 = vpow2.f32 %v4083_v23 }
0x28ed   : > { %3918 = vrot.lane.b32.xlu1 %v6476_v14, %s6678_s13 }
0x28ef   : > { %v3750_v6 = vpop.permute.xlu2 %3749 }
0x28f0   : > { %v3755_v34 = vand.u32 %v3750_v6, %v5738_v13 }
0x28f2   : > { %3764 = vmatpush.bf16.msra.mxu2 %v3755_v34  ;;  %v6531_v53 = vpop.eup %5327 }
0x28f3   : > { %v4085_v41 = vsel %vm698_vm11, %v6531_v53, 0.0 }
0x28f6   : > { %3972 = vadd.xlane.f32.xlu2 %v3971_v43 }
0x28fe   : > { %4086 = vadd.xlane.f32.xlu2 %v4085_v41 }
0x2916   : > { %4032 = vrot.lane.b32.xlu2 %v6476_v14, %s6663_s27 }
0x2928   : > { %v3794_v22 = vpop.xlane.xlu2 %3793 }
0x2929   : > { %v3795_v36 = vsub.f32 %v3791_v44, %v3794_v22 }
0x292b   : > { %v3796_v55 = vmul.f32 1.442695, %v3795_v36 }
0x292d   : > { %5329 = vpow2.f32 %v3796_v55 }
0x2930   : > { %v3864_v35 = vpop.permute.xlu2 %3863 }
0x2931   : > { %v3869_v47 = vand.u32 %v3864_v35, %v5738_v13 }
0x2933   : > { %v5330_v45 = vpop.eup %5329  ;;  %3878 = vmatpush.bf16.msrb.mxu2 %v3869_v47 }
0x2934   : > { %v3798_v51 = vsel %vm698_vm11, %v5330_v45, 0.0 }
0x2935   : > { %3799 = vadd.xlane.f32.xlu0 %v3798_v51 }
0x2937   : > { %v3745_v58 = vpop.xlane.xlu0 %3744 }
0x2938   : > { %5331 = vrcp.f32 %v3745_v58  ;;  %v4855_v58 = vld [vmem:[#allocation7 + $0x168] sm:$0xff] }
0x2939   : > { %4169 = vmatpush.bf16.msra.mxu0 %v4855_v58 }
0x293e   : > { %v5332_v54 = vpop.eup %5331 }
0x293f   : > { %v3747_v32 = vmul.f32 %v5332_v54, %v5322_v15  ;;  %v3908_v17 = vpop.xlane.xlu0 %3907  ;;  %v4854_v54 = vld [vmem:[#allocation7 + $0x160] sm:$0xff] }
0x2940   : > { %v3909_v33 = vsub.f32 %v3905_v26, %v3908_v17  ;;  %4170 = vmatpush.bf16.msra.mxu0 %v4854_v54 }
0x2941   : > { %v3748_v7 = vpack.c.bf16 %v3747_v32, %v3747_v32 }
0x2942   : > { %v3910_v4 = vmul.f32 1.442695, %v3909_v33 }
0x2943   : > { %4733 = vmatmul.msk.bf16.vlgmr.msra.gmra.mxu2 %vm694_vm10, %v3748_v7 }
0x2944   : > { %5333 = vpow2.f32 %v3910_v4 }
0x2947   : > { %v3859_v52 = vpop.xlane.xlu1 %3858  ;;  %v4022_v40 = vpop.xlane.xlu0 %4021 }
0x2948   : > { %5335 = vrcp.f32 %v3859_v52  ;;  %v4023_v30 = vsub.f32 %v4019_v48, %v4022_v40 }
0x294a   : > { %v5334_v21 = vpop.eup %5333  ;;  %v4024_v56 = vmul.f32 1.442695, %v4023_v30 }
0x294b   : > { %v3912_v60 = vsel %vm698_vm11, %v5334_v21, 0.0 }
0x294c   : > { %5337 = vpow2.f32 %v4024_v56  ;;  %3913 = vadd.xlane.f32.xlu0 %v3912_v60 }
0x294e   : > { %v5336_v24 = vpop.eup %5335 }
0x294f   : > { %v3861_v11 = vmul.f32 %v5336_v24, %v5324_v19 }
0x2951   : > { %v3862_v12 = vpack.c.bf16 %v3861_v11, %v3861_v11 }
0x2952   : > { %v5338_v16 = vpop.eup %5337 }
0x2953   : > { %4737 = vmatmul.msk.bf16.vlgmr.msrb.gmra.mxu2 %vm694_vm10, %v3862_v12  ;;  %v4026_v39 = vsel %vm698_vm11, %v5338_v16, 0.0 }
0x2954   : > { %4027 = vadd.xlane.f32.xlu1 %v4026_v39 }
0x295a   : > { %v3978_v1 = vpop.permute.xlu0 %3977 }
0x295b   : > { %v3983_v3 = vand.u32 %v3978_v1, %v5738_v13 }
0x295d   : > { %3992 = vmatpush.bf16.msra.mxu2 %v3983_v3 }
0x295f   : > { %v3919_v42 = vpop.permute.xlu1 %3918 }
0x2960   : > { %v3924_v44 = vand.u32 %v3919_v42, %v5738_v13  ;;  %4091 = vrot.lane.b32.xlu0 %v6476_v14, %s6666_s29  ;;  %s4347_s29 = sshll.u32 %s237_s22, 4  ;;  %s4348_s29 = int_to_ptr.vmem [resolvable:$true] %s4347_s29 }
0x2962   : > { %3933 = vmatpush.bf16.msra.mxu3 %v3924_v44 }
0x2969   : > { %v3973_v63 = vpop.xlane.xlu2 %3972 }
0x296a   : > { %5339 = vrcp.f32 %v3973_v63 }
0x2970   : > { %v5340_v18 = vpop.eup %5339 }
0x2971   : > { %v3975_v49 = vmul.f32 %v5340_v18, %v5326_v2  ;;  %v4087_v15 = vpop.xlane.xlu2 %4086 }
0x2973   : > { %v3976_v20 = vpack.c.bf16 %v3975_v49, %v3975_v49 }
0x2975   : > { %4741 = vmatmul.msk.bf16.vlgmr.msra.gmra.mxu2 %vm694_vm10, %v3976_v20  ;;  %v4857_v20 = vld [vmem:[#allocation7 + $0x178] sm:$0xff] }
0x2979   : > { %v4033_v10 = vpop.permute.xlu2 %4032 }
0x297a   : > { %v4038_v27 = vand.u32 %v4033_v10, %v5738_v13  ;;  %v4864_v10 = vld [vmem:[#allocation7 + $0x1b0] sm:$0xff] }
0x29a8   : > { %v3800_v25 = vpop.xlane.xlu0 %3799 }
0x29a9   : > { %5341 = vrcp.f32 %v3800_v25 }
0x29af   : > { %v5342_v26 = vpop.eup %5341 }
0x29b0   : > { %v3802_v57 = vmul.f32 %v5342_v26, %v5330_v45 }
0x29b2   : > { %v3803_v31 = vpack.c.bf16 %v3802_v57, %v3802_v57 }
0x29b4   : > { %4735 = vmatmul.msk.bf16.vlgmr.msrb.gmra.mxu3 %vm694_vm10, %v3803_v31 }
0x29b5   : > { %4047 = vmatpush.bf16.msrb.mxu3 %v4038_v27 }
0x29bf   : > { %v3914_v14 = vpop.xlane.xlu0 %3913 }
0x29c0   : > { %5343 = vrcp.f32 %v3914_v14 }
0x29c1   : > { %5345 = vrcp.f32 %v4087_v15  ;;  %v4856_v15 = vld [vmem:[#allocation7 + $0x170] sm:$0xff] }
0x29c6   : > { %v5344_v61 = vpop.eup %5343  ;;  %v3766_v28 = vpop.f32.mrf.mxu2 }
0x29c7   : > { %v3916_v48 = vmul.f32 %v5344_v61, %v5334_v21  ;;  %4113 = vrot.lane.b32.xlu0 %v3766_v28, %s6665_s5  ;;  %v4028_v59 = vpop.xlane.xlu1 %4027  ;;  %v5346_v62 = vpop.eup %5345 }
0x29c8   : > { %5347 = vrcp.f32 %v4028_v59  ;;  %v4089_v46 = vmul.f32 %v5346_v62, %v6531_v53 }
0x29c9   : > { %v3917_v19 = vpack.c.bf16 %v3916_v48, %v3916_v48 }
0x29ca   : > { %v4090_v23 = vpack.c.bf16 %v4089_v46, %v4089_v46 }
0x29cb   : > { %4739 = vmatmul.msk.bf16.vlgmr.msra.gmra.mxu3 %vm694_vm10, %v3917_v19  ;;  %v4200_v19 = vrot.slane %v6469_v37, 2 }
0x29cc   : > { %4228 = vmatpush.bf16.msra.mxu3 %v4857_v20 }
0x29ce   : > { %v3768_v29 = vpop.f32.mrf.mxu2  ;;  %v5348_v0 = vpop.eup %5347 }
0x29cf   : > { %v4030_v6 = vmul.f32 %v5348_v0, %v5338_v16  ;;  %v4203_v29 = vrot.slane %v6469_v37, 3 }
0x29d0   : > { %4229 = vmatpush.bf16.msra.mxu3 %v4856_v15 }
0x29d1   : > { %v4031_v2 = vpack.c.bf16 %v4030_v6, %v4030_v6  ;;  %v4862_v6 = vld [vmem:[#allocation7 + $0x1a0] sm:$0xff] }
0x29d2   : > { %v4092_v8 = vpop.permute.xlu0 %4091 }
0x29d3   : > { %v4097_v9 = vand.u32 %v4092_v8, %v5738_v13 }
0x29d5   : > { %4106 = vmatpush.bf16.msrb.mxu2 %v4097_v9  ;;  %v4863_v9 = vld [vmem:[#allocation7 + $0x1a8] sm:$0xff] }
0x29d6   : > { %v3880_v34 = vpop.f32.mrf.mxu2 }
0x29d7   : > { %4121 = vrot.lane.b32.xlu0 %v3880_v34, %s6667_s20  ;;  %v4860_v34 = vld [vmem:[#allocation7 + $0x190] sm:$0xff]  ;;  %s4345_s20 = scalar_lea.hbm %s6625_s4, %s5600_s19 }
0x29d8   : > { %4745 = vmatmul.msk.bf16.vlgmr.msrb.gmra.mxu2 %vm694_vm10, %v4090_v23  ;;  %v4861_v23 = vld [vmem:[#allocation7 + $0x198] sm:$0xff]  ;;  %s4349_s5 = sshll.u32 %s4345_s20, 4  ;;  %s4350_s5 = int_to_ptr.hbm [resolvable:$true] %s4349_s5 }
0x29d9   : > { %s5462_s27 = sshra.s32 %s4350_s5, 4  ;;  %s5463_s27 = int_to_ptr.hbm [resolvable:$true] %s5462_s27 }
0x29da   : > { %p5469_p3 = scmp.lt.s32.totalorder %s5463_s27, %s6625_s4 }
0x29db   : > { %4743 = vmatmul.msk.bf16.vlgmr.msrb.gmra.mxu3 %vm694_vm10, %v4031_v2  ;;  %vm6691_vm10 = vcmask 228352   ;;  %v4859_v2 = vld [vmem:[#allocation7 + $0x188] sm:$0xff] }
0x29de   : > { %v3882_v43 = vpop.f32.mrf.mxu2 }
0x29df   : > { %v4858_v43 = vld [vmem:[#allocation7 + $0x180] sm:$0xff] }
0x29f8   : > { %v3994_v41 = vpop.f32.mrf.mxu2 }
0x2a00   : > { %v3996_v22 = vpop.f32.mrf.mxu2 }
0x2a37   : > { %v3821_v36 = vpop.f32.mrf.mxu3 }
0x2a38   : > { %4117 = vrot.lane.b32.xlu2 %v3821_v36, %s6668_s14 }
0x2a39   : > { %v4114_v17 = vpop.permute.xlu0 %4113 }
0x2a3a   : > { %v4140_v33 = vsel %vm671_vm9, %v6507_v5, %v4114_v17 }
0x2a3f   : > { %v3823_v53 = vpop.f32.mrf.mxu3 }
0x2a40   : > { %4129 = vrot.lane.b32.xlu2 %v3994_v41, %s5550_s9  ;;  %s5468_s9 = scalar_lea.hbm %s6625_s4, 2 }
0x2a49   : > { %v4122_v7 = vpop.permute.xlu0 %4121 }
0x2a4e   : > { %v3935_v13 = vpop.f32.mrf.mxu3 }
0x2a4f   : > { %4125 = vrot.lane.b32.xlu1 %v3935_v13, %s5551_s30  ;;  %s5464_s30 = scalar_lea.hbm %s5463_s27, 1 }
0x2a50   : > { %p5465_p0 = scmp.ne.s32.totalorder %s5463_s27, %s5464_s30  ;;  %p5470_p4 = scmp.lt.s32.totalorder %s5468_s9, %s5464_s30 }
0x2a52   : > { %p5466_p1 = pnand %p5465_p0, %p5617_p5  ;;  %p5471_p7 = por %p5470_p4, %p5469_p3 }
0x2a54   : > { %p5467_p2 = pneg %p5466_p1 }
0x2a56   : > { %v3937_v55 = vpop.f32.mrf.mxu3  ;;  %p5472_p8 = pnand %p5471_p7, %p5467_p2 }
0x2a5b   : > { %v4108_v35 = vpop.f32.mrf.mxu2 }
0x2a5c   : > { %4137 = vrot.lane.b32.xlu2 %v4108_v35, %s5552_s7 }
0x2a5e   : > { %v4049_v47 = vpop.f32.mrf.mxu3 }
0x2a5f   : > { %4133 = vrot.lane.b32.xlu0 %v4049_v47, %s6689_s11 }
0x2a63   : > { %v4110_v45 = vpop.f32.mrf.mxu2 }
0x2a66   : > { %v4051_v51 = vpop.f32.mrf.mxu3 }
0x2a92   : > { %v4118_v32 = vpop.permute.xlu2 %4117 }
0x2a93   : > { %v4141_v4 = vsel %vm1302_vm0, %v4140_v33, %v4118_v32 }
0x2a94   : > { %v4142_v30 = vsel %vm1305_vm2, %v4141_v4, %v4122_v7 }
0x2a9a   : > { %v4130_v52 = vpop.permute.xlu2 %4129 }
0x2ab6   : > { %v4138_v24 = vpop.permute.xlu2 %4137 }
0x2ac1   : > { %v4126_v40 = vpop.permute.xlu1 %4125 }
0x2ac2   : > { %v4143_v21 = vsel %vm1308_vm3, %v4142_v30, %v4126_v40 }
0x2ac3   : > { %v4144_v60 = vsel %vm1311_vm4, %v4143_v21, %v4130_v52 }
0x2ad1   : > { %v4134_v56 = vpop.permute.xlu0 %4133 }
0x2ad2   : > { %v4145_v11 = vsel %vm6690_vm1, %v4144_v60, %v4134_v56 }
0x2ad3   : > { %v4146_v12 = vsel %vm6691_vm10, %v4145_v11, %v4138_v24 }
0x2ad4   : > { %v4147_v16 = vpack.c.bf16 %v4146_v12, %v4146_v12 }
0x2ad6   : > { %4754 = vmatmul.msk.bf16.vlgmr.msra.gmra.mxu0 %vm473_vm12, %v4147_v16 }
0x2b53   : > { %v4172_v5 = vpop.f32.mrf.mxu0 }
0x2b54   : > { %v6572_v39 = vadd.f32 %v4172_v5, %v6458_v50  ;;  %v4865_v50 = vld [vmem:[#allocation7 + $0x1b8] sm:$0xff] }
0x2b55   : > { %4293 = vmatpush.bf16.msra.mxu1 %v4865_v50 }
0x2b56   : > { %v4177_v1 = vsel %vm542_vm13, %v6572_v39, 0.0 }
0x2b57   : > { %4178 = vadd.xlane.f32.xlu0 %v4177_v1  ;;  %v5357_v1 = vld [vmem:[#allocation2 + $0x8] sm:$0xff] }
0x2b59   : > { %4294 = vmatpush.bf16.msra.mxu1 %v4864_v10 }
0x2b5b   : > { %v4174_v3 = vpop.f32.mrf.mxu0 }
0x2b5c   : > { %v4329_v3 = vrot.slane %v5357_v1, 2 }
0x2b5d   : > { %4295 = vmatpush.bf16.msra.mxu1 %v4863_v9 }
0x2b61   : > { %4296 = vmatpush.bf16.msra.mxu1 %v4862_v6 }
0x2b65   : > { %4297 = vmatpush.bf16.msra.mxu1 %v4861_v23 }
0x2b69   : > { %4298 = vmatpush.bf16.msra.mxu1 %v4860_v34 }
0x2b6d   : > { %4299 = vmatpush.bf16.msra.mxu1 %v4859_v2 }
0x2b71   : > { %4300 = vmatpush.bf16.msra.mxu1 %v4858_v43 }
0x2bca   : > { %v4179_v42 = vpop.xlane.xlu0 %4178 }
0x2bcb   : > { %v4180_v44 = vmul.f32 %v4179_v42, %v5692_v38 }
0x2bcd   : > { %v4181_v63 = vsub.f32 %v6572_v39, %v4180_v44  ;;  %v4332_v44 = vrot.slane %v5357_v1, 3 }
0x2bcf   : > { %v4182_v18 = vmul.f32 %v4181_v63, %v4181_v63 }
0x2bd1   : > { %v4183_v49 = vsel %vm542_vm13, %v4182_v18, 0.0 }
0x2bd2   : > { %4184 = vadd.xlane.f32.xlu2 %v4183_v49 }
0x2c45   : > { %v4185_v25 = vpop.xlane.xlu2 %4184 }
0x2c46   : > { %v4186_v26 = vmul.f32 %v4185_v25, %v5692_v38 }
0x2c48   : > { %v4187_v57 = vadd.f32 1e-05, %v4186_v26 }
0x2c4a   : > { %5349 = vrsqrt.f32 %v4187_v57  ;;  %vm4194_vm11 = vweird.f32 %v4187_v57 }
0x2c50   : > { %v5350_v31 = vpop.eup %5349 }
0x2c51   : > { %v4189_v27 = vmul.f32 %v5350_v31, %v4187_v57  ;;  %vm4195_vm9 = vweird.f32 %v5350_v31 }
0x2c52   : > { %vm4196_vm0 = vmor %vm4194_vm11, %vm4195_vm9 }
0x2c53   : > { %v4190_v14 = vmul.f32 %v5350_v31, %v4189_v27 }
0x2c55   : > { %v4191_v61 = vmul.f32 0.5, %v4190_v14 }
0x2c57   : > { %v4192_v28 = vsub.f32 1.5, %v4191_v61 }
0x2c59   : > { %v4193_v48 = vmul.f32 %v5350_v31, %v4192_v28 }
0x2c5b   : > { %v4197_v59 = vsel %vm4196_vm0, %v5350_v31, %v4193_v48 }
0x2c5c   : > { %v4198_v62 = vmul.f32 %v4197_v59, %v4181_v63 }
0x2c5e   : > { %v4202_v0 = vmul.f32 %v4200_v19, %v4198_v62 }
0x2c60   : > { %v4205_v46 = vadd.f32 %v4203_v29, %v4202_v0 }
0x2c62   : > { %v4206_v8 = vpack.c.bf16 %v4205_v46, %v4205_v46 }
0x2c64   : > { %4763 = vmatmul.msk.bf16.vlgmr.msra.gmra.mxu3 %vm473_vm12, %v4206_v8 }
0x2ce7   : > { %v4231_v41 = vpop.f32.mrf.mxu3 }
0x2ce8   : > { %v4235_v37 = vmul.f32 %v4231_v41, %v4231_v41 }
0x2cea   : > { %v4236_v22 = vmul.f32 %v4235_v37, %v4231_v41 }
0x2cec   : > { %v4237_v36 = vmul.f32 0.044715, %v4236_v22 }
0x2cee   : > { %v4238_v53 = vadd.f32 %v4237_v36, %v4231_v41 }
0x2cef   : > { %v4233_v13 = vpop.f32.mrf.mxu3 }
0x2cf0   : > { %v4239_v55 = vmul.f32 0.7978846, %v4238_v53 }
0x2cf2   : > { %5351 = vtanh.f32 %v4239_v55 }
0x2cf8   : > { %v5352_v35 = vpop.eup %5351 }
0x2cf9   : > { %v4241_v47 = vadd.f32 1.0, %v5352_v35 }
0x2cfb   : > { %v4242_v45 = vmul.f32 0.5, %v4241_v47 }
0x2cfd   : > { %v4243_v51 = vmul.f32 %v4242_v45, %v4231_v41 }
0x2cff   : > { %v4244_v58 = vpack.c.bf16 %v4243_v51, %v4243_v51 }
0x2d01   : > { %4301 = vmatmul.bf16.vlgmr.msra.gmra.mxu1 %v4244_v58 }
0x2d7e   : > { %v4302_v54 = vpop.f32.mrf.mxu1 }
0x2d7f   : > { %v4306_v32 = vadd.f32 %v4302_v54, %v6572_v39 }
0x2d81   : > { %v4307_v17 = vsel %vm542_vm13, %v4306_v32, 0.0 }
0x2d82   : > { %4308 = vadd.xlane.f32.xlu1 %v4307_v17 }
0x2d86   : > { %v4304_v33 = vpop.f32.mrf.mxu1 }
0x2df5   : > { %v4309_v7 = vpop.xlane.xlu1 %4308 }
0x2df6   : > { %v4310_v4 = vmul.f32 %v4309_v7, %v5692_v38 }
0x2df8   : > { %v4311_v52 = vsub.f32 %v4306_v32, %v4310_v4 }
0x2dfa   : > { %v4312_v40 = vmul.f32 %v4311_v52, %v4311_v52 }
0x2dfc   : > { %v4313_v30 = vsel %vm542_vm13, %v4312_v40, 0.0 }
0x2dfd   : > { %4314 = vadd.xlane.f32.xlu0 %v4313_v30 }
0x2e70   : > { %v4315_v21 = vpop.xlane.xlu0 %4314 }
0x2e71   : > { %v4316_v56 = vmul.f32 %v4315_v21, %v5692_v38 }
0x2e73   : > { %v4317_v60 = vadd.f32 1e-05, %v4316_v56 }
0x2e75   : > { %5353 = vrsqrt.f32 %v4317_v60  ;;  %vm4324_vm2 = vweird.f32 %v4317_v60 }
0x2e7b   : > { %v5354_v24 = vpop.eup %5353 }
0x2e7c   : > { %v4319_v11 = vmul.f32 %v5354_v24, %v4317_v60  ;;  %vm4325_vm12 = vweird.f32 %v5354_v24 }
0x2e7d   : > { %vm4326_vm3 = vmor %vm4324_vm2, %vm4325_vm12 }
0x2e7e   : > { %v4320_v12 = vmul.f32 %v5354_v24, %v4319_v11 }
0x2e80   : > { %v4321_v16 = vmul.f32 0.5, %v4320_v12 }
0x2e82   : > { %v4322_v5 = vsub.f32 1.5, %v4321_v16 }
0x2e84   : > { %v4323_v39 = vmul.f32 %v5354_v24, %v4322_v5 }
0x2e86   : > { %v4327_v42 = vsel %vm4326_vm3, %v5354_v24, %v4323_v39 }
0x2e87   : > { %v4328_v38 = vmul.f32 %v4327_v42, %v4311_v52 }
0x2e89   : > { %v4331_v63 = vmul.f32 %v4329_v3, %v4328_v38 }
0x2e8b   : > { %v4334_v18 = vadd.f32 %v4332_v44, %v4331_v63 }
0x2e8d   : > { %4335 = vst.msk [vmem:[%s237_s22] sm:$0x1] %vm542_vm13, %v4334_v18 }
0x2e8e   : > { %5475 = shalt.err (!%p5472_p8)
}
0x2e8f   : > { %4878 = dma.vmem_to_hbm [thread:$0]  (%p5617_p5), %s4348_s29, 16, %s4350_s5, %s4337_s8  }
0x2e90 PF: > { %p4900_p9 = scmp.ge.s32.totalorder %s5518_s18, 2  ;;  %s4361_s23 = sand.u32 1, %s5506_s15  }
0x2e91   : > { %s4362_s10 = scalar_lea.sflag [#allocation4], %s4361_s23 }
0x2e92   : > { %p4891_p10 = pnand %p4900_p9, %p5621_p6 }
0x2e94   : > { %p4892_p11 = pneg %p4891_p10 }
0x2e96   : > { %5501 = dma.done.wait (%p4892_p11), %s4362_s10, 16  }
0x2e97   : > { %5503 = vsyncadd (%p4892_p11), %s4362_s10, 4294967280  ;;  %p16_p12 = scmp.ge.s32.totalorder %s5604_s21, 4   ;;  %s6692_s15 = smov %s5510_s16 }
0x2e98   : > { %s6693_s16 = smov %s5514_s17  ;;  %s6694_s17 = smov %s5615_s24 }
0x2e99   : > { %s6695_s18 = smov %s5604_s21  ;;  %18 = sbr.rel (!%p16_p12) target bundleno = 5 (0x5), region = 87 }
0x2e9e   :  { %4367 = vsyncpa [#allocation3], 1 }
0x2e9f   :  { %4369 = vsyncpa [#allocation3 + $0x1], 1 }
0x2ea0   :  { %4370 = vsyncpa [#allocation6], 1 }
0x2ea1   :  { %4371 = vsyncpa [#allocation4], 1 }
0x2ea2   :  { %4373 = vsyncpa [#allocation4 + $0x1], 1 }

</bundles_post_ra>
